<compile_context>
chip_gen: v7x
topology: tpu7x:2x2x1
jax: 0.10.0
libtpu: 0.0.40
codegen_flags: <defaults>
</compile_context>

<pallas_src>
import jax
import jax.numpy as jnp
from jax import lax
from jax.experimental import pallas as pl
from jax.experimental.pallas import tpu as pltpu

EPS = 1e-5
VMEM_LIMIT = 48 * 1024 * 1024  # > 16/32 MiB scoped defaults, < v7x's 64 MiB physical


def _circshift(x, d, axis):
    """y[..., i, ...] = x[..., (i + d) % n, ...] with static d (wrap-around shift)."""
    if d == 0:
        return x
    n = x.shape[axis]
    d = d % n
    lo = lax.slice_in_dim(x, d, n, axis=axis)
    hi = lax.slice_in_dim(x, 0, d, axis=axis)
    return jnp.concatenate([lo, hi], axis=axis)


def _make_conv_stats_kernel(H, W, C, fuse_bn_relu):
    """Per-image kernel: [optional BN+ReLU of the incoming activation] ->
    circular 3x3 conv as a single fused K=9*C matmul -> partial BN stats."""

    def conv_body(x, w_ref, y_ref, stats_ref, taps_scr):
        # Build the 9 circular-shifted taps directly in VMEM scratch (no HBM im2col).
        # H-shift: wrap-around concat on the outer axis.  W-shift: two piecewise
        # static-sliced stores into the scratch (avoids sublane-dim concatenation).
        for dy in (-1, 0, 1):
            xs = _circshift(x, dy, axis=0)          # xs[h] = x[(h+dy) % H]
            for dx in (-1, 0, 1):
                t = (dy + 1) * 3 + (dx + 1)          # t = ky*3 + kx
                c0, c1 = t * C, (t + 1) * C
                d = dx % W
                if d == 0:
                    taps_scr[:, :, c0:c1] = xs
                else:
                    taps_scr[:, 0:W - d, c0:c1] = xs[:, d:W, :]
                    taps_scr[:, W - d:W, c0:c1] = xs[:, 0:d, :]

        # Single fused matmul: (H*W, 9*C) x (9*C, C) on the MXU, f32 accumulation.
        taps = taps_scr[...].reshape(H * W, 9 * C)
        acc = jnp.dot(taps, w_ref[...], preferred_element_type=jnp.float32)  # (H*W, C)

        y_ref[0] = acc.reshape(H, W, C)
        # Per-image partial BatchNorm statistics (combined & folded in the wrapper).
        stats_ref[0, 0:1, :] = jnp.sum(acc, axis=0, keepdims=True)
        stats_ref[0, 1:2, :] = jnp.sum(acc * acc, axis=0, keepdims=True)

    if fuse_bn_relu:
        def kernel(x_ref, scale_ref, shift_ref, w_ref, y_ref, stats_ref, taps_scr):
            # Folded BN of the previous stage + ReLU, applied on the fly (one FMA).
            xa = jnp.maximum(x_ref[0] * scale_ref[...] + shift_ref[...], 0.0)
            conv_body(xa, w_ref, y_ref, stats_ref, taps_scr)
    else:
        def kernel(x_ref, w_ref, y_ref, stats_ref, taps_scr):
            conv_body(x_ref[0], w_ref, y_ref, stats_ref, taps_scr)

    return kernel


def _conv_stats_call(x_nhwc, w_cat, scale=None, shift=None):
    """Grid over batch N ('parallel'); one image block per step."""
    N, H, W, C = x_nhwc.shape
    fused = scale is not None
    kernel = _make_conv_stats_kernel(H, W, C, fused)

    in_specs = [pl.BlockSpec((1, H, W, C), lambda n: (n, 0, 0, 0))]
    args = [x_nhwc]
    if fused:
        in_specs += [pl.BlockSpec((1, C), lambda n: (0, 0)),
                     pl.BlockSpec((1, C), lambda n: (0, 0))]
        args += [scale, shift]
    in_specs += [pl.BlockSpec((9 * C, C), lambda n: (0, 0))]
    args += [w_cat]

    y, stats = pl.pallas_call(
        kernel,
        out_shape=(jax.ShapeDtypeStruct((N, H, W, C), jnp.float32),
                   jax.ShapeDtypeStruct((N, 2, C), jnp.float32)),
        grid=(N,),
        in_specs=in_specs,
        out_specs=(pl.BlockSpec((1, H, W, C), lambda n: (n, 0, 0, 0)),
                   pl.BlockSpec((1, 2, C), lambda n: (n, 0, 0))),
        scratch_shapes=[pltpu.VMEM((H, W, 9 * C), jnp.float32)],
        compiler_params=pltpu.CompilerParams(
            dimension_semantics=("parallel",),
            vmem_limit_bytes=VMEM_LIMIT),
    )(*args)
    return y, stats


def _bn_res_relu_kernel(y_ref, x_ref, scale_ref, shift_ref, o_ref):
    # Lane-dense epilogue: out = ReLU(x + y * scale + shift), scale/shift broadcast.
    o_ref[...] = jnp.maximum(
        x_ref[...] + y_ref[...] * scale_ref[...] + shift_ref[...], 0.0)


def _pick_row_tile(rows, lanes, target_bytes=2 * 1024 * 1024):
    """Largest multiple-of-8 divisor of `rows` whose (tile, lanes) f32 block stays
    under target_bytes, so double-buffered tiles fit VMEM on every generation
    (including v7x's 64 MiB)."""
    if rows <= 8:
        return rows
    cap = max(8, target_bytes // (lanes * 4))
    best = None
    t = 8
    while t <= rows:
        if rows % t == 0 and t <= cap:
            best = t
        t += 8
    return best if best is not None else rows


def _epilogue_call(y2, xres, scale_t, shift_t):
    R, L = y2.shape                       # R = N*H rows, L = W*C lanes (lane-dense)
    tm = _pick_row_tile(R, L)
    return pl.pallas_call(
        _bn_res_relu_kernel,
        out_shape=jax.ShapeDtypeStruct((R, L), jnp.float32),
        grid=(R // tm,),
        in_specs=[pl.BlockSpec((tm, L), lambda i: (i, 0)),
                  pl.BlockSpec((tm, L), lambda i: (i, 0)),
                  pl.BlockSpec((1, L), lambda i: (0, 0)),
                  pl.BlockSpec((1, L), lambda i: (0, 0))],
        out_specs=pl.BlockSpec((tm, L), lambda i: (i, 0)),
        compiler_params=pltpu.CompilerParams(
            dimension_semantics=("parallel",),
            vmem_limit_bytes=VMEM_LIMIT),
    )(y2, xres, scale_t, shift_t)


def _fold_weight(w_oihw):
    # PyTorch conv weight (C_out, C_in, 3, 3) -> (9*C_in, C_out); row = (ky*3+kx)*C_in + ci
    # matching the in-kernel tap order t = ky*3 + kx.
    co, ci = w_oihw.shape[0], w_oihw.shape[1]
    return jnp.transpose(w_oihw, (2, 3, 1, 0)).reshape(9 * ci, co).astype(jnp.float32)


def _fold_bn(stats, gamma, beta, count):
    # stats: (N, 2, C) per-image [sum, sum_sq].  Training-mode (biased) batch stats.
    s = jnp.sum(stats, axis=0)                                   # (2, C)
    mean = s[0] / count
    var = jnp.maximum(s[1] / count - mean * mean, 0.0)
    scale = gamma * lax.rsqrt(var + EPS)
    shift = beta - mean * scale
    return (scale[None, :].astype(jnp.float32),
            shift[None, :].astype(jnp.float32))                  # (1, C) each


@jax.jit
def resblock_forward(x_nchw, params):
    w1, g1, b1, w2, g2, b2 = params
    N, C, H, W = x_nchw.shape
    M = N * H * W

    x = jnp.transpose(x_nchw, (0, 2, 3, 1)).astype(jnp.float32)  # NCHW -> NHWC
    w1c, w2c = _fold_weight(w1), _fold_weight(w2)

    # Stage 1: conv3x3 (circular) + partial batch statistics.
    y1, st1 = _conv_stats_call(x, w1c)
    scale1, shift1 = _fold_bn(st1, g1, b1, M)

    # Stage 2: BN1 + ReLU fused in, then conv3x3 (circular) + partial batch statistics.
    y2, st2 = _conv_stats_call(y1, w2c, scale1, shift1)
    scale2, shift2 = _fold_bn(st2, g2, b2, M)

    # Epilogue: BN2 + residual + ReLU on a lane-dense (N*H, W*C) slab (free reshapes).
    out = _epilogue_call(
        y2.reshape(N * H, W * C),
        x.reshape(N * H, W * C),
        jnp.tile(scale2, (1, W)),
        jnp.tile(shift2, (1, W)),
    )
    return jnp.transpose(out.reshape(N, H, W, C), (0, 3, 1, 2))  # back to NCHW


# ----- pure-JAX reference (same math, via lax.conv) for verification -----
def _ref_conv_bn(x_nchw, w_oihw, gamma, beta):
    C = x_nchw.shape[1]
    xp = jnp.pad(x_nchw, ((0, 0), (0, 0), (1, 1), (1, 1)), mode="wrap")
    y = lax.conv_general_dilated(
        xp, w_oihw, (1, 1), "VALID",
        dimension_numbers=("NCHW", "OIHW", "NCHW"),
        precision=lax.Precision.HIGHEST)
    mean = jnp.mean(y, axis=(0, 2, 3), keepdims=True)
    var = jnp.mean((y - mean) ** 2, axis=(0, 2, 3), keepdims=True)
    yhat = (y - mean) * lax.rsqrt(var + EPS)
    return yhat * gamma.reshape(1, C, 1, 1) + beta.reshape(1, C, 1, 1)


def ref_resblock(x_nchw, params):
    w1, g1, b1, w2, g2, b2 = params
    y = jnp.maximum(_ref_conv_bn(x_nchw, w1, g1, b1), 0.0)
    y = _ref_conv_bn(y, w2, g2, b2)
    return jnp.maximum(x_nchw + y, 0.0)


if __name__ == "__main__":
    key = jax.random.PRNGKey(0)
    N, C, H, W = 2, 4, 16, 16
    kx, kw1, kw2, kg1, kb1, kg2, kb2 = jax.random.split(key, 7)

    x = jax.random.normal(kx, (N, C, H, W), jnp.float32)

    # ResBlock(num_channels=C) parameters: conv weights in PyTorch OIHW layout
    # (bias=False), BatchNorm gamma/beta per channel.
    fan_in = float(C * 9)
    w1 = jax.random.normal(kw1, (C, C, 3, 3), jnp.float32) / jnp.sqrt(fan_in)
    w2 = jax.random.normal(kw2, (C, C, 3, 3), jnp.float32) / jnp.sqrt(fan_in)
    g1 = 1.0 + 0.1 * jax.random.normal(kg1, (C,), jnp.float32)
    b1 = 0.1 * jax.random.normal(kb1, (C,), jnp.float32)
    g2 = 1.0 + 0.1 * jax.random.normal(kg2, (C,), jnp.float32)
    b2 = 0.1 * jax.random.normal(kb2, (C,), jnp.float32)
    params = (w1, g1, b1, w2, g2, b2)

    out = resblock_forward(x, params)
    jax.block_until_ready(out)

    ref = ref_resblock(x, params)
    assert out.shape == (N, C, H, W)
    max_err = float(jnp.max(jnp.abs(out - ref)))
    assert jnp.allclose(out, ref, atol=1e-3, rtol=1e-3), max_err

    print("KERNEL_OK")
</pallas_src>

<mosaic_0001>
module attributes {stable_mosaic.version = 11 : i64} {
  func.func @kernel(%arg0: i32, %arg1: memref<1x16x16x4xf32, #tpu.memory_space<vmem>>, %arg2: memref<36x4xf32, #tpu.memory_space<vmem>>, %arg3: memref<1x16x16x4xf32, #tpu.memory_space<vmem>>, %arg4: memref<1x2x4xf32, #tpu.memory_space<vmem>>, %arg5: memref<16x16x36xf32, #tpu.memory_space<vmem>>) attributes {dimension_semantics = [#tpu.dimension_semantics<parallel>], iteration_bounds = array<i64: 2>, scalar_prefetch = 0 : i64, scratch_operands = 1 : i64, tpu.core_type = #tpu.core_type<tc>, window_params = [{transform_indices = @transform_0, window_bounds = array<i64: 1, 16, 16, 4>}, {pipeline_mode = #tpu.pipeline_mode<synchronous>, transform_indices = @transform_1, window_bounds = array<i64: 36, 4>}, {transform_indices = @transform_2, window_bounds = array<i64: 1, 16, 16, 4>}, {transform_indices = @transform_3, window_bounds = array<i64: 1, 2, 4>}]} {
    %c0 = arith.constant 0 : index
    %c0_0 = arith.constant 0 : index
    %c0_1 = arith.constant 0 : index
    %c0_2 = arith.constant 0 : index
    %0 = vector.load %arg1[%c0, %c0_0, %c0_1, %c0_2] : memref<1x16x16x4xf32, #tpu.memory_space<vmem>>, vector<1x16x16x4xf32>
    %1 = vector.shape_cast %0 : vector<1x16x16x4xf32> to vector<16x16x4xf32>
    %2 = vector.extract_strided_slice %1 {offsets = [15, 0, 0], sizes = [1, 16, 4], strides = [1, 1, 1]} : vector<16x16x4xf32> to vector<1x16x4xf32>
    %3 = vector.extract_strided_slice %1 {offsets = [0, 0, 0], sizes = [15, 16, 4], strides = [1, 1, 1]} : vector<16x16x4xf32> to vector<15x16x4xf32>
    %4 = tpu.concatenate %2, %3 in 0 : vector<1x16x4xf32>, vector<15x16x4xf32> -> vector<16x16x4xf32>
    %5 = vector.extract_strided_slice %4 {offsets = [0, 15, 0], sizes = [16, 1, 4], strides = [1, 1, 1]} : vector<16x16x4xf32> to vector<16x1x4xf32>
    %c0_3 = arith.constant 0 : index
    %c0_4 = arith.constant 0 : index
    %c0_5 = arith.constant 0 : index
    %6 = vector.load %arg5[%c0_3, %c0_4, %c0_5] : memref<16x16x36xf32, #tpu.memory_space<vmem>>, vector<16x1x4xf32>
    tpu.vector_store %arg5[%c0_3, %c0_4, %c0_5], %5 {strides = array<i32>} : memref<16x16x36xf32, #tpu.memory_space<vmem>>, vector<16x1x4xf32>,
    %7 = vector.extract_strided_slice %4 {offsets = [0, 0, 0], sizes = [16, 15, 4], strides = [1, 1, 1]} : vector<16x16x4xf32> to vector<16x15x4xf32>
    %c0_6 = arith.constant 0 : index
    %c1 = arith.constant 1 : index
    %c0_7 = arith.constant 0 : index
    %8 = vector.load %arg5[%c0_6, %c1, %c0_7] : memref<16x16x36xf32, #tpu.memory_space<vmem>>, vector<16x15x4xf32>
    tpu.vector_store %arg5[%c0_6, %c1, %c0_7], %7 {strides = array<i32>} : memref<16x16x36xf32, #tpu.memory_space<vmem>>, vector<16x15x4xf32>,
    %c0_8 = arith.constant 0 : index
    %c0_9 = arith.constant 0 : index
    %c4 = arith.constant 4 : index
    %9 = vector.load %arg5[%c0_8, %c0_9, %c4] : memref<16x16x36xf32, #tpu.memory_space<vmem>>, vector<16x16x4xf32>
    tpu.vector_store %arg5[%c0_8, %c0_9, %c4], %4 {strides = array<i32>} : memref<16x16x36xf32, #tpu.memory_space<vmem>>, vector<16x16x4xf32>,
    %10 = vector.extract_strided_slice %4 {offsets = [0, 1, 0], sizes = [16, 15, 4], strides = [1, 1, 1]} : vector<16x16x4xf32> to vector<16x15x4xf32>
    %c0_10 = arith.constant 0 : index
    %c0_11 = arith.constant 0 : index
    %c8 = arith.constant 8 : index
    %11 = vector.load %arg5[%c0_10, %c0_11, %c8] : memref<16x16x36xf32, #tpu.memory_space<vmem>>, vector<16x15x4xf32>
    tpu.vector_store %arg5[%c0_10, %c0_11, %c8], %10 {strides = array<i32>} : memref<16x16x36xf32, #tpu.memory_space<vmem>>, vector<16x15x4xf32>,
    %12 = vector.extract_strided_slice %4 {offsets = [0, 0, 0], sizes = [16, 1, 4], strides = [1, 1, 1]} : vector<16x16x4xf32> to vector<16x1x4xf32>
    %c0_12 = arith.constant 0 : index
    %c15 = arith.constant 15 : index
    %c8_13 = arith.constant 8 : index
    %13 = vector.load %arg5[%c0_12, %c15, %c8_13] : memref<16x16x36xf32, #tpu.memory_space<vmem>>, vector<16x1x4xf32>
    tpu.vector_store %arg5[%c0_12, %c15, %c8_13], %12 {strides = array<i32>} : memref<16x16x36xf32, #tpu.memory_space<vmem>>, vector<16x1x4xf32>,
    %14 = vector.extract_strided_slice %1 {offsets = [0, 15, 0], sizes = [16, 1, 4], strides = [1, 1, 1]} : vector<16x16x4xf32> to vector<16x1x4xf32>
    %c0_14 = arith.constant 0 : index
    %c0_15 = arith.constant 0 : index
    %c12 = arith.constant 12 : index
    %15 = vector.load %arg5[%c0_14, %c0_15, %c12] : memref<16x16x36xf32, #tpu.memory_space<vmem>>, vector<16x1x4xf32>
    tpu.vector_store %arg5[%c0_14, %c0_15, %c12], %14 {strides = array<i32>} : memref<16x16x36xf32, #tpu.memory_space<vmem>>, vector<16x1x4xf32>,
    %16 = vector.extract_strided_slice %1 {offsets = [0, 0, 0], sizes = [16, 15, 4], strides = [1, 1, 1]} : vector<16x16x4xf32> to vector<16x15x4xf32>
    %c0_16 = arith.constant 0 : index
    %c1_17 = arith.constant 1 : index
    %c12_18 = arith.constant 12 : index
    %17 = vector.load %arg5[%c0_16, %c1_17, %c12_18] : memref<16x16x36xf32, #tpu.memory_space<vmem>>, vector<16x15x4xf32>
    tpu.vector_store %arg5[%c0_16, %c1_17, %c12_18], %16 {strides = array<i32>} : memref<16x16x36xf32, #tpu.memory_space<vmem>>, vector<16x15x4xf32>,
    %c0_19 = arith.constant 0 : index
    %c0_20 = arith.constant 0 : index
    %c16 = arith.constant 16 : index
    %18 = vector.load %arg5[%c0_19, %c0_20, %c16] : memref<16x16x36xf32, #tpu.memory_space<vmem>>, vector<16x16x4xf32>
    tpu.vector_store %arg5[%c0_19, %c0_20, %c16], %1 {strides = array<i32>} : memref<16x16x36xf32, #tpu.memory_space<vmem>>, vector<16x16x4xf32>,
    %19 = vector.extract_strided_slice %1 {offsets = [0, 1, 0], sizes = [16, 15, 4], strides = [1, 1, 1]} : vector<16x16x4xf32> to vector<16x15x4xf32>
    %c0_21 = arith.constant 0 : index
    %c0_22 = arith.constant 0 : index
    %c20 = arith.constant 20 : index
    %20 = vector.load %arg5[%c0_21, %c0_22, %c20] : memref<16x16x36xf32, #tpu.memory_space<vmem>>, vector<16x15x4xf32>
    tpu.vector_store %arg5[%c0_21, %c0_22, %c20], %19 {strides = array<i32>} : memref<16x16x36xf32, #tpu.memory_space<vmem>>, vector<16x15x4xf32>,
    %21 = vector.extract_strided_slice %1 {offsets = [0, 0, 0], sizes = [16, 1, 4], strides = [1, 1, 1]} : vector<16x16x4xf32> to vector<16x1x4xf32>
    %c0_23 = arith.constant 0 : index
    %c15_24 = arith.constant 15 : index
    %c20_25 = arith.constant 20 : index
    %22 = vector.load %arg5[%c0_23, %c15_24, %c20_25] : memref<16x16x36xf32, #tpu.memory_space<vmem>>, vector<16x1x4xf32>
    tpu.vector_store %arg5[%c0_23, %c15_24, %c20_25], %21 {strides = array<i32>} : memref<16x16x36xf32, #tpu.memory_space<vmem>>, vector<16x1x4xf32>,
    %23 = vector.extract_strided_slice %1 {offsets = [1, 0, 0], sizes = [15, 16, 4], strides = [1, 1, 1]} : vector<16x16x4xf32> to vector<15x16x4xf32>
    %24 = vector.extract_strided_slice %1 {offsets = [0, 0, 0], sizes = [1, 16, 4], strides = [1, 1, 1]} : vector<16x16x4xf32> to vector<1x16x4xf32>
    %25 = tpu.concatenate %23, %24 in 0 : vector<15x16x4xf32>, vector<1x16x4xf32> -> vector<16x16x4xf32>
    %26 = vector.extract_strided_slice %25 {offsets = [0, 15, 0], sizes = [16, 1, 4], strides = [1, 1, 1]} : vector<16x16x4xf32> to vector<16x1x4xf32>
    %c0_26 = arith.constant 0 : index
    %c0_27 = arith.constant 0 : index
    %c24 = arith.constant 24 : index
    %27 = vector.load %arg5[%c0_26, %c0_27, %c24] : memref<16x16x36xf32, #tpu.memory_space<vmem>>, vector<16x1x4xf32>
    tpu.vector_store %arg5[%c0_26, %c0_27, %c24], %26 {strides = array<i32>} : memref<16x16x36xf32, #tpu.memory_space<vmem>>, vector<16x1x4xf32>,
    %28 = vector.extract_strided_slice %25 {offsets = [0, 0, 0], sizes = [16, 15, 4], strides = [1, 1, 1]} : vector<16x16x4xf32> to vector<16x15x4xf32>
    %c0_28 = arith.constant 0 : index
    %c1_29 = arith.constant 1 : index
    %c24_30 = arith.constant 24 : index
    %29 = vector.load %arg5[%c0_28, %c1_29, %c24_30] : memref<16x16x36xf32, #tpu.memory_space<vmem>>, vector<16x15x4xf32>
    tpu.vector_store %arg5[%c0_28, %c1_29, %c24_30], %28 {strides = array<i32>} : memref<16x16x36xf32, #tpu.memory_space<vmem>>, vector<16x15x4xf32>,
    %c0_31 = arith.constant 0 : index
    %c0_32 = arith.constant 0 : index
    %c28 = arith.constant 28 : index
    %30 = vector.load %arg5[%c0_31, %c0_32, %c28] : memref<16x16x36xf32, #tpu.memory_space<vmem>>, vector<16x16x4xf32>
    tpu.vector_store %arg5[%c0_31, %c0_32, %c28], %25 {strides = array<i32>} : memref<16x16x36xf32, #tpu.memory_space<vmem>>, vector<16x16x4xf32>,
    %31 = vector.extract_strided_slice %25 {offsets = [0, 1, 0], sizes = [16, 15, 4], strides = [1, 1, 1]} : vector<16x16x4xf32> to vector<16x15x4xf32>
    %c0_33 = arith.constant 0 : index
    %c0_34 = arith.constant 0 : index
    %c32 = arith.constant 32 : index
    %32 = vector.load %arg5[%c0_33, %c0_34, %c32] : memref<16x16x36xf32, #tpu.memory_space<vmem>>, vector<16x15x4xf32>
    tpu.vector_store %arg5[%c0_33, %c0_34, %c32], %31 {strides = array<i32>} : memref<16x16x36xf32, #tpu.memory_space<vmem>>, vector<16x15x4xf32>,
    %33 = vector.extract_strided_slice %25 {offsets = [0, 0, 0], sizes = [16, 1, 4], strides = [1, 1, 1]} : vector<16x16x4xf32> to vector<16x1x4xf32>
    %c0_35 = arith.constant 0 : index
    %c15_36 = arith.constant 15 : index
    %c32_37 = arith.constant 32 : index
    %34 = vector.load %arg5[%c0_35, %c15_36, %c32_37] : memref<16x16x36xf32, #tpu.memory_space<vmem>>, vector<16x1x4xf32>
    tpu.vector_store %arg5[%c0_35, %c15_36, %c32_37], %33 {strides = array<i32>} : memref<16x16x36xf32, #tpu.memory_space<vmem>>, vector<16x1x4xf32>,
    %c0_38 = arith.constant 0 : index
    %c0_39 = arith.constant 0 : index
    %c0_40 = arith.constant 0 : index
    %35 = vector.load %arg5[%c0_38, %c0_39, %c0_40] : memref<16x16x36xf32, #tpu.memory_space<vmem>>, vector<16x16x36xf32>
    %36 = vector.shape_cast %35 : vector<16x16x36xf32> to vector<256x36xf32>
    %c0_41 = arith.constant 0 : index
    %c0_42 = arith.constant 0 : index
    %37 = vector.load %arg2[%c0_41, %c0_42] : memref<36x4xf32, #tpu.memory_space<vmem>>, vector<36x4xf32>
    %cst = arith.constant dense<0.000000e+00> : vector<256x4xf32>
    %38 = tpu.matmul %36, %37, %cst {dimension_numbers = #tpu.dot_dimension_numbers<[1], [0], [0], [1], [0, 0, 1, 1], [], []>} : vector<256x36xf32>, vector<36x4xf32>, vector<256x4xf32> -> vector<256x4xf32>
    %39 = vector.shape_cast %38 : vector<256x4xf32> to vector<16x16x4xf32>
    %c0_43 = arith.constant 0 : index
    %c0_44 = arith.constant 0 : index
    %c0_45 = arith.constant 0 : index
    %c0_46 = arith.constant 0 : index
    %40 = vector.load %arg3[%c0_43, %c0_44, %c0_45, %c0_46] : memref<1x16x16x4xf32, #tpu.memory_space<vmem>>, vector<1x16x16x4xf32>
    %41 = vector.shape_cast %40 : vector<1x16x16x4xf32> to vector<16x16x4xf32>
    %42 = vector.shape_cast %39 : vector<16x16x4xf32> to vector<1x16x16x4xf32>
    tpu.vector_store %arg3[%c0_43, %c0_44, %c0_45, %c0_46], %42 {strides = array<i32>} : memref<1x16x16x4xf32, #tpu.memory_space<vmem>>, vector<1x16x16x4xf32>,
    %cst_47 = arith.constant dense<0.000000e+00> : vector<4xf32>
    %43 = vector.multi_reduction <add>, %38, %cst_47 [0] : vector<256x4xf32> to vector<4xf32>
    %44 = vector.shape_cast %43 : vector<4xf32> to vector<1x4xf32>
    %c0_48 = arith.constant 0 : index
    %c0_49 = arith.constant 0 : index
    %c0_50 = arith.constant 0 : index
    %45 = vector.load %arg4[%c0_48, %c0_49, %c0_50] : memref<1x2x4xf32, #tpu.memory_space<vmem>>, vector<1x1x4xf32>
    %46 = vector.shape_cast %45 : vector<1x1x4xf32> to vector<1x4xf32>
    %47 = vector.shape_cast %44 : vector<1x4xf32> to vector<1x1x4xf32>
    tpu.vector_store %arg4[%c0_48, %c0_49, %c0_50], %47 {strides = array<i32>} : memref<1x2x4xf32, #tpu.memory_space<vmem>>, vector<1x1x4xf32>,
    %48 = arith.mulf %38, %38 : vector<256x4xf32>
    %cst_51 = arith.constant dense<0.000000e+00> : vector<4xf32>
    %49 = vector.multi_reduction <add>, %48, %cst_51 [0] : vector<256x4xf32> to vector<4xf32>
    %50 = vector.shape_cast %49 : vector<4xf32> to vector<1x4xf32>
    %c0_52 = arith.constant 0 : index
    %c1_53 = arith.constant 1 : index
    %c0_54 = arith.constant 0 : index
    %51 = vector.load %arg4[%c0_52, %c1_53, %c0_54] : memref<1x2x4xf32, #tpu.memory_space<vmem>>, vector<1x1x4xf32>
    %52 = vector.shape_cast %51 : vector<1x1x4xf32> to vector<1x4xf32>
    %53 = vector.shape_cast %50 : vector<1x4xf32> to vector<1x1x4xf32>
    tpu.vector_store %arg4[%c0_52, %c1_53, %c0_54], %53 {strides = array<i32>} : memref<1x2x4xf32, #tpu.memory_space<vmem>>, vector<1x1x4xf32>,
    return
  }
  func.func @transform_0(%arg0: i32) -> (i32, i32, i32, i32) {
    %c0_i32 = arith.constant 0 : i32
    %c0_i32_0 = arith.constant 0 : i32
    %c0_i32_1 = arith.constant 0 : i32
    %c0_i32_2 = arith.constant 0 : i32
    return %arg0, %c0_i32, %c0_i32_0, %c0_i32_1 : i32, i32, i32, i32
  }
  func.func @transform_1(%arg0: i32) -> (i32, i32) {
    %c0_i32 = arith.constant 0 : i32
    %c0_i32_0 = arith.constant 0 : i32
    %c0_i32_1 = arith.constant 0 : i32
    return %c0_i32, %c0_i32_0 : i32, i32
  }
  func.func @transform_2(%arg0: i32) -> (i32, i32, i32, i32) {
    %c0_i32 = arith.constant 0 : i32
    %c0_i32_0 = arith.constant 0 : i32
    %c0_i32_1 = arith.constant 0 : i32
    %c0_i32_2 = arith.constant 0 : i32
    return %arg0, %c0_i32, %c0_i32_0, %c0_i32_1 : i32, i32, i32, i32
  }
  func.func @transform_3(%arg0: i32) -> (i32, i32, i32) {
    %c0_i32 = arith.constant 0 : i32
    %c0_i32_0 = arith.constant 0 : i32
    %c0_i32_1 = arith.constant 0 : i32
    return %arg0, %c0_i32, %c0_i32_0 : i32, i32, i32
  }
}

module attributes {stable_mosaic.version = 11 : i64} {
  func.func @kernel(%arg0: i32, %arg1: memref<1x16x16x4xf32, #tpu.memory_space<vmem>>, %arg2: memref<1x4xf32, #tpu.memory_space<vmem>>, %arg3: memref<1x4xf32, #tpu.memory_space<vmem>>, %arg4: memref<36x4xf32, #tpu.memory_space<vmem>>, %arg5: memref<1x16x16x4xf32, #tpu.memory_space<vmem>>, %arg6: memref<1x2x4xf32, #tpu.memory_space<vmem>>, %arg7: memref<16x16x36xf32, #tpu.memory_space<vmem>>) attributes {dimension_semantics = [#tpu.dimension_semantics<parallel>], iteration_bounds = array<i64: 2>, scalar_prefetch = 0 : i64, scratch_operands = 1 : i64, tpu.core_type = #tpu.core_type<tc>, window_params = [{transform_indices = @transform_0, window_bounds = array<i64: 1, 16, 16, 4>}, {pipeline_mode = #tpu.pipeline_mode<synchronous>, transform_indices = @transform_1, window_bounds = array<i64: 1, 4>}, {pipeline_mode = #tpu.pipeline_mode<synchronous>, transform_indices = @transform_2, window_bounds = array<i64: 1, 4>}, {pipeline_mode = #tpu.pipeline_mode<synchronous>, transform_indices = @transform_3, window_bounds = array<i64: 36, 4>}, {transform_indices = @transform_4, window_bounds = array<i64: 1, 16, 16, 4>}, {transform_indices = @transform_5, window_bounds = array<i64: 1, 2, 4>}]} {
    %c0 = arith.constant 0 : index
    %c0_0 = arith.constant 0 : index
    %c0_1 = arith.constant 0 : index
    %c0_2 = arith.constant 0 : index
    %0 = vector.load %arg1[%c0, %c0_0, %c0_1, %c0_2] : memref<1x16x16x4xf32, #tpu.memory_space<vmem>>, vector<1x16x16x4xf32>
    %1 = vector.shape_cast %0 : vector<1x16x16x4xf32> to vector<16x16x4xf32>
    %c0_3 = arith.constant 0 : index
    %c0_4 = arith.constant 0 : index
    %2 = vector.load %arg2[%c0_3, %c0_4] : memref<1x4xf32, #tpu.memory_space<vmem>>, vector<1x4xf32>
    %3 = vector.shape_cast %2 : vector<1x4xf32> to vector<1x1x4xf32>
    %4 = vector.broadcast %3 : vector<1x1x4xf32> to vector<16x16x4xf32>
    %5 = arith.mulf %1, %4 : vector<16x16x4xf32>
    %c0_5 = arith.constant 0 : index
    %c0_6 = arith.constant 0 : index
    %6 = vector.load %arg3[%c0_5, %c0_6] : memref<1x4xf32, #tpu.memory_space<vmem>>, vector<1x4xf32>
    %7 = vector.shape_cast %6 : vector<1x4xf32> to vector<1x1x4xf32>
    %8 = vector.broadcast %7 : vector<1x1x4xf32> to vector<16x16x4xf32>
    %9 = arith.addf %5, %8 : vector<16x16x4xf32>
    %cst = arith.constant 0.000000e+00 : f32
    %10 = vector.broadcast %cst : f32 to vector<16x16x4xf32>
    %11 = arith.maximumf %9, %10 : vector<16x16x4xf32>
    %12 = vector.extract_strided_slice %11 {offsets = [15, 0, 0], sizes = [1, 16, 4], strides = [1, 1, 1]} : vector<16x16x4xf32> to vector<1x16x4xf32>
    %13 = vector.extract_strided_slice %11 {offsets = [0, 0, 0], sizes = [15, 16, 4], strides = [1, 1, 1]} : vector<16x16x4xf32> to vector<15x16x4xf32>
    %14 = tpu.concatenate %12, %13 in 0 : vector<1x16x4xf32>, vector<15x16x4xf32> -> vector<16x16x4xf32>
    %15 = vector.extract_strided_slice %14 {offsets = [0, 15, 0], sizes = [16, 1, 4], strides = [1, 1, 1]} : vector<16x16x4xf32> to vector<16x1x4xf32>
    %c0_7 = arith.constant 0 : index
    %c0_8 = arith.constant 0 : index
    %c0_9 = arith.constant 0 : index
    %16 = vector.load %arg7[%c0_7, %c0_8, %c0_9] : memref<16x16x36xf32, #tpu.memory_space<vmem>>, vector<16x1x4xf32>
    tpu.vector_store %arg7[%c0_7, %c0_8, %c0_9], %15 {strides = array<i32>} : memref<16x16x36xf32, #tpu.memory_space<vmem>>, vector<16x1x4xf32>,
    %17 = vector.extract_strided_slice %14 {offsets = [0, 0, 0], sizes = [16, 15, 4], strides = [1, 1, 1]} : vector<16x16x4xf32> to vector<16x15x4xf32>
    %c0_10 = arith.constant 0 : index
    %c1 = arith.constant 1 : index
    %c0_11 = arith.constant 0 : index
    %18 = vector.load %arg7[%c0_10, %c1, %c0_11] : memref<16x16x36xf32, #tpu.memory_space<vmem>>, vector<16x15x4xf32>
    tpu.vector_store %arg7[%c0_10, %c1, %c0_11], %17 {strides = array<i32>} : memref<16x16x36xf32, #tpu.memory_space<vmem>>, vector<16x15x4xf32>,
    %c0_12 = arith.constant 0 : index
    %c0_13 = arith.constant 0 : index
    %c4 = arith.constant 4 : index
    %19 = vector.load %arg7[%c0_12, %c0_13, %c4] : memref<16x16x36xf32, #tpu.memory_space<vmem>>, vector<16x16x4xf32>
    tpu.vector_store %arg7[%c0_12, %c0_13, %c4], %14 {strides = array<i32>} : memref<16x16x36xf32, #tpu.memory_space<vmem>>, vector<16x16x4xf32>,
    %20 = vector.extract_strided_slice %14 {offsets = [0, 1, 0], sizes = [16, 15, 4], strides = [1, 1, 1]} : vector<16x16x4xf32> to vector<16x15x4xf32>
    %c0_14 = arith.constant 0 : index
    %c0_15 = arith.constant 0 : index
    %c8 = arith.constant 8 : index
    %21 = vector.load %arg7[%c0_14, %c0_15, %c8] : memref<16x16x36xf32, #tpu.memory_space<vmem>>, vector<16x15x4xf32>
    tpu.vector_store %arg7[%c0_14, %c0_15, %c8], %20 {strides = array<i32>} : memref<16x16x36xf32, #tpu.memory_space<vmem>>, vector<16x15x4xf32>,
    %22 = vector.extract_strided_slice %14 {offsets = [0, 0, 0], sizes = [16, 1, 4], strides = [1, 1, 1]} : vector<16x16x4xf32> to vector<16x1x4xf32>
    %c0_16 = arith.constant 0 : index
    %c15 = arith.constant 15 : index
    %c8_17 = arith.constant 8 : index
    %23 = vector.load %arg7[%c0_16, %c15, %c8_17] : memref<16x16x36xf32, #tpu.memory_space<vmem>>, vector<16x1x4xf32>
    tpu.vector_store %arg7[%c0_16, %c15, %c8_17], %22 {strides = array<i32>} : memref<16x16x36xf32, #tpu.memory_space<vmem>>, vector<16x1x4xf32>,
    %24 = vector.extract_strided_slice %11 {offsets = [0, 15, 0], sizes = [16, 1, 4], strides = [1, 1, 1]} : vector<16x16x4xf32> to vector<16x1x4xf32>
    %c0_18 = arith.constant 0 : index
    %c0_19 = arith.constant 0 : index
    %c12 = arith.constant 12 : index
    %25 = vector.load %arg7[%c0_18, %c0_19, %c12] : memref<16x16x36xf32, #tpu.memory_space<vmem>>, vector<16x1x4xf32>
    tpu.vector_store %arg7[%c0_18, %c0_19, %c12], %24 {strides = array<i32>} : memref<16x16x36xf32, #tpu.memory_space<vmem>>, vector<16x1x4xf32>,
    %26 = vector.extract_strided_slice %11 {offsets = [0, 0, 0], sizes = [16, 15, 4], strides = [1, 1, 1]} : vector<16x16x4xf32> to vector<16x15x4xf32>
    %c0_20 = arith.constant 0 : index
    %c1_21 = arith.constant 1 : index
    %c12_22 = arith.constant 12 : index
    %27 = vector.load %arg7[%c0_20, %c1_21, %c12_22] : memref<16x16x36xf32, #tpu.memory_space<vmem>>, vector<16x15x4xf32>
    tpu.vector_store %arg7[%c0_20, %c1_21, %c12_22], %26 {strides = array<i32>} : memref<16x16x36xf32, #tpu.memory_space<vmem>>, vector<16x15x4xf32>,
    %c0_23 = arith.constant 0 : index
    %c0_24 = arith.constant 0 : index
    %c16 = arith.constant 16 : index
    %28 = vector.load %arg7[%c0_23, %c0_24, %c16] : memref<16x16x36xf32, #tpu.memory_space<vmem>>, vector<16x16x4xf32>
    tpu.vector_store %arg7[%c0_23, %c0_24, %c16], %11 {strides = array<i32>} : memref<16x16x36xf32, #tpu.memory_space<vmem>>, vector<16x16x4xf32>,
    %29 = vector.extract_strided_slice %11 {offsets = [0, 1, 0], sizes = [16, 15, 4], strides = [1, 1, 1]} : vector<16x16x4xf32> to vector<16x15x4xf32>
    %c0_25 = arith.constant 0 : index
    %c0_26 = arith.constant 0 : index
    %c20 = arith.constant 20 : index
    %30 = vector.load %arg7[%c0_25, %c0_26, %c20] : memref<16x16x36xf32, #tpu.memory_space<vmem>>, vector<16x15x4xf32>
    tpu.vector_store %arg7[%c0_25, %c0_26, %c20], %29 {strides = array<i32>} : memref<16x16x36xf32, #tpu.memory_space<vmem>>, vector<16x15x4xf32>,
    %31 = vector.extract_strided_slice %11 {offsets = [0, 0, 0], sizes = [16, 1, 4], strides = [1, 1, 1]} : vector<16x16x4xf32> to vector<16x1x4xf32>
    %c0_27 = arith.constant 0 : index
    %c15_28 = arith.constant 15 : index
    %c20_29 = arith.constant 20 : index
    %32 = vector.load %arg7[%c0_27, %c15_28, %c20_29] : memref<16x16x36xf32, #tpu.memory_space<vmem>>, vector<16x1x4xf32>
    tpu.vector_store %arg7[%c0_27, %c15_28, %c20_29], %31 {strides = array<i32>} : memref<16x16x36xf32, #tpu.memory_space<vmem>>, vector<16x1x4xf32>,
    %33 = vector.extract_strided_slice %11 {offsets = [1, 0, 0], sizes = [15, 16, 4], strides = [1, 1, 1]} : vector<16x16x4xf32> to vector<15x16x4xf32>
    %34 = vector.extract_strided_slice %11 {offsets = [0, 0, 0], sizes = [1, 16, 4], strides = [1, 1, 1]} : vector<16x16x4xf32> to vector<1x16x4xf32>
    %35 = tpu.concatenate %33, %34 in 0 : vector<15x16x4xf32>, vector<1x16x4xf32> -> vector<16x16x4xf32>
    %36 = vector.extract_strided_slice %35 {offsets = [0, 15, 0], sizes = [16, 1, 4], strides = [1, 1, 1]} : vector<16x16x4xf32> to vector<16x1x4xf32>
    %c0_30 = arith.constant 0 : index
    %c0_31 = arith.constant 0 : index
    %c24 = arith.constant 24 : index
    %37 = vector.load %arg7[%c0_30, %c0_31, %c24] : memref<16x16x36xf32, #tpu.memory_space<vmem>>, vector<16x1x4xf32>
    tpu.vector_store %arg7[%c0_30, %c0_31, %c24], %36 {strides = array<i32>} : memref<16x16x36xf32, #tpu.memory_space<vmem>>, vector<16x1x4xf32>,
    %38 = vector.extract_strided_slice %35 {offsets = [0, 0, 0], sizes = [16, 15, 4], strides = [1, 1, 1]} : vector<16x16x4xf32> to vector<16x15x4xf32>
    %c0_32 = arith.constant 0 : index
    %c1_33 = arith.constant 1 : index
    %c24_34 = arith.constant 24 : index
    %39 = vector.load %arg7[%c0_32, %c1_33, %c24_34] : memref<16x16x36xf32, #tpu.memory_space<vmem>>, vector<16x15x4xf32>
    tpu.vector_store %arg7[%c0_32, %c1_33, %c24_34], %38 {strides = array<i32>} : memref<16x16x36xf32, #tpu.memory_space<vmem>>, vector<16x15x4xf32>,
    %c0_35 = arith.constant 0 : index
    %c0_36 = arith.constant 0 : index
    %c28 = arith.constant 28 : index
    %40 = vector.load %arg7[%c0_35, %c0_36, %c28] : memref<16x16x36xf32, #tpu.memory_space<vmem>>, vector<16x16x4xf32>
    tpu.vector_store %arg7[%c0_35, %c0_36, %c28], %35 {strides = array<i32>} : memref<16x16x36xf32, #tpu.memory_space<vmem>>, vector<16x16x4xf32>,
    %41 = vector.extract_strided_slice %35 {offsets = [0, 1, 0], sizes = [16, 15, 4], strides = [1, 1, 1]} : vector<16x16x4xf32> to vector<16x15x4xf32>
    %c0_37 = arith.constant 0 : index
    %c0_38 = arith.constant 0 : index
    %c32 = arith.constant 32 : index
    %42 = vector.load %arg7[%c0_37, %c0_38, %c32] : memref<16x16x36xf32, #tpu.memory_space<vmem>>, vector<16x15x4xf32>
    tpu.vector_store %arg7[%c0_37, %c0_38, %c32], %41 {strides = array<i32>} : memref<16x16x36xf32, #tpu.memory_space<vmem>>, vector<16x15x4xf32>,
    %43 = vector.extract_strided_slice %35 {offsets = [0, 0, 0], sizes = [16, 1, 4], strides = [1, 1, 1]} : vector<16x16x4xf32> to vector<16x1x4xf32>
    %c0_39 = arith.constant 0 : index
    %c15_40 = arith.constant 15 : index
    %c32_41 = arith.constant 32 : index
    %44 = vector.load %arg7[%c0_39, %c15_40, %c32_41] : memref<16x16x36xf32, #tpu.memory_space<vmem>>, vector<16x1x4xf32>
    tpu.vector_store %arg7[%c0_39, %c15_40, %c32_41], %43 {strides = array<i32>} : memref<16x16x36xf32, #tpu.memory_space<vmem>>, vector<16x1x4xf32>,
    %c0_42 = arith.constant 0 : index
    %c0_43 = arith.constant 0 : index
    %c0_44 = arith.constant 0 : index
    %45 = vector.load %arg7[%c0_42, %c0_43, %c0_44] : memref<16x16x36xf32, #tpu.memory_space<vmem>>, vector<16x16x36xf32>
    %46 = vector.shape_cast %45 : vector<16x16x36xf32> to vector<256x36xf32>
    %c0_45 = arith.constant 0 : index
    %c0_46 = arith.constant 0 : index
    %47 = vector.load %arg4[%c0_45, %c0_46] : memref<36x4xf32, #tpu.memory_space<vmem>>, vector<36x4xf32>
    %cst_47 = arith.constant dense<0.000000e+00> : vector<256x4xf32>
    %48 = tpu.matmul %46, %47, %cst_47 {dimension_numbers = #tpu.dot_dimension_numbers<[1], [0], [0], [1], [0, 0, 1, 1], [], []>} : vector<256x36xf32>, vector<36x4xf32>, vector<256x4xf32> -> vector<256x4xf32>
    %49 = vector.shape_cast %48 : vector<256x4xf32> to vector<16x16x4xf32>
    %c0_48 = arith.constant 0 : index
    %c0_49 = arith.constant 0 : index
    %c0_50 = arith.constant 0 : index
    %c0_51 = arith.constant 0 : index
    %50 = vector.load %arg5[%c0_48, %c0_49, %c0_50, %c0_51] : memref<1x16x16x4xf32, #tpu.memory_space<vmem>>, vector<1x16x16x4xf32>
    %51 = vector.shape_cast %50 : vector<1x16x16x4xf32> to vector<16x16x4xf32>
    %52 = vector.shape_cast %49 : vector<16x16x4xf32> to vector<1x16x16x4xf32>
    tpu.vector_store %arg5[%c0_48, %c0_49, %c0_50, %c0_51], %52 {strides = array<i32>} : memref<1x16x16x4xf32, #tpu.memory_space<vmem>>, vector<1x16x16x4xf32>,
    %cst_52 = arith.constant dense<0.000000e+00> : vector<4xf32>
    %53 = vector.multi_reduction <add>, %48, %cst_52 [0] : vector<256x4xf32> to vector<4xf32>
    %54 = vector.shape_cast %53 : vector<4xf32> to vector<1x4xf32>
    %c0_53 = arith.constant 0 : index
    %c0_54 = arith.constant 0 : index
    %c0_55 = arith.constant 0 : index
    %55 = vector.load %arg6[%c0_53, %c0_54, %c0_55] : memref<1x2x4xf32, #tpu.memory_space<vmem>>, vector<1x1x4xf32>
    %56 = vector.shape_cast %55 : vector<1x1x4xf32> to vector<1x4xf32>
    %57 = vector.shape_cast %54 : vector<1x4xf32> to vector<1x1x4xf32>
    tpu.vector_store %arg6[%c0_53, %c0_54, %c0_55], %57 {strides = array<i32>} : memref<1x2x4xf32, #tpu.memory_space<vmem>>, vector<1x1x4xf32>,
    %58 = arith.mulf %48, %48 : vector<256x4xf32>
    %cst_56 = arith.constant dense<0.000000e+00> : vector<4xf32>
    %59 = vector.multi_reduction <add>, %58, %cst_56 [0] : vector<256x4xf32> to vector<4xf32>
    %60 = vector.shape_cast %59 : vector<4xf32> to vector<1x4xf32>
    %c0_57 = arith.constant 0 : index
    %c1_58 = arith.constant 1 : index
    %c0_59 = arith.constant 0 : index
    %61 = vector.load %arg6[%c0_57, %c1_58, %c0_59] : memref<1x2x4xf32, #tpu.memory_space<vmem>>, vector<1x1x4xf32>
    %62 = vector.shape_cast %61 : vector<1x1x4xf32> to vector<1x4xf32>
    %63 = vector.shape_cast %60 : vector<1x4xf32> to vector<1x1x4xf32>
    tpu.vector_store %arg6[%c0_57, %c1_58, %c0_59], %63 {strides = array<i32>} : memref<1x2x4xf32, #tpu.memory_space<vmem>>, vector<1x1x4xf32>,
    return
  }
  func.func @transform_0(%arg0: i32) -> (i32, i32, i32, i32) {
    %c0_i32 = arith.constant 0 : i32
    %c0_i32_0 = arith.constant 0 : i32
    %c0_i32_1 = arith.constant 0 : i32
    %c0_i32_2 = arith.constant 0 : i32
    return %arg0, %c0_i32, %c0_i32_0, %c0_i32_1 : i32, i32, i32, i32
  }
  func.func @transform_1(%arg0: i32) -> (i32, i32) {
    %c0_i32 = arith.constant 0 : i32
    %c0_i32_0 = arith.constant 0 : i32
    %c0_i32_1 = arith.constant 0 : i32
    return %c0_i32, %c0_i32_0 : i32, i32
  }
  func.func @transform_2(%arg0: i32) -> (i32, i32) {
    %c0_i32 = arith.constant 0 : i32
    %c0_i32_0 = arith.constant 0 : i32
    %c0_i32_1 = arith.constant 0 : i32
    return %c0_i32, %c0_i32_0 : i32, i32
  }
  func.func @transform_3(%arg0: i32) -> (i32, i32) {
    %c0_i32 = arith.constant 0 : i32
    %c0_i32_0 = arith.constant 0 : i32
    %c0_i32_1 = arith.constant 0 : i32
    return %c0_i32, %c0_i32_0 : i32, i32
  }
  func.func @transform_4(%arg0: i32) -> (i32, i32, i32, i32) {
    %c0_i32 = arith.constant 0 : i32
    %c0_i32_0 = arith.constant 0 : i32
    %c0_i32_1 = arith.constant 0 : i32
    %c0_i32_2 = arith.constant 0 : i32
    return %arg0, %c0_i32, %c0_i32_0, %c0_i32_1 : i32, i32, i32, i32
  }
  func.func @transform_5(%arg0: i32) -> (i32, i32, i32) {
    %c0_i32 = arith.constant 0 : i32
    %c0_i32_0 = arith.constant 0 : i32
    %c0_i32_1 = arith.constant 0 : i32
    return %arg0, %c0_i32, %c0_i32_0 : i32, i32, i32
  }
}

module attributes {stable_mosaic.version = 11 : i64} {
  func.func @_bn_res_relu_kernel(%arg0: i32, %arg1: memref<32x64xf32, #tpu.memory_space<vmem>>, %arg2: memref<32x64xf32, #tpu.memory_space<vmem>>, %arg3: memref<1x64xf32, #tpu.memory_space<vmem>>, %arg4: memref<1x64xf32, #tpu.memory_space<vmem>>, %arg5: memref<32x64xf32, #tpu.memory_space<vmem>>) attributes {dimension_semantics = [#tpu.dimension_semantics<parallel>], iteration_bounds = array<i64: 1>, scalar_prefetch = 0 : i64, scratch_operands = 0 : i64, tpu.core_type = #tpu.core_type<tc>, window_params = [{transform_indices = @transform_0, window_bounds = array<i64: 32, 64>}, {transform_indices = @transform_1, window_bounds = array<i64: 32, 64>}, {pipeline_mode = #tpu.pipeline_mode<synchronous>, transform_indices = @transform_2, window_bounds = array<i64: 1, 64>}, {pipeline_mode = #tpu.pipeline_mode<synchronous>, transform_indices = @transform_3, window_bounds = array<i64: 1, 64>}, {transform_indices = @transform_4, window_bounds = array<i64: 32, 64>}]} {
    %c0 = arith.constant 0 : index
    %c0_0 = arith.constant 0 : index
    %0 = vector.load %arg2[%c0, %c0_0] : memref<32x64xf32, #tpu.memory_space<vmem>>, vector<32x64xf32>
    %c0_1 = arith.constant 0 : index
    %c0_2 = arith.constant 0 : index
    %1 = vector.load %arg1[%c0_1, %c0_2] : memref<32x64xf32, #tpu.memory_space<vmem>>, vector<32x64xf32>
    %c0_3 = arith.constant 0 : index
    %c0_4 = arith.constant 0 : index
    %2 = vector.load %arg3[%c0_3, %c0_4] : memref<1x64xf32, #tpu.memory_space<vmem>>, vector<1x64xf32>
    %3 = vector.broadcast %2 : vector<1x64xf32> to vector<32x64xf32>
    %4 = arith.mulf %1, %3 : vector<32x64xf32>
    %5 = arith.addf %0, %4 : vector<32x64xf32>
    %c0_5 = arith.constant 0 : index
    %c0_6 = arith.constant 0 : index
    %6 = vector.load %arg4[%c0_5, %c0_6] : memref<1x64xf32, #tpu.memory_space<vmem>>, vector<1x64xf32>
    %7 = vector.broadcast %6 : vector<1x64xf32> to vector<32x64xf32>
    %8 = arith.addf %5, %7 : vector<32x64xf32>
    %cst = arith.constant 0.000000e+00 : f32
    %9 = vector.broadcast %cst : f32 to vector<32x64xf32>
    %10 = arith.maximumf %8, %9 : vector<32x64xf32>
    %c0_7 = arith.constant 0 : index
    %c0_8 = arith.constant 0 : index
    %11 = vector.load %arg5[%c0_7, %c0_8] : memref<32x64xf32, #tpu.memory_space<vmem>>, vector<32x64xf32>
    tpu.vector_store %arg5[%c0_7, %c0_8], %10 {strides = array<i32>} : memref<32x64xf32, #tpu.memory_space<vmem>>, vector<32x64xf32>,
    return
  }
  func.func @transform_0(%arg0: i32) -> (i32, i32) {
    %c0_i32 = arith.constant 0 : i32
    %c0_i32_0 = arith.constant 0 : i32
    return %arg0, %c0_i32 : i32, i32
  }
  func.func @transform_1(%arg0: i32) -> (i32, i32) {
    %c0_i32 = arith.constant 0 : i32
    %c0_i32_0 = arith.constant 0 : i32
    return %arg0, %c0_i32 : i32, i32
  }
  func.func @transform_2(%arg0: i32) -> (i32, i32) {
    %c0_i32 = arith.constant 0 : i32
    %c0_i32_0 = arith.constant 0 : i32
    %c0_i32_1 = arith.constant 0 : i32
    return %c0_i32, %c0_i32_0 : i32, i32
  }
  func.func @transform_3(%arg0: i32) -> (i32, i32) {
    %c0_i32 = arith.constant 0 : i32
    %c0_i32_0 = arith.constant 0 : i32
    %c0_i32_1 = arith.constant 0 : i32
    return %c0_i32, %c0_i32_0 : i32, i32
  }
  func.func @transform_4(%arg0: i32) -> (i32, i32) {
    %c0_i32 = arith.constant 0 : i32
    %c0_i32_0 = arith.constant 0 : i32
    return %arg0, %c0_i32 : i32, i32
  }
}

</mosaic_0001>

<bundles_post_ra>
// kernel: resblock_forward.5
= control target key start
LH: loop header
LB: loop body
LE: loop exit
PB: predicated region body
PF: predicated region fallthrough
CT: control target
= control target key end

     0   :  { %vm55_vm0 = vcmask 523264   ;;  %s133_s0 = inlined_call_operand.vmem [shape: f32[32,64], index: 0, kind: input, shape index: {}]   ;;  %s134_s1 = inlined_call_operand.vmem [shape: f32[32,64], index: 1, kind: input, shape index: {}]   ;;  %s135_s2 = inlined_call_operand.vmem [shape: f32[1,64], index: 2, kind: input, shape index: {}]   ;;  %s136_s3 = inlined_call_operand.vmem [shape: f32[1,64], index: 3, kind: input, shape index: {}]   ;;  %s137_s4 = inlined_call_operand.vmem [shape: f32[32,64], index: 4, kind: output, shape index: {}]  }
   0x1   :  { %v17_v0 = vld [vmem:[%s134_s1] sm:$0xff]  ;;  %v18_v4 = vld [vmem:[%s134_s1 + $0x8] sm:$0xff]  ;;  %v19_v8 = vld [vmem:[%s134_s1 + $0x10] sm:$0xff] }
   0x2   :  { %v21_v1 = vld [vmem:[%s133_s0] sm:$0xff]  ;;  %v22_v5 = vld [vmem:[%s133_s0 + $0x8] sm:$0xff]  ;;  %v23_v9 = vld [vmem:[%s133_s0 + $0x10] sm:$0xff] }
   0x3   :  { %v64_v2 = vld [vmem:[%s135_s2] ss:$0 sm:$0xff]  ;;  %v20_v12 = vld [vmem:[%s134_s1 + $0x18] sm:$0xff] }
   0x4   :  { %v32_v3 = vmul.f32 %v64_v2, %v21_v1  ;;  %v65_v6 = vld [vmem:[%s136_s3] ss:$0 sm:$0xff]  ;;  %v33_v7 = vmul.f32 %v64_v2, %v22_v5  ;;  %v34_v11 = vmul.f32 %v64_v2, %v23_v9  ;;  %v24_v13 = vld [vmem:[%s133_s0 + $0x18] sm:$0xff] }
   0x5   :  { %v35_v15 = vmul.f32 %v64_v2, %v24_v13 }
   0x6   :  { %v36_v10 = vadd.f32 %v32_v3, %v17_v0  ;;  %v37_v14 = vadd.f32 %v33_v7, %v18_v4  ;;  %v38_v17 = vadd.f32 %v34_v11, %v19_v8 }
   0x7   :  { %v39_v19 = vadd.f32 %v35_v15, %v20_v12 }
   0x8   :  { %v47_v16 = vadd.f32 %v65_v6, %v36_v10  ;;  %v48_v18 = vadd.f32 %v65_v6, %v37_v14  ;;  %v49_v21 = vadd.f32 %v65_v6, %v38_v17 }
   0x9   :  { %v50_v23 = vadd.f32 %v65_v6, %v39_v19 }
   0xa   :  { %v51_v20 = vmax.f32 %v47_v16, 0.0  ;;  %v52_v22 = vmax.f32 %v48_v18, 0.0  ;;  %v53_v24 = vmax.f32 %v49_v21, 0.0 }
   0xb   :  { %v54_v25 = vmax.f32 %v50_v23, 0.0 }
   0xc   :  { %56 = vst.msk [vmem:[%s137_s4] sm:$0xff] %vm55_vm0, %v51_v20  ;;  %57 = vst.msk [vmem:[%s137_s4 + $0x8] sm:$0xff] %vm55_vm0, %v52_v22 }
   0xd   :  { %58 = vst.msk [vmem:[%s137_s4 + $0x10] sm:$0xff] %vm55_vm0, %v53_v24  ;;  %59 = vst.msk [vmem:[%s137_s4 + $0x18] sm:$0xff] %vm55_vm0, %v54_v25 }

// kernel: resblock_forward.3
= control target key start
LH: loop header
LB: loop body
LE: loop exit
PB: predicated region body
PF: predicated region fallthrough
CT: control target
= control target key end

     0   :  { %s2281_s12 = smov 0   ;;  %s3528_s0 = inlined_call_operand.vmem [shape: f32[2,16,16,4], index: 0, kind: input, shape index: {}]   ;;  %s3529_s1 = inlined_call_operand.vmem [shape: f32[36,4], index: 1, kind: input, shape index: {}]   ;;  %s3530_s2 = inlined_call_operand.vmem [shape: f32[2,16,16,4], index: 2, kind: output, shape index: {0}]   ;;  %s3531_s3 = inlined_call_operand.vmem [shape: f32[2,2,4], index: 3, kind: output, shape index: {1}]  }
   0x1 LB: > { %s2073_s13 = sadd.s32 4294967295, %s2251_s12   ;;  %p2077_p0 = scmp.ge.s32.totalorder %s2251_s12, 1  ;;  %s2251_s12 = sphi %s2281_s12, %s14_s12  }
   0x2   : > { %p140_p1 = scmp.lt.s32.totalorder %s2251_s12, 3 }
   0x4   : > { %p141_p2 = pnand %p2077_p0, %p140_p1 }
   0x5   : > { %p168_p3 = scmp.lt.s32.totalorder (!%p141_p2), %s2073_s13, 1  ;;  %vm214_vm0 = vcmask (!%p141_p2), 31751   ;;  %vm231_vm1 = vcmask (!%p141_p2), 31744   ;;  %vm233_vm2 = vcmask (!%p141_p2), 30720   ;;  %s2253_s18 = smov (!%p141_p2), 4   ;;  %vm393_vm3 = vcmask (!%p141_p2), 64544  }
   0x6   : > { %144 = sbr.rel (%p141_p2) target bundleno = 884 (0x374), region = 28  ;;  %s2254_s19 = smov (!%p141_p2), 8   ;;  %v1451_v54 = vld [vmem:[%s3529_s1] sm:$0xff] (!%p141_p2)  ;;  %v1452_v55 = vld [vmem:[%s3529_s1 + $0x8] sm:$0xff] (!%p141_p2)  ;;  %v1453_v59 = vld [vmem:[%s3529_s1 + $0x10] sm:$0xff] (!%p141_p2)  ;;  %vm1553_vm4 = vcmask (!%p141_p2), 1043456  }
   0x7   : > { %s2255_s20 = smov (!%p141_p2), 12   ;;  %s2256_s21 = smov (!%p141_p2), 16   ;;  %v2215_v56 = vpack.c.bf16 (!%p141_p2), %v1452_v55, %v1451_v54  ;;  %v1454_v60 = vld [vmem:[%s3529_s1 + $0x18] sm:$0xff] (!%p141_p2)  ;;  %vm522_vm5 = vcmask (!%p141_p2), 97345   ;;  %vm556_vm6 = vcmask (!%p141_p2), 90176   ;;  %vm524_vm7 = vcmask (!%p141_p2), 97344  }
   0x8   : > { %s2257_s22 = smov (!%p141_p2), 20   ;;  %s2258_s27 = smov (!%p141_p2), 24   ;;  %v2219_v61 = vpack.c.bf16 (!%p141_p2), %v1454_v60, %v1453_v59  ;;  %vm621_vm8 = vcmask (!%p141_p2), 130151   ;;  %vm688_vm9 = vcmask (!%p141_p2), 129120   ;;  %vm686_vm10 = vcmask (!%p141_p2), 130144  }
   0x9   : > { %2216 = vmatprep.subr.bf16.mxu0 (!%p141_p2), %v2215_v56  ;;  %2223 = vmatprep.subr.bf16.mxu1 (!%p141_p2), %v2215_v56  ;;  %s2259_s5 = smov (!%p141_p2), 28   ;;  %s2260_s8 = smov (!%p141_p2), 32   ;;  %vm816_vm11 = vcmask (!%p141_p2), 162944   ;;  %vm945_vm12 = vcmask (!%p141_p2), 195745   ;;  %vm979_vm13 = vcmask (!%p141_p2), 188576   ;;  %vm947_vm14 = vcmask (!%p141_p2), 195744  }
   0xa   : > { %2218 = vmatpush3.bf16.msra.mxu0 (!%p141_p2), %v2215_v56  ;;  %2226 = vmatpush3.bf16.msra.mxu1 (!%p141_p2), %v2215_v56  ;;  %vm1044_vm15 = vcmask (!%p141_p2), 228551  }
   0xb   : > { %2220 = vmatprep.subr.bf16.mxu0 (!%p141_p2), %v2219_v61  ;;  %2224 = vmatprep.subr.bf16.mxu1 (!%p141_p2), %v2219_v61 }
   0xd   : > { %s3533_s13 = smov (!%p168_p3, %s2073_s13), 1 }
   0xe   : > { %s2118_s14 = sshll.u32 %s3533_s13, 8  ;;  %2222 = vmatpush3.bf16.msra.mxu0 %v2219_v61  ;;  %2227 = vmatpush3.bf16.msra.mxu1 %v2219_v61 }
   0xf   : > { %s2297_s17 = scalar_lea.vmem %s3528_s0, %s2118_s14  ;;  %s3295_s11 = scalar_lea.vmem %s3530_s2, %s2118_s14 }
  0x10   : > { %v2300_v0 = vld [vmem:[%s2297_s17 + $0xf0] sm:$0xff]  ;;  %v2303_v1 = vld [vmem:[%s2297_s17] sm:$0xff]  ;;  %v2306_v2 = vld [vmem:[%s2297_s17 + $0xf8] sm:$0xff]  ;;  %s2082_s14 = sshll.u32 %s3533_s13, 1 }
  0x11   : > { %297 = vrot.lane.b32.xlu0 %v2300_v0, %s2253_s18  ;;  %301 = vrot.lane.b32.xlu1 %v2303_v1, %s2253_s18  ;;  %v2313_v3 = vld [vmem:[%s2297_s17 + $0x8] sm:$0xff]  ;;  %v2316_v4 = vld [vmem:[%s2297_s17 + $0x10] sm:$0xff]  ;;  %215 = vst.msk [vmem:[#allocation2 - $0x7] sm:$0x80] %vm214_vm0, %v2306_v2 }
  0x12   : > { %232 = vst.msk [vmem:[#allocation2 + $0x1] sm:$0xff] %vm231_vm1, %v2300_v0  ;;  %235 = vst.msk [vmem:[#allocation2 + $0x11] sm:$0xff] %vm231_vm1, %v2303_v1  ;;  %v2327_v5 = vld [vmem:[%s2297_s17 + $0x18] sm:$0xff]  ;;  %v2330_v6 = vld [vmem:[%s2297_s17 + $0x20] sm:$0xff] }
  0x13   : > { %234 = vst.msk [vmem:[#allocation2 + $0x9] sm:$0x7f] %vm233_vm2, %v2306_v2  ;;  %v2333_v7 = vld [vmem:[%s2297_s17 + $0x28] sm:$0xff]  ;;  %236 = vst.msk [vmem:[#allocation2 + $0x19] sm:$0x7f] %vm233_vm2, %v2313_v3  ;;  %v2342_v8 = vld [vmem:[%s2297_s17 + $0x30] sm:$0xff] }
  0x14   : > { %216 = vst.msk [vmem:[#allocation2 + $0x9] sm:$0x80] %vm214_vm0, %v2313_v3  ;;  %v2345_v9 = vld [vmem:[%s2297_s17 + $0x38] sm:$0xff]  ;;  %v2348_v10 = vld [vmem:[%s2297_s17 + $0x40] sm:$0xff]  ;;  %217 = vst.msk [vmem:[#allocation2 + $0x19] sm:$0x80] %vm214_vm0, %v2327_v5 }
  0x15   : > { %237 = vst.msk [vmem:[#allocation2 + $0x21] sm:$0xff] %vm231_vm1, %v2316_v4  ;;  %239 = vst.msk [vmem:[#allocation2 + $0x31] sm:$0xff] %vm231_vm1, %v2330_v6  ;;  %v2361_v11 = vld [vmem:[%s2297_s17 + $0x48] sm:$0xff]  ;;  %v2364_v12 = vld [vmem:[%s2297_s17 + $0x50] sm:$0xff]  ;;  %299 = vrot.lane.b32.xlu0 %v2306_v2, %s2253_s18  ;;  %303 = vrot.lane.b32.xlu1 %v2313_v3, %s2253_s18 }
  0x16   : > { %218 = vst.msk [vmem:[#allocation2 + $0x29] sm:$0x80] %vm214_vm0, %v2333_v7  ;;  %v2367_v13 = vld [vmem:[%s2297_s17 + $0x58] sm:$0xff]  ;;  %219 = vst.msk [vmem:[#allocation2 + $0x39] sm:$0x80] %vm214_vm0, %v2345_v9  ;;  %v2382_v14 = vld [vmem:[%s2297_s17 + $0x60] sm:$0xff] }
  0x17   : > { %238 = vst.msk [vmem:[#allocation2 + $0x29] sm:$0x7f] %vm233_vm2, %v2327_v5  ;;  %240 = vst.msk [vmem:[#allocation2 + $0x39] sm:$0x7f] %vm233_vm2, %v2333_v7  ;;  %v2385_v15 = vld [vmem:[%s2297_s17 + $0x68] sm:$0xff]  ;;  %v2398_v16 = vld [vmem:[%s2297_s17 + $0x70] sm:$0xff] }
  0x18   : > { %241 = vst.msk [vmem:[#allocation2 + $0x41] sm:$0xff] %vm231_vm1, %v2342_v8  ;;  %243 = vst.msk [vmem:[#allocation2 + $0x51] sm:$0xff] %vm231_vm1, %v2348_v10  ;;  %v2401_v17 = vld [vmem:[%s2297_s17 + $0x78] sm:$0xff]  ;;  %v2404_v18 = vld [vmem:[%s2297_s17 + $0x80] sm:$0xff] }
  0x19   : > { %242 = vst.msk [vmem:[#allocation2 + $0x49] sm:$0x7f] %vm233_vm2, %v2345_v9  ;;  %244 = vst.msk [vmem:[#allocation2 + $0x59] sm:$0x7f] %vm233_vm2, %v2361_v11  ;;  %v2413_v19 = vld [vmem:[%s2297_s17 + $0x88] sm:$0xff]  ;;  %v2416_v20 = vld [vmem:[%s2297_s17 + $0x90] sm:$0xff]  ;;  %305 = vrot.lane.b32.xlu0 %v2316_v4, %s2253_s18  ;;  %307 = vrot.lane.b32.xlu1 %v2327_v5, %s2253_s18 }
  0x1a   : > { %220 = vst.msk [vmem:[#allocation2 + $0x49] sm:$0x80] %vm214_vm0, %v2361_v11  ;;  %221 = vst.msk [vmem:[#allocation2 + $0x59] sm:$0x80] %vm214_vm0, %v2367_v13  ;;  %v2419_v21 = vld [vmem:[%s2297_s17 + $0x98] sm:$0xff]  ;;  %v2430_v22 = vld [vmem:[%s2297_s17 + $0xa0] sm:$0xff] }
  0x1b   : > { %245 = vst.msk [vmem:[#allocation2 + $0x61] sm:$0xff] %vm231_vm1, %v2364_v12  ;;  %247 = vst.msk [vmem:[#allocation2 + $0x71] sm:$0xff] %vm231_vm1, %v2382_v14  ;;  %v2433_v23 = vld [vmem:[%s2297_s17 + $0xa8] sm:$0xff]  ;;  %v2436_v24 = vld [vmem:[%s2297_s17 + $0xb0] sm:$0xff] }
  0x1c   : > { %246 = vst.msk [vmem:[#allocation2 + $0x69] sm:$0x7f] %vm233_vm2, %v2367_v13  ;;  %248 = vst.msk [vmem:[#allocation2 + $0x79] sm:$0x7f] %vm233_vm2, %v2385_v15  ;;  %v2453_v25 = vld [vmem:[%s2297_s17 + $0xb8] sm:$0xff]  ;;  %v2456_v26 = vld [vmem:[%s2297_s17 + $0xc0] sm:$0xff] }
  0x1d   : > { %222 = vst.msk [vmem:[#allocation2 + $0x69] sm:$0x80] %vm214_vm0, %v2385_v15  ;;  %223 = vst.msk [vmem:[#allocation2 + $0x79] sm:$0x80] %vm214_vm0, %v2401_v17  ;;  %v2467_v27 = vld [vmem:[%s2297_s17 + $0xc8] sm:$0xff]  ;;  %v2470_v28 = vld [vmem:[%s2297_s17 + $0xd0] sm:$0xff]  ;;  %309 = vrot.lane.b32.xlu0 %v2330_v6, %s2253_s18  ;;  %311 = vrot.lane.b32.xlu1 %v2333_v7, %s2253_s18 }
  0x1e   : > { %249 = vst.msk [vmem:[#allocation2 + $0x81] sm:$0xff] %vm231_vm1, %v2398_v16  ;;  %251 = vst.msk [vmem:[#allocation2 + $0x91] sm:$0xff] %vm231_vm1, %v2404_v18  ;;  %v2473_v29 = vld [vmem:[%s2297_s17 + $0xd8] sm:$0xff]  ;;  %v2482_v30 = vld [vmem:[%s2297_s17 + $0xe0] sm:$0xff] }
  0x1f   : > { %250 = vst.msk [vmem:[#allocation2 + $0x89] sm:$0x7f] %vm233_vm2, %v2401_v17  ;;  %252 = vst.msk [vmem:[#allocation2 + $0x99] sm:$0x7f] %vm233_vm2, %v2413_v19  ;;  %v2485_v31 = vld [vmem:[%s2297_s17 + $0xe8] sm:$0xff]  ;;  %s181_s17 = scalar_lea.vmem %s3531_s3, %s2082_s14 }
  0x20   : > { %224 = vst.msk [vmem:[#allocation2 + $0x89] sm:$0x80] %vm214_vm0, %v2413_v19  ;;  %225 = vst.msk [vmem:[#allocation2 + $0x99] sm:$0x80] %vm214_vm0, %v2419_v21 }
  0x21   : > { %253 = vst.msk [vmem:[#allocation2 + $0xa1] sm:$0xff] %vm231_vm1, %v2416_v20  ;;  %255 = vst.msk [vmem:[#allocation2 + $0xb1] sm:$0xff] %vm231_vm1, %v2430_v22  ;;  %313 = vrot.lane.b32.xlu0 %v2342_v8, %s2253_s18  ;;  %315 = vrot.lane.b32.xlu1 %v2345_v9, %s2253_s18 }
  0x22   : > { %254 = vst.msk [vmem:[#allocation2 + $0xa9] sm:$0x7f] %vm233_vm2, %v2419_v21  ;;  %256 = vst.msk [vmem:[#allocation2 + $0xb9] sm:$0x7f] %vm233_vm2, %v2433_v23 }
  0x23   : > { %226 = vst.msk [vmem:[#allocation2 + $0xa9] sm:$0x80] %vm214_vm0, %v2433_v23  ;;  %227 = vst.msk [vmem:[#allocation2 + $0xb9] sm:$0x80] %vm214_vm0, %v2453_v25 }
  0x24   : > { %257 = vst.msk [vmem:[#allocation2 + $0xc1] sm:$0xff] %vm231_vm1, %v2436_v24  ;;  %259 = vst.msk [vmem:[#allocation2 + $0xd1] sm:$0xff] %vm231_vm1, %v2456_v26 }
  0x25   : > { %258 = vst.msk [vmem:[#allocation2 + $0xc9] sm:$0x7f] %vm233_vm2, %v2453_v25  ;;  %260 = vst.msk [vmem:[#allocation2 + $0xd9] sm:$0x7f] %vm233_vm2, %v2467_v27  ;;  %317 = vrot.lane.b32.xlu0 %v2348_v10, %s2253_s18  ;;  %319 = vrot.lane.b32.xlu1 %v2361_v11, %s2253_s18 }
  0x26   : > { %228 = vst.msk [vmem:[#allocation2 + $0xc9] sm:$0x80] %vm214_vm0, %v2467_v27  ;;  %229 = vst.msk [vmem:[#allocation2 + $0xd9] sm:$0x80] %vm214_vm0, %v2473_v29 }
  0x27   : > { %261 = vst.msk [vmem:[#allocation2 + $0xe1] sm:$0xff] %vm231_vm1, %v2470_v28  ;;  %263 = vst.msk [vmem:[#allocation2 + $0xf1] sm:$0xff] %vm231_vm1, %v2482_v30 }
  0x28   : > { %262 = vst.msk [vmem:[#allocation2 + $0xe9] sm:$0x7f] %vm233_vm2, %v2473_v29  ;;  %264 = vst.msk [vmem:[#allocation2 + $0xf9] sm:$0x7f] %vm233_vm2, %v2485_v31  ;;  %vm1109_vm2 = vcmask 228544  }
  0x29   : > { %230 = vst.msk [vmem:[#allocation2 + $0xe9] sm:$0x80] %vm214_vm0, %v2485_v31  ;;  %321 = vrot.lane.b32.xlu0 %v2364_v12, %s2253_s18  ;;  %323 = vrot.lane.b32.xlu1 %v2367_v13, %s2253_s18  ;;  %vm1111_vm0 = vcmask 227520  }
  0x2d   : > { %325 = vrot.lane.b32.xlu0 %v2382_v14, %s2253_s18  ;;  %327 = vrot.lane.b32.xlu1 %v2385_v15, %s2253_s18 }
  0x31   : > { %329 = vrot.lane.b32.xlu0 %v2398_v16, %s2253_s18  ;;  %331 = vrot.lane.b32.xlu1 %v2401_v17, %s2253_s18 }
  0x35   : > { %333 = vrot.lane.b32.xlu0 %v2404_v18, %s2253_s18  ;;  %335 = vrot.lane.b32.xlu1 %v2413_v19, %s2253_s18 }
  0x39   : > { %337 = vrot.lane.b32.xlu0 %v2416_v20, %s2253_s18  ;;  %339 = vrot.lane.b32.xlu1 %v2419_v21, %s2253_s18 }
  0x3d   : > { %341 = vrot.lane.b32.xlu0 %v2430_v22, %s2253_s18  ;;  %343 = vrot.lane.b32.xlu1 %v2433_v23, %s2253_s18 }
  0x41   : > { %345 = vrot.lane.b32.xlu0 %v2436_v24, %s2253_s18  ;;  %347 = vrot.lane.b32.xlu1 %v2453_v25, %s2253_s18 }
  0x45   : > { %349 = vrot.lane.b32.xlu0 %v2456_v26, %s2253_s18  ;;  %351 = vrot.lane.b32.xlu1 %v2467_v27, %s2253_s18 }
  0x49   : > { %353 = vrot.lane.b32.xlu0 %v2470_v28, %s2253_s18  ;;  %355 = vrot.lane.b32.xlu1 %v2473_v29, %s2253_s18 }
  0x4d   : > { %357 = vrot.lane.b32.xlu0 %v2482_v30, %s2253_s18  ;;  %359 = vrot.lane.b32.xlu1 %v2485_v31, %s2253_s18 }
  0x51   : > { %426 = vrot.lane.b32.xlu0 %v2300_v0, %s2254_s19  ;;  %428 = vrot.lane.b32.xlu1 %v2306_v2, %s2254_s19 }
  0x55   : > { %430 = vrot.lane.b32.xlu0 %v2303_v1, %s2254_s19  ;;  %432 = vrot.lane.b32.xlu1 %v2313_v3, %s2254_s19 }
  0x59   : > { %434 = vrot.lane.b32.xlu0 %v2316_v4, %s2254_s19  ;;  %436 = vrot.lane.b32.xlu1 %v2327_v5, %s2254_s19 }
  0x5d   : > { %438 = vrot.lane.b32.xlu0 %v2330_v6, %s2254_s19  ;;  %440 = vrot.lane.b32.xlu1 %v2333_v7, %s2254_s19 }
  0x61   : > { %442 = vrot.lane.b32.xlu0 %v2342_v8, %s2254_s19  ;;  %444 = vrot.lane.b32.xlu1 %v2345_v9, %s2254_s19 }
  0x65   : > { %446 = vrot.lane.b32.xlu0 %v2348_v10, %s2254_s19  ;;  %448 = vrot.lane.b32.xlu1 %v2361_v11, %s2254_s19 }
  0x69   : > { %450 = vrot.lane.b32.xlu0 %v2364_v12, %s2254_s19  ;;  %452 = vrot.lane.b32.xlu1 %v2367_v13, %s2254_s19 }
  0x6d   : > { %454 = vrot.lane.b32.xlu0 %v2382_v14, %s2254_s19  ;;  %456 = vrot.lane.b32.xlu1 %v2385_v15, %s2254_s19 }
  0x71   : > { %458 = vrot.lane.b32.xlu0 %v2398_v16, %s2254_s19  ;;  %460 = vrot.lane.b32.xlu1 %v2401_v17, %s2254_s19 }
  0x75   : > { %462 = vrot.lane.b32.xlu0 %v2404_v18, %s2254_s19  ;;  %464 = vrot.lane.b32.xlu1 %v2413_v19, %s2254_s19 }
  0x79   : > { %466 = vrot.lane.b32.xlu0 %v2416_v20, %s2254_s19  ;;  %468 = vrot.lane.b32.xlu1 %v2419_v21, %s2254_s19 }
  0x7d   : > { %470 = vrot.lane.b32.xlu0 %v2430_v22, %s2254_s19  ;;  %472 = vrot.lane.b32.xlu1 %v2433_v23, %s2254_s19 }
  0x81   : > { %474 = vrot.lane.b32.xlu0 %v2436_v24, %s2254_s19  ;;  %476 = vrot.lane.b32.xlu1 %v2453_v25, %s2254_s19 }
  0x83   : > { %v298_v32 = vpop.permute.xlu0 %297  ;;  %v302_v33 = vpop.permute.xlu1 %301 }
  0x84   : > { %394 = vst.msk [vmem:[#allocation2] sm:$0xff] %vm393_vm3, %v298_v32  ;;  %396 = vst.msk [vmem:[#allocation2 + $0x10] sm:$0xff] %vm393_vm3, %v302_v33  ;;  %v1455_v32 = vld [vmem:[%s3529_s1 + $0x20] sm:$0xf] }
  0x85   : > { %478 = vrot.lane.b32.xlu0 %v2456_v26, %s2254_s19  ;;  %480 = vrot.lane.b32.xlu1 %v2467_v27, %s2254_s19 }
  0x86   : > { %2165 = vmatprep.subr.msk.mxu0 %vm1553_vm4, %v1455_v32  ;;  %2225 = vmatprep.subr.msk.mxu1 %vm1553_vm4, %v1455_v32 }
  0x87   : > { %v300_v34 = vpop.permute.xlu0 %299  ;;  %v304_v35 = vpop.permute.xlu1 %303  ;;  %2166 = vmatpush3.msk.msra.mxu0 %vm1553_vm4, %v1455_v32  ;;  %2228 = vmatpush3.msk.msra.mxu1 %vm1553_vm4, %v1455_v32  ;;  %vm1368_vm4 = vcmask 294145  }
  0x88   : > { %395 = vst.msk [vmem:[#allocation2 + $0x8] sm:$0xff] %vm393_vm3, %v300_v34  ;;  %397 = vst.msk [vmem:[#allocation2 + $0x18] sm:$0xff] %vm393_vm3, %v304_v35 }
  0x89   : > { %482 = vrot.lane.b32.xlu0 %v2470_v28, %s2254_s19  ;;  %484 = vrot.lane.b32.xlu1 %v2473_v29, %s2254_s19 }
  0x8b   : > { %v306_v36 = vpop.permute.xlu0 %305  ;;  %v308_v37 = vpop.permute.xlu1 %307 }
  0x8c   : > { %398 = vst.msk [vmem:[#allocation2 + $0x20] sm:$0xff] %vm393_vm3, %v306_v36  ;;  %399 = vst.msk [vmem:[#allocation2 + $0x28] sm:$0xff] %vm393_vm3, %v308_v37 }
  0x8d   : > { %486 = vrot.lane.b32.xlu0 %v2482_v30, %s2254_s19  ;;  %488 = vrot.lane.b32.xlu1 %v2485_v31, %s2254_s19 }
  0x8f   : > { %v310_v38 = vpop.permute.xlu0 %309  ;;  %v312_v39 = vpop.permute.xlu1 %311 }
  0x90   : > { %400 = vst.msk [vmem:[#allocation2 + $0x30] sm:$0xff] %vm393_vm3, %v310_v38  ;;  %401 = vst.msk [vmem:[#allocation2 + $0x38] sm:$0xff] %vm393_vm3, %v312_v39 }
  0x91   : > { %573 = vrot.lane.b32.xlu0 %v2313_v3, %s2255_s20  ;;  %575 = vrot.lane.b32.xlu1 %v2327_v5, %s2255_s20 }
  0x93   : > { %v314_v40 = vpop.permute.xlu0 %313  ;;  %v316_v41 = vpop.permute.xlu1 %315 }
  0x94   : > { %402 = vst.msk [vmem:[#allocation2 + $0x40] sm:$0xff] %vm393_vm3, %v314_v40  ;;  %403 = vst.msk [vmem:[#allocation2 + $0x48] sm:$0xff] %vm393_vm3, %v316_v41 }
  0x95   : > { %577 = vrot.lane.b32.xlu0 %v2333_v7, %s2255_s20  ;;  %579 = vrot.lane.b32.xlu1 %v2345_v9, %s2255_s20 }
  0x97   : > { %v318_v42 = vpop.permute.xlu0 %317  ;;  %v320_v43 = vpop.permute.xlu1 %319 }
  0x98   : > { %404 = vst.msk [vmem:[#allocation2 + $0x50] sm:$0xff] %vm393_vm3, %v318_v42  ;;  %405 = vst.msk [vmem:[#allocation2 + $0x58] sm:$0xff] %vm393_vm3, %v320_v43 }
  0x99   : > { %581 = vrot.lane.b32.xlu0 %v2361_v11, %s2255_s20  ;;  %583 = vrot.lane.b32.xlu1 %v2367_v13, %s2255_s20 }
  0x9b   : > { %v322_v44 = vpop.permute.xlu0 %321  ;;  %v324_v45 = vpop.permute.xlu1 %323 }
  0x9c   : > { %406 = vst.msk [vmem:[#allocation2 + $0x60] sm:$0xff] %vm393_vm3, %v322_v44  ;;  %407 = vst.msk [vmem:[#allocation2 + $0x68] sm:$0xff] %vm393_vm3, %v324_v45 }
  0x9d   : > { %585 = vrot.lane.b32.xlu0 %v2385_v15, %s2255_s20  ;;  %587 = vrot.lane.b32.xlu1 %v2401_v17, %s2255_s20 }
  0x9f   : > { %v326_v46 = vpop.permute.xlu0 %325  ;;  %v328_v47 = vpop.permute.xlu1 %327 }
  0xa0   : > { %408 = vst.msk [vmem:[#allocation2 + $0x70] sm:$0xff] %vm393_vm3, %v326_v46  ;;  %409 = vst.msk [vmem:[#allocation2 + $0x78] sm:$0xff] %vm393_vm3, %v328_v47 }
  0xa1   : > { %589 = vrot.lane.b32.xlu0 %v2413_v19, %s2255_s20  ;;  %591 = vrot.lane.b32.xlu1 %v2419_v21, %s2255_s20 }
  0xa3   : > { %v330_v48 = vpop.permute.xlu0 %329  ;;  %v332_v49 = vpop.permute.xlu1 %331 }
  0xa4   : > { %410 = vst.msk [vmem:[#allocation2 + $0x80] sm:$0xff] %vm393_vm3, %v330_v48  ;;  %411 = vst.msk [vmem:[#allocation2 + $0x88] sm:$0xff] %vm393_vm3, %v332_v49 }
  0xa5   : > { %638 = vrot.lane.b32.xlu0 %v2303_v1, %s2255_s20  ;;  %720 = vrot.lane.b32.xlu1 %v2303_v1, %s2256_s21 }
  0xa7   : > { %v334_v50 = vpop.permute.xlu0 %333  ;;  %v336_v51 = vpop.permute.xlu1 %335 }
  0xa8   : > { %412 = vst.msk [vmem:[#allocation2 + $0x90] sm:$0xff] %vm393_vm3, %v334_v50  ;;  %413 = vst.msk [vmem:[#allocation2 + $0x98] sm:$0xff] %vm393_vm3, %v336_v51 }
  0xa9   : > { %722 = vrot.lane.b32.xlu0 %v2313_v3, %s2256_s21  ;;  %849 = vrot.lane.b32.xlu1 %v2303_v1, %s2257_s22 }
  0xab   : > { %v338_v52 = vpop.permute.xlu0 %337  ;;  %v340_v53 = vpop.permute.xlu1 %339 }
  0xac   : > { %414 = vst.msk [vmem:[#allocation2 + $0xa0] sm:$0xff] %vm393_vm3, %v338_v52  ;;  %415 = vst.msk [vmem:[#allocation2 + $0xa8] sm:$0xff] %vm393_vm3, %v340_v53 }
  0xad   : > { %851 = vrot.lane.b32.xlu0 %v2313_v3, %s2257_s22  ;;  %996 = vrot.lane.b32.xlu1 %v2327_v5, %s2258_s27 }
  0xaf   : > { %v342_v57 = vpop.permute.xlu0 %341  ;;  %v344_v58 = vpop.permute.xlu1 %343 }
  0xb0   : > { %416 = vst.msk [vmem:[#allocation2 + $0xb0] sm:$0xff] %vm393_vm3, %v342_v57  ;;  %417 = vst.msk [vmem:[#allocation2 + $0xb8] sm:$0xff] %vm393_vm3, %v344_v58 }
  0xb1   : > { %1061 = vrot.lane.b32.xlu0 %v2316_v4, %s2258_s27  ;;  %640 = vrot.lane.b32.xlu1 %v2316_v4, %s2255_s20 }
  0xb3   : > { %v346_v62 = vpop.permute.xlu0 %345  ;;  %v348_v63 = vpop.permute.xlu1 %347 }
  0xb4   : > { %418 = vst.msk [vmem:[#allocation2 + $0xc0] sm:$0xff] %vm393_vm3, %v346_v62  ;;  %419 = vst.msk [vmem:[#allocation2 + $0xc8] sm:$0xff] %vm393_vm3, %v348_v63 }
  0xb5   : > { %1143 = vrot.lane.b32.xlu0 %v2316_v4, %s2259_s5  ;;  %1145 = vrot.lane.b32.xlu1 %v2327_v5, %s2259_s5 }
  0xb7   : > { %v350_v33 = vpop.permute.xlu0 %349  ;;  %v352_v34 = vpop.permute.xlu1 %351 }
  0xb8   : > { %420 = vst.msk [vmem:[#allocation2 + $0xd0] sm:$0xff] %vm393_vm3, %v350_v33  ;;  %421 = vst.msk [vmem:[#allocation2 + $0xd8] sm:$0xff] %vm393_vm3, %v352_v34 }
  0xb9   : > { %724 = vrot.lane.b32.xlu0 %v2316_v4, %s2256_s21  ;;  %726 = vrot.lane.b32.xlu1 %v2327_v5, %s2256_s21 }
  0xbb   : > { %v354_v35 = vpop.permute.xlu0 %353  ;;  %v356_v36 = vpop.permute.xlu1 %355 }
  0xbc   : > { %422 = vst.msk [vmem:[#allocation2 + $0xe0] sm:$0xff] %vm393_vm3, %v354_v35  ;;  %423 = vst.msk [vmem:[#allocation2 + $0xe8] sm:$0xff] %vm393_vm3, %v356_v36 }
  0xbd   : > { %1272 = vrot.lane.b32.xlu0 %v2316_v4, %s2260_s8  ;;  %1274 = vrot.lane.b32.xlu1 %v2327_v5, %s2260_s8 }
  0xbf   : > { %v358_v37 = vpop.permute.xlu0 %357  ;;  %v360_v38 = vpop.permute.xlu1 %359 }
  0xc0   : > { %424 = vst.msk [vmem:[#allocation2 + $0xf0] sm:$0xff] %vm393_vm3, %v358_v37  ;;  %425 = vst.msk [vmem:[#allocation2 + $0xf8] sm:$0xff] %vm393_vm3, %v360_v38  ;;  %vm1239_vm3 = vcmask 261344  }
  0xc1   : > { %853 = vrot.lane.b32.xlu0 %v2316_v4, %s2257_s22  ;;  %855 = vrot.lane.b32.xlu1 %v2327_v5, %s2257_s22 }
  0xc3   : > { %v427_v39 = vpop.permute.xlu0 %426  ;;  %v429_v40 = vpop.permute.xlu1 %428 }
  0xc4   : > { %523 = vst.msk [vmem:[#allocation2 - $0x1] sm:$0xfe] %vm522_vm5, %v427_v39 }
  0xc5   : > { %557 = vst.msk [vmem:[#allocation2 + $0xf] sm:$0x1] %vm556_vm6, %v427_v39  ;;  %998 = vrot.lane.b32.xlu0 %v2333_v7, %s2258_s27  ;;  %1063 = vrot.lane.b32.xlu1 %v2330_v6, %s2258_s27 }
  0xc6   : > { %525 = vst.msk [vmem:[#allocation2 + $0x7] sm:$0xff] %vm524_vm7, %v429_v40 }
  0xc7   : > { %v431_v4 = vpop.permute.xlu0 %430  ;;  %v433_v41 = vpop.permute.xlu1 %432 }
  0xc8   : > { %526 = vst.msk [vmem:[#allocation2 + $0xf] sm:$0xfe] %vm522_vm5, %v431_v4 }
  0xc9   : > { %558 = vst.msk [vmem:[#allocation2 + $0x1f] sm:$0x1] %vm556_vm6, %v431_v4  ;;  %642 = vrot.lane.b32.xlu0 %v2330_v6, %s2255_s20  ;;  %1147 = vrot.lane.b32.xlu1 %v2330_v6, %s2259_s5 }
  0xca   : > { %527 = vst.msk [vmem:[#allocation2 + $0x17] sm:$0xff] %vm524_vm7, %v433_v41 }
  0xcb   : > { %v435_v5 = vpop.permute.xlu0 %434  ;;  %v437_v42 = vpop.permute.xlu1 %436 }
  0xcc   : > { %528 = vst.msk [vmem:[#allocation2 + $0x1f] sm:$0xfe] %vm522_vm5, %v435_v5 }
  0xcd   : > { %559 = vst.msk [vmem:[#allocation2 + $0x2f] sm:$0x1] %vm556_vm6, %v435_v5  ;;  %1149 = vrot.lane.b32.xlu0 %v2333_v7, %s2259_s5  ;;  %728 = vrot.lane.b32.xlu1 %v2330_v6, %s2256_s21 }
  0xce   : > { %529 = vst.msk [vmem:[#allocation2 + $0x27] sm:$0xff] %vm524_vm7, %v437_v42 }
  0xcf   : > { %v439_v43 = vpop.permute.xlu0 %438  ;;  %v441_v44 = vpop.permute.xlu1 %440 }
  0xd0   : > { %530 = vst.msk [vmem:[#allocation2 + $0x2f] sm:$0xfe] %vm522_vm5, %v439_v43 }
  0xd1   : > { %560 = vst.msk [vmem:[#allocation2 + $0x3f] sm:$0x1] %vm556_vm6, %v439_v43  ;;  %730 = vrot.lane.b32.xlu0 %v2333_v7, %s2256_s21  ;;  %1276 = vrot.lane.b32.xlu1 %v2330_v6, %s2260_s8 }
  0xd2   : > { %531 = vst.msk [vmem:[#allocation2 + $0x37] sm:$0xff] %vm524_vm7, %v441_v44 }
  0xd3   : > { %v443_v45 = vpop.permute.xlu0 %442  ;;  %v445_v46 = vpop.permute.xlu1 %444 }
  0xd4   : > { %532 = vst.msk [vmem:[#allocation2 + $0x3f] sm:$0xfe] %vm522_vm5, %v443_v45 }
  0xd5   : > { %561 = vst.msk [vmem:[#allocation2 + $0x4f] sm:$0x1] %vm556_vm6, %v443_v45  ;;  %1278 = vrot.lane.b32.xlu0 %v2333_v7, %s2260_s8  ;;  %857 = vrot.lane.b32.xlu1 %v2330_v6, %s2257_s22 }
  0xd6   : > { %533 = vst.msk [vmem:[#allocation2 + $0x47] sm:$0xff] %vm524_vm7, %v445_v46 }
  0xd7   : > { %v447_v47 = vpop.permute.xlu0 %446  ;;  %v449_v48 = vpop.permute.xlu1 %448 }
  0xd8   : > { %534 = vst.msk [vmem:[#allocation2 + $0x4f] sm:$0xfe] %vm522_vm5, %v447_v47 }
  0xd9   : > { %562 = vst.msk [vmem:[#allocation2 + $0x5f] sm:$0x1] %vm556_vm6, %v447_v47  ;;  %859 = vrot.lane.b32.xlu0 %v2333_v7, %s2257_s22  ;;  %1000 = vrot.lane.b32.xlu1 %v2345_v9, %s2258_s27 }
  0xda   : > { %535 = vst.msk [vmem:[#allocation2 + $0x57] sm:$0xff] %vm524_vm7, %v449_v48 }
  0xdb   : > { %v451_v49 = vpop.permute.xlu0 %450  ;;  %v453_v50 = vpop.permute.xlu1 %452 }
  0xdc   : > { %536 = vst.msk [vmem:[#allocation2 + $0x5f] sm:$0xfe] %vm522_vm5, %v451_v49 }
  0xdd   : > { %563 = vst.msk [vmem:[#allocation2 + $0x6f] sm:$0x1] %vm556_vm6, %v451_v49  ;;  %1065 = vrot.lane.b32.xlu0 %v2342_v8, %s2258_s27  ;;  %644 = vrot.lane.b32.xlu1 %v2342_v8, %s2255_s20 }
  0xde   : > { %537 = vst.msk [vmem:[#allocation2 + $0x67] sm:$0xff] %vm524_vm7, %v453_v50 }
  0xdf   : > { %v455_v6 = vpop.permute.xlu0 %454  ;;  %v457_v51 = vpop.permute.xlu1 %456 }
  0xe0   : > { %538 = vst.msk [vmem:[#allocation2 + $0x6f] sm:$0xfe] %vm522_vm5, %v455_v6 }
  0xe1   : > { %564 = vst.msk [vmem:[#allocation2 + $0x7f] sm:$0x1] %vm556_vm6, %v455_v6  ;;  %1151 = vrot.lane.b32.xlu0 %v2342_v8, %s2259_s5  ;;  %1153 = vrot.lane.b32.xlu1 %v2345_v9, %s2259_s5 }
  0xe2   : > { %539 = vst.msk [vmem:[#allocation2 + $0x77] sm:$0xff] %vm524_vm7, %v457_v51 }
  0xe3   : > { %v459_v7 = vpop.permute.xlu0 %458  ;;  %v461_v52 = vpop.permute.xlu1 %460 }
  0xe4   : > { %540 = vst.msk [vmem:[#allocation2 + $0x7f] sm:$0xfe] %vm522_vm5, %v459_v7 }
  0xe5   : > { %565 = vst.msk [vmem:[#allocation2 + $0x8f] sm:$0x1] %vm556_vm6, %v459_v7  ;;  %732 = vrot.lane.b32.xlu0 %v2342_v8, %s2256_s21  ;;  %734 = vrot.lane.b32.xlu1 %v2345_v9, %s2256_s21 }
  0xe6   : > { %541 = vst.msk [vmem:[#allocation2 + $0x87] sm:$0xff] %vm524_vm7, %v461_v52 }
  0xe7   : > { %v463_v53 = vpop.permute.xlu0 %462  ;;  %v465_v54 = vpop.permute.xlu1 %464 }
  0xe8   : > { %542 = vst.msk [vmem:[#allocation2 + $0x8f] sm:$0xfe] %vm522_vm5, %v463_v53 }
  0xe9   : > { %566 = vst.msk [vmem:[#allocation2 + $0x9f] sm:$0x1] %vm556_vm6, %v463_v53  ;;  %1280 = vrot.lane.b32.xlu0 %v2342_v8, %s2260_s8  ;;  %1282 = vrot.lane.b32.xlu1 %v2345_v9, %s2260_s8 }
  0xea   : > { %543 = vst.msk [vmem:[#allocation2 + $0x97] sm:$0xff] %vm524_vm7, %v465_v54 }
  0xeb   : > { %v467_v55 = vpop.permute.xlu0 %466  ;;  %v469_v56 = vpop.permute.xlu1 %468 }
  0xec   : > { %544 = vst.msk [vmem:[#allocation2 + $0x9f] sm:$0xfe] %vm522_vm5, %v467_v55 }
  0xed   : > { %567 = vst.msk [vmem:[#allocation2 + $0xaf] sm:$0x1] %vm556_vm6, %v467_v55  ;;  %861 = vrot.lane.b32.xlu0 %v2342_v8, %s2257_s22  ;;  %863 = vrot.lane.b32.xlu1 %v2345_v9, %s2257_s22 }
  0xee   : > { %545 = vst.msk [vmem:[#allocation2 + $0xa7] sm:$0xff] %vm524_vm7, %v469_v56 }
  0xef   : > { %v471_v57 = vpop.permute.xlu0 %470  ;;  %v473_v58 = vpop.permute.xlu1 %472 }
  0xf0   : > { %546 = vst.msk [vmem:[#allocation2 + $0xaf] sm:$0xfe] %vm522_vm5, %v471_v57 }
  0xf1   : > { %568 = vst.msk [vmem:[#allocation2 + $0xbf] sm:$0x1] %vm556_vm6, %v471_v57  ;;  %1002 = vrot.lane.b32.xlu0 %v2361_v11, %s2258_s27  ;;  %1067 = vrot.lane.b32.xlu1 %v2348_v10, %s2258_s27 }
  0xf2   : > { %547 = vst.msk [vmem:[#allocation2 + $0xb7] sm:$0xff] %vm524_vm7, %v473_v58 }
  0xf3   : > { %v475_v59 = vpop.permute.xlu0 %474  ;;  %v477_v60 = vpop.permute.xlu1 %476 }
  0xf4   : > { %548 = vst.msk [vmem:[#allocation2 + $0xbf] sm:$0xfe] %vm522_vm5, %v475_v59 }
  0xf5   : > { %569 = vst.msk [vmem:[#allocation2 + $0xcf] sm:$0x1] %vm556_vm6, %v475_v59  ;;  %646 = vrot.lane.b32.xlu0 %v2348_v10, %s2255_s20  ;;  %1155 = vrot.lane.b32.xlu1 %v2348_v10, %s2259_s5 }
  0xf6   : > { %549 = vst.msk [vmem:[#allocation2 + $0xc7] sm:$0xff] %vm524_vm7, %v477_v60 }
  0xf7   : > { %v479_v8 = vpop.permute.xlu0 %478  ;;  %v481_v9 = vpop.permute.xlu1 %480 }
  0xf8   : > { %550 = vst.msk [vmem:[#allocation2 + $0xcf] sm:$0xfe] %vm522_vm5, %v479_v8 }
  0xf9   : > { %570 = vst.msk [vmem:[#allocation2 + $0xdf] sm:$0x1] %vm556_vm6, %v479_v8  ;;  %1157 = vrot.lane.b32.xlu0 %v2361_v11, %s2259_s5  ;;  %736 = vrot.lane.b32.xlu1 %v2348_v10, %s2256_s21 }
  0xfa   : > { %551 = vst.msk [vmem:[#allocation2 + $0xd7] sm:$0xff] %vm524_vm7, %v481_v9 }
  0xfb   : > { %v483_v61 = vpop.permute.xlu0 %482  ;;  %v485_v62 = vpop.permute.xlu1 %484 }
  0xfc   : > { %552 = vst.msk [vmem:[#allocation2 + $0xdf] sm:$0xfe] %vm522_vm5, %v483_v61 }
  0xfd   : > { %571 = vst.msk [vmem:[#allocation2 + $0xef] sm:$0x1] %vm556_vm6, %v483_v61  ;;  %738 = vrot.lane.b32.xlu0 %v2361_v11, %s2256_s21  ;;  %1284 = vrot.lane.b32.xlu1 %v2348_v10, %s2260_s8 }
  0xfe   : > { %553 = vst.msk [vmem:[#allocation2 + $0xe7] sm:$0xff] %vm524_vm7, %v485_v62 }
  0xff   : > { %v487_v63 = vpop.permute.xlu0 %486  ;;  %v489_v32 = vpop.permute.xlu1 %488 }
 0x100   : > { %554 = vst.msk [vmem:[#allocation2 + $0xef] sm:$0xfe] %vm522_vm5, %v487_v63  ;;  %vm1402_vm5 = vcmask 286976  }
 0x101   : > { %572 = vst.msk [vmem:[#allocation2 + $0xff] sm:$0x1] %vm556_vm6, %v487_v63  ;;  %1286 = vrot.lane.b32.xlu0 %v2361_v11, %s2260_s8  ;;  %865 = vrot.lane.b32.xlu1 %v2348_v10, %s2257_s22  ;;  %vm1370_vm6 = vcmask 294144  }
 0x102   : > { %555 = vst.msk [vmem:[#allocation2 + $0xf7] sm:$0xff] %vm524_vm7, %v489_v32  ;;  %vm1456_vm7 = vcmask 293888  }
 0x103   : > { %v574_v33 = vpop.permute.xlu0 %573  ;;  %v576_v34 = vpop.permute.xlu1 %575 }
 0x104   : > { %622 = vst.msk [vmem:[#allocation2 - $0x7] sm:$0x80] %vm621_vm8, %v574_v33  ;;  %623 = vst.msk [vmem:[#allocation2 + $0x9] sm:$0x80] %vm621_vm8, %v576_v34 }
 0x105   : > { %689 = vst.msk [vmem:[#allocation2 + $0x9] sm:$0x7f] %vm688_vm9, %v574_v33  ;;  %691 = vst.msk [vmem:[#allocation2 + $0x19] sm:$0x7f] %vm688_vm9, %v576_v34  ;;  %867 = vrot.lane.b32.xlu0 %v2361_v11, %s2257_s22  ;;  %1004 = vrot.lane.b32.xlu1 %v2367_v13, %s2258_s27 }
 0x107   : > { %v578_v35 = vpop.permute.xlu0 %577  ;;  %v580_v10 = vpop.permute.xlu1 %579 }
 0x108   : > { %624 = vst.msk [vmem:[#allocation2 + $0x19] sm:$0x80] %vm621_vm8, %v578_v35  ;;  %625 = vst.msk [vmem:[#allocation2 + $0x29] sm:$0x80] %vm621_vm8, %v580_v10 }
 0x109   : > { %693 = vst.msk [vmem:[#allocation2 + $0x29] sm:$0x7f] %vm688_vm9, %v578_v35  ;;  %695 = vst.msk [vmem:[#allocation2 + $0x39] sm:$0x7f] %vm688_vm9, %v580_v10  ;;  %1069 = vrot.lane.b32.xlu0 %v2364_v12, %s2258_s27  ;;  %648 = vrot.lane.b32.xlu1 %v2364_v12, %s2255_s20 }
 0x10b   : > { %v582_v11 = vpop.permute.xlu0 %581  ;;  %v584_v36 = vpop.permute.xlu1 %583 }
 0x10c   : > { %626 = vst.msk [vmem:[#allocation2 + $0x39] sm:$0x80] %vm621_vm8, %v582_v11  ;;  %627 = vst.msk [vmem:[#allocation2 + $0x49] sm:$0x80] %vm621_vm8, %v584_v36 }
 0x10d   : > { %697 = vst.msk [vmem:[#allocation2 + $0x49] sm:$0x7f] %vm688_vm9, %v582_v11  ;;  %699 = vst.msk [vmem:[#allocation2 + $0x59] sm:$0x7f] %vm688_vm9, %v584_v36  ;;  %1159 = vrot.lane.b32.xlu0 %v2364_v12, %s2259_s5  ;;  %1161 = vrot.lane.b32.xlu1 %v2367_v13, %s2259_s5 }
 0x10f   : > { %v586_v37 = vpop.permute.xlu0 %585  ;;  %v588_v38 = vpop.permute.xlu1 %587 }
 0x110   : > { %628 = vst.msk [vmem:[#allocation2 + $0x59] sm:$0x80] %vm621_vm8, %v586_v37  ;;  %629 = vst.msk [vmem:[#allocation2 + $0x69] sm:$0x80] %vm621_vm8, %v588_v38 }
 0x111   : > { %701 = vst.msk [vmem:[#allocation2 + $0x69] sm:$0x7f] %vm688_vm9, %v586_v37  ;;  %703 = vst.msk [vmem:[#allocation2 + $0x79] sm:$0x7f] %vm688_vm9, %v588_v38  ;;  %740 = vrot.lane.b32.xlu0 %v2364_v12, %s2256_s21  ;;  %742 = vrot.lane.b32.xlu1 %v2367_v13, %s2256_s21 }
 0x113   : > { %v590_v39 = vpop.permute.xlu0 %589  ;;  %v592_v40 = vpop.permute.xlu1 %591 }
 0x114   : > { %630 = vst.msk [vmem:[#allocation2 + $0x79] sm:$0x80] %vm621_vm8, %v590_v39  ;;  %631 = vst.msk [vmem:[#allocation2 + $0x89] sm:$0x80] %vm621_vm8, %v592_v40 }
 0x115   : > { %705 = vst.msk [vmem:[#allocation2 + $0x89] sm:$0x7f] %vm688_vm9, %v590_v39  ;;  %707 = vst.msk [vmem:[#allocation2 + $0x99] sm:$0x7f] %vm688_vm9, %v592_v40  ;;  %1288 = vrot.lane.b32.xlu0 %v2364_v12, %s2260_s8  ;;  %1290 = vrot.lane.b32.xlu1 %v2367_v13, %s2260_s8 }
 0x117   : > { %v639_v4 = vpop.permute.xlu0 %638  ;;  %v721_v41 = vpop.permute.xlu1 %720 }
 0x118   : > { %687 = vst.msk [vmem:[#allocation2 + $0x1] sm:$0xff] %vm686_vm10, %v639_v4 }
 0x119   : > { %817 = vst.msk [vmem:[#allocation2] sm:$0xff] %vm816_vm11, %v721_v41  ;;  %869 = vrot.lane.b32.xlu0 %v2364_v12, %s2257_s22  ;;  %871 = vrot.lane.b32.xlu1 %v2367_v13, %s2257_s22 }
 0x11b   : > { %v723_v5 = vpop.permute.xlu0 %722  ;;  %v850_v42 = vpop.permute.xlu1 %849 }
 0x11c   : > { %818 = vst.msk [vmem:[#allocation2 + $0x8] sm:$0xff] %vm816_vm11, %v723_v5 }
 0x11d   : > { %946 = vst.msk [vmem:[#allocation2 - $0x1] sm:$0xfe] %vm945_vm12, %v850_v42  ;;  %1006 = vrot.lane.b32.xlu0 %v2385_v15, %s2258_s27  ;;  %1071 = vrot.lane.b32.xlu1 %v2382_v14, %s2258_s27 }
 0x11e   : > { %980 = vst.msk [vmem:[#allocation2 + $0xf] sm:$0x1] %vm979_vm13, %v850_v42 }
 0x11f   : > { %v852_v12 = vpop.permute.xlu0 %851  ;;  %v997_v13 = vpop.permute.xlu1 %996 }
 0x120   : > { %948 = vst.msk [vmem:[#allocation2 + $0x7] sm:$0xff] %vm947_vm14, %v852_v12 }
 0x121   : > { %1045 = vst.msk [vmem:[#allocation2 - $0x7] sm:$0x80] %vm1044_vm15, %v997_v13  ;;  %650 = vrot.lane.b32.xlu0 %v2382_v14, %s2255_s20  ;;  %1163 = vrot.lane.b32.xlu1 %v2382_v14, %s2259_s5 }
 0x122   : > { %1112 = vst.msk [vmem:[#allocation2 + $0x9] sm:$0x7f] %vm1111_vm0, %v997_v13 }
 0x123   : > { %v1062_v43 = vpop.permute.xlu0 %1061  ;;  %v641_v44 = vpop.permute.xlu1 %640 }
 0x124   : > { %1110 = vst.msk [vmem:[#allocation2 + $0x1] sm:$0xff] %vm1109_vm2, %v1062_v43 }
 0x125   : > { %690 = vst.msk [vmem:[#allocation2 + $0x11] sm:$0xff] %vm686_vm10, %v641_v44  ;;  %1165 = vrot.lane.b32.xlu0 %v2385_v15, %s2259_s5  ;;  %744 = vrot.lane.b32.xlu1 %v2382_v14, %s2256_s21 }
 0x127   : > { %v1144_v45 = vpop.permute.xlu0 %1143  ;;  %v1146_v46 = vpop.permute.xlu1 %1145 }
 0x128   : > { %1240 = vst.msk [vmem:[#allocation2] sm:$0xff] %vm1239_vm3, %v1144_v45  ;;  %1241 = vst.msk [vmem:[#allocation2 + $0x8] sm:$0xff] %vm1239_vm3, %v1146_v46 }
 0x129   : > { %746 = vrot.lane.b32.xlu0 %v2385_v15, %s2256_s21  ;;  %1292 = vrot.lane.b32.xlu1 %v2382_v14, %s2260_s8 }
 0x12b   : > { %v725_v47 = vpop.permute.xlu0 %724  ;;  %v727_v48 = vpop.permute.xlu1 %726 }
 0x12c   : > { %819 = vst.msk [vmem:[#allocation2 + $0x10] sm:$0xff] %vm816_vm11, %v725_v47  ;;  %820 = vst.msk [vmem:[#allocation2 + $0x18] sm:$0xff] %vm816_vm11, %v727_v48 }
 0x12d   : > { %1294 = vrot.lane.b32.xlu0 %v2385_v15, %s2260_s8  ;;  %873 = vrot.lane.b32.xlu1 %v2382_v14, %s2257_s22 }
 0x12f   : > { %v1273_v49 = vpop.permute.xlu0 %1272  ;;  %v1275_v50 = vpop.permute.xlu1 %1274 }
 0x130   : > { %1369 = vst.msk [vmem:[#allocation2 - $0x1] sm:$0xfe] %vm1368_vm4, %v1273_v49 }
 0x131   : > { %1403 = vst.msk [vmem:[#allocation2 + $0xf] sm:$0x1] %vm1402_vm5, %v1273_v49  ;;  %875 = vrot.lane.b32.xlu0 %v2385_v15, %s2257_s22  ;;  %1008 = vrot.lane.b32.xlu1 %v2401_v17, %s2258_s27 }
 0x132   : > { %1371 = vst.msk [vmem:[#allocation2 + $0x7] sm:$0xff] %vm1370_vm6, %v1275_v50 }
 0x133   : > { %v854_v6 = vpop.permute.xlu0 %853  ;;  %v856_v51 = vpop.permute.xlu1 %855 }
 0x134   : > { %949 = vst.msk [vmem:[#allocation2 + $0xf] sm:$0xfe] %vm945_vm12, %v854_v6 }
 0x135   : > { %981 = vst.msk [vmem:[#allocation2 + $0x1f] sm:$0x1] %vm979_vm13, %v854_v6  ;;  %1073 = vrot.lane.b32.xlu0 %v2398_v16, %s2258_s27  ;;  %652 = vrot.lane.b32.xlu1 %v2398_v16, %s2255_s20 }
 0x136   : > { %950 = vst.msk [vmem:[#allocation2 + $0x17] sm:$0xff] %vm947_vm14, %v856_v51 }
 0x137   : > { %v999_v14 = vpop.permute.xlu0 %998  ;;  %v1064_v15 = vpop.permute.xlu1 %1063 }
 0x138   : > { %1046 = vst.msk [vmem:[#allocation2 + $0x9] sm:$0x80] %vm1044_vm15, %v999_v14 }
 0x139   : > { %v1419_v7 = vld [vmem:[#allocation2] sm:$0xff]  ;;  %v1420_v52 = vld [vmem:[#allocation2 + $0x8] sm:$0xff]  ;;  %1114 = vst.msk [vmem:[#allocation2 + $0x19] sm:$0x7f] %vm1111_vm0, %v999_v14  ;;  %1167 = vrot.lane.b32.xlu0 %v2398_v16, %s2259_s5  ;;  %1169 = vrot.lane.b32.xlu1 %v2401_v17, %s2259_s5 }
 0x13a   : > { %1113 = vst.msk [vmem:[#allocation2 + $0x11] sm:$0xff] %vm1109_vm2, %v1064_v15  ;;  %2167 = vmatprep.mubr.msk.f32.mxu0 %vm1456_vm7, %v1419_v7 }
 0x13b   : > { %2168 = vmatmul.mubr.msk.f32.vlgmr.msra.gmra.mrb[0].mxu0 %vm1456_vm7, %v1420_v52  ;;  %v643_v53 = vpop.permute.xlu0 %642  ;;  %v1148_v54 = vpop.permute.xlu1 %1147 }
 0x13c   : > { %692 = vst.msk [vmem:[#allocation2 + $0x21] sm:$0xff] %vm686_vm10, %v643_v53 }
 0x13d   : > { %1242 = vst.msk [vmem:[#allocation2 + $0x10] sm:$0xff] %vm1239_vm3, %v1148_v54  ;;  %748 = vrot.lane.b32.xlu0 %v2398_v16, %s2256_s21  ;;  %750 = vrot.lane.b32.xlu1 %v2401_v17, %s2256_s21 }
 0x13f   : > { %v1150_v55 = vpop.permute.xlu0 %1149  ;;  %v729_v56 = vpop.permute.xlu1 %728 }
 0x140   : > { %1243 = vst.msk [vmem:[#allocation2 + $0x18] sm:$0xff] %vm1239_vm3, %v1150_v55 }
 0x141   : > { %821 = vst.msk [vmem:[#allocation2 + $0x20] sm:$0xff] %vm816_vm11, %v729_v56  ;;  %1296 = vrot.lane.b32.xlu0 %v2398_v16, %s2260_s8  ;;  %1298 = vrot.lane.b32.xlu1 %v2401_v17, %s2260_s8 }
 0x143   : > { %v731_v57 = vpop.permute.xlu0 %730  ;;  %v1277_v58 = vpop.permute.xlu1 %1276 }
 0x144   : > { %822 = vst.msk [vmem:[#allocation2 + $0x28] sm:$0xff] %vm816_vm11, %v731_v57 }
 0x145   : > { %1372 = vst.msk [vmem:[#allocation2 + $0xf] sm:$0xfe] %vm1368_vm4, %v1277_v58  ;;  %877 = vrot.lane.b32.xlu0 %v2398_v16, %s2257_s22  ;;  %879 = vrot.lane.b32.xlu1 %v2401_v17, %s2257_s22 }
 0x146   : > { %1404 = vst.msk [vmem:[#allocation2 + $0x1f] sm:$0x1] %vm1402_vm5, %v1277_v58 }
 0x147   : > { %v1279_v59 = vpop.permute.xlu0 %1278  ;;  %v858_v60 = vpop.permute.xlu1 %857 }
 0x148   : > { %1373 = vst.msk [vmem:[#allocation2 + $0x17] sm:$0xff] %vm1370_vm6, %v1279_v59 }
 0x149   : > { %951 = vst.msk [vmem:[#allocation2 + $0x1f] sm:$0xfe] %vm945_vm12, %v858_v60  ;;  %1010 = vrot.lane.b32.xlu0 %v2413_v19, %s2258_s27  ;;  %1075 = vrot.lane.b32.xlu1 %v2404_v18, %s2258_s27 }
 0x14a   : > { %982 = vst.msk [vmem:[#allocation2 + $0x2f] sm:$0x1] %vm979_vm13, %v858_v60 }
 0x14b   : > { %v860_v8 = vpop.permute.xlu0 %859  ;;  %v1001_v9 = vpop.permute.xlu1 %1000 }
 0x14c   : > { %952 = vst.msk [vmem:[#allocation2 + $0x27] sm:$0xff] %vm947_vm14, %v860_v8 }
 0x14d   : > { %1047 = vst.msk [vmem:[#allocation2 + $0x19] sm:$0x80] %vm1044_vm15, %v1001_v9  ;;  %654 = vrot.lane.b32.xlu0 %v2404_v18, %s2255_s20  ;;  %1171 = vrot.lane.b32.xlu1 %v2404_v18, %s2259_s5 }
 0x14e   : > { %1116 = vst.msk [vmem:[#allocation2 + $0x29] sm:$0x7f] %vm1111_vm0, %v1001_v9 }
 0x14f   : > { %v1066_v16 = vpop.permute.xlu0 %1065  ;;  %v645_v17 = vpop.permute.xlu1 %644  ;;  %v1421_v61 = vld [vmem:[#allocation2 + $0x10] sm:$0xff]  ;;  %v1422_v62 = vld [vmem:[#allocation2 + $0x18] sm:$0xff] }
 0x150   : > { %1115 = vst.msk [vmem:[#allocation2 + $0x21] sm:$0xff] %vm1109_vm2, %v1066_v16  ;;  %2170 = vmatprep.mubr.msk.f32.mxu0 %vm1456_vm7, %v1421_v61 }
 0x151   : > { %694 = vst.msk [vmem:[#allocation2 + $0x31] sm:$0xff] %vm686_vm10, %v645_v17  ;;  %1173 = vrot.lane.b32.xlu0 %v2413_v19, %s2259_s5  ;;  %752 = vrot.lane.b32.xlu1 %v2404_v18, %s2256_s21 }
 0x152   : > { %2171 = vmatmul.mubr.msk.f32.gmra.mrb[2].mxu0 %vm1456_vm7, %v1422_v62 }
 0x153   : > { %v1152_v63 = vpop.permute.xlu0 %1151  ;;  %v1154_v32 = vpop.permute.xlu1 %1153 }
 0x154   : > { %1244 = vst.msk [vmem:[#allocation2 + $0x20] sm:$0xff] %vm1239_vm3, %v1152_v63  ;;  %1245 = vst.msk [vmem:[#allocation2 + $0x28] sm:$0xff] %vm1239_vm3, %v1154_v32 }
 0x155   : > { %754 = vrot.lane.b32.xlu0 %v2413_v19, %s2256_s21  ;;  %1300 = vrot.lane.b32.xlu1 %v2404_v18, %s2260_s8 }
 0x157   : > { %v733_v33 = vpop.permute.xlu0 %732  ;;  %v735_v34 = vpop.permute.xlu1 %734 }
 0x158   : > { %823 = vst.msk [vmem:[#allocation2 + $0x30] sm:$0xff] %vm816_vm11, %v733_v33  ;;  %824 = vst.msk [vmem:[#allocation2 + $0x38] sm:$0xff] %vm816_vm11, %v735_v34 }
 0x159   : > { %1302 = vrot.lane.b32.xlu0 %v2413_v19, %s2260_s8  ;;  %881 = vrot.lane.b32.xlu1 %v2404_v18, %s2257_s22 }
 0x15b   : > { %v1281_v35 = vpop.permute.xlu0 %1280  ;;  %v1283_v10 = vpop.permute.xlu1 %1282 }
 0x15c   : > { %1374 = vst.msk [vmem:[#allocation2 + $0x1f] sm:$0xfe] %vm1368_vm4, %v1281_v35 }
 0x15d   : > { %1405 = vst.msk [vmem:[#allocation2 + $0x2f] sm:$0x1] %vm1402_vm5, %v1281_v35  ;;  %883 = vrot.lane.b32.xlu0 %v2413_v19, %s2257_s22  ;;  %1012 = vrot.lane.b32.xlu1 %v2419_v21, %s2258_s27 }
 0x15e   : > { %1375 = vst.msk [vmem:[#allocation2 + $0x27] sm:$0xff] %vm1370_vm6, %v1283_v10 }
 0x15f   : > { %v862_v11 = vpop.permute.xlu0 %861  ;;  %v864_v36 = vpop.permute.xlu1 %863 }
 0x160   : > { %953 = vst.msk [vmem:[#allocation2 + $0x2f] sm:$0xfe] %vm945_vm12, %v862_v11 }
 0x161   : > { %983 = vst.msk [vmem:[#allocation2 + $0x3f] sm:$0x1] %vm979_vm13, %v862_v11  ;;  %1077 = vrot.lane.b32.xlu0 %v2416_v20, %s2258_s27  ;;  %656 = vrot.lane.b32.xlu1 %v2416_v20, %s2255_s20 }
 0x162   : > { %954 = vst.msk [vmem:[#allocation2 + $0x37] sm:$0xff] %vm947_vm14, %v864_v36 }
 0x163   : > { %v1003_v18 = vpop.permute.xlu0 %1002  ;;  %v1068_v37 = vpop.permute.xlu1 %1067 }
 0x164   : > { %1048 = vst.msk [vmem:[#allocation2 + $0x29] sm:$0x80] %vm1044_vm15, %v1003_v18 }
 0x165   : > { %v1423_v19 = vld [vmem:[#allocation2 + $0x20] sm:$0xff]  ;;  %v1424_v38 = vld [vmem:[#allocation2 + $0x28] sm:$0xff]  ;;  %1118 = vst.msk [vmem:[#allocation2 + $0x39] sm:$0x7f] %vm1111_vm0, %v1003_v18  ;;  %1175 = vrot.lane.b32.xlu0 %v2416_v20, %s2259_s5  ;;  %1177 = vrot.lane.b32.xlu1 %v2419_v21, %s2259_s5 }
 0x166   : > { %1117 = vst.msk [vmem:[#allocation2 + $0x31] sm:$0xff] %vm1109_vm2, %v1068_v37  ;;  %2173 = vmatprep.mubr.msk.f32.mxu0 %vm1456_vm7, %v1423_v19 }
 0x167   : > { %2174 = vmatmul.mubr.msk.f32.gmra.mrb[4].mxu0 %vm1456_vm7, %v1424_v38  ;;  %v647_v39 = vpop.permute.xlu0 %646  ;;  %v1156_v40 = vpop.permute.xlu1 %1155 }
 0x168   : > { %696 = vst.msk [vmem:[#allocation2 + $0x41] sm:$0xff] %vm686_vm10, %v647_v39 }
 0x169   : > { %1246 = vst.msk [vmem:[#allocation2 + $0x30] sm:$0xff] %vm1239_vm3, %v1156_v40  ;;  %756 = vrot.lane.b32.xlu0 %v2416_v20, %s2256_s21  ;;  %758 = vrot.lane.b32.xlu1 %v2419_v21, %s2256_s21 }
 0x16b   : > { %v1158_v4 = vpop.permute.xlu0 %1157  ;;  %v737_v41 = vpop.permute.xlu1 %736 }
 0x16c   : > { %1247 = vst.msk [vmem:[#allocation2 + $0x38] sm:$0xff] %vm1239_vm3, %v1158_v4 }
 0x16d   : > { %825 = vst.msk [vmem:[#allocation2 + $0x40] sm:$0xff] %vm816_vm11, %v737_v41  ;;  %1304 = vrot.lane.b32.xlu0 %v2416_v20, %s2260_s8  ;;  %1306 = vrot.lane.b32.xlu1 %v2419_v21, %s2260_s8 }
 0x16f   : > { %v739_v5 = vpop.permute.xlu0 %738  ;;  %v1285_v42 = vpop.permute.xlu1 %1284 }
 0x170   : > { %826 = vst.msk [vmem:[#allocation2 + $0x48] sm:$0xff] %vm816_vm11, %v739_v5 }
 0x171   : > { %1376 = vst.msk [vmem:[#allocation2 + $0x2f] sm:$0xfe] %vm1368_vm4, %v1285_v42  ;;  %885 = vrot.lane.b32.xlu0 %v2416_v20, %s2257_s22  ;;  %887 = vrot.lane.b32.xlu1 %v2419_v21, %s2257_s22 }
 0x172   : > { %1406 = vst.msk [vmem:[#allocation2 + $0x3f] sm:$0x1] %vm1402_vm5, %v1285_v42 }
 0x173   : > { %v1287_v12 = vpop.permute.xlu0 %1286  ;;  %v866_v13 = vpop.permute.xlu1 %865 }
 0x174   : > { %1377 = vst.msk [vmem:[#allocation2 + $0x37] sm:$0xff] %vm1370_vm6, %v1287_v12 }
 0x175   : > { %955 = vst.msk [vmem:[#allocation2 + $0x3f] sm:$0xfe] %vm945_vm12, %v866_v13  ;;  %1014 = vrot.lane.b32.xlu0 %v2433_v23, %s2258_s27  ;;  %1079 = vrot.lane.b32.xlu1 %v2430_v22, %s2258_s27 }
 0x176   : > { %984 = vst.msk [vmem:[#allocation2 + $0x4f] sm:$0x1] %vm979_vm13, %v866_v13 }
 0x177   : > { %v868_v43 = vpop.permute.xlu0 %867  ;;  %v1005_v44 = vpop.permute.xlu1 %1004 }
 0x178   : > { %956 = vst.msk [vmem:[#allocation2 + $0x47] sm:$0xff] %vm947_vm14, %v868_v43 }
 0x179   : > { %1049 = vst.msk [vmem:[#allocation2 + $0x39] sm:$0x80] %vm1044_vm15, %v1005_v44  ;;  %593 = vrot.lane.b32.xlu0 %v2433_v23, %s2255_s20  ;;  %658 = vrot.lane.b32.xlu1 %v2430_v22, %s2255_s20 }
 0x17a   : > { %1120 = vst.msk [vmem:[#allocation2 + $0x49] sm:$0x7f] %vm1111_vm0, %v1005_v44 }
 0x17b   : > { %v1070_v20 = vpop.permute.xlu0 %1069  ;;  %v649_v21 = vpop.permute.xlu1 %648  ;;  %v1425_v45 = vld [vmem:[#allocation2 + $0x30] sm:$0xff]  ;;  %v1426_v46 = vld [vmem:[#allocation2 + $0x38] sm:$0xff] }
 0x17c   : > { %1119 = vst.msk [vmem:[#allocation2 + $0x41] sm:$0xff] %vm1109_vm2, %v1070_v20  ;;  %2176 = vmatprep.mubr.msk.f32.mxu0 %vm1456_vm7, %v1425_v45 }
 0x17d   : > { %698 = vst.msk [vmem:[#allocation2 + $0x51] sm:$0xff] %vm686_vm10, %v649_v21  ;;  %1179 = vrot.lane.b32.xlu0 %v2430_v22, %s2259_s5  ;;  %1181 = vrot.lane.b32.xlu1 %v2433_v23, %s2259_s5 }
 0x17e   : > { %2177 = vmatmul.mubr.msk.f32.gmra.mrb[6].mxu0 %vm1456_vm7, %v1426_v46 }
 0x17f   : > { %v1160_v47 = vpop.permute.xlu0 %1159  ;;  %v1162_v48 = vpop.permute.xlu1 %1161 }
 0x180   : > { %1248 = vst.msk [vmem:[#allocation2 + $0x40] sm:$0xff] %vm1239_vm3, %v1160_v47  ;;  %1249 = vst.msk [vmem:[#allocation2 + $0x48] sm:$0xff] %vm1239_vm3, %v1162_v48 }
 0x181   : > { %760 = vrot.lane.b32.xlu0 %v2430_v22, %s2256_s21  ;;  %762 = vrot.lane.b32.xlu1 %v2433_v23, %s2256_s21 }
 0x183   : > { %v741_v49 = vpop.permute.xlu0 %740  ;;  %v743_v50 = vpop.permute.xlu1 %742 }
 0x184   : > { %827 = vst.msk [vmem:[#allocation2 + $0x50] sm:$0xff] %vm816_vm11, %v741_v49  ;;  %828 = vst.msk [vmem:[#allocation2 + $0x58] sm:$0xff] %vm816_vm11, %v743_v50 }
 0x185   : > { %1308 = vrot.lane.b32.xlu0 %v2430_v22, %s2260_s8  ;;  %1310 = vrot.lane.b32.xlu1 %v2433_v23, %s2260_s8 }
 0x187   : > { %v1289_v6 = vpop.permute.xlu0 %1288  ;;  %v1291_v51 = vpop.permute.xlu1 %1290 }
 0x188   : > { %1378 = vst.msk [vmem:[#allocation2 + $0x3f] sm:$0xfe] %vm1368_vm4, %v1289_v6 }
 0x189   : > { %1407 = vst.msk [vmem:[#allocation2 + $0x4f] sm:$0x1] %vm1402_vm5, %v1289_v6  ;;  %889 = vrot.lane.b32.xlu0 %v2430_v22, %s2257_s22  ;;  %891 = vrot.lane.b32.xlu1 %v2433_v23, %s2257_s22 }
 0x18a   : > { %1379 = vst.msk [vmem:[#allocation2 + $0x47] sm:$0xff] %vm1370_vm6, %v1291_v51 }
 0x18b   : > { %v870_v14 = vpop.permute.xlu0 %869  ;;  %v872_v15 = vpop.permute.xlu1 %871 }
 0x18c   : > { %957 = vst.msk [vmem:[#allocation2 + $0x4f] sm:$0xfe] %vm945_vm12, %v870_v14 }
 0x18d   : > { %985 = vst.msk [vmem:[#allocation2 + $0x5f] sm:$0x1] %vm979_vm13, %v870_v14  ;;  %1016 = vrot.lane.b32.xlu0 %v2453_v25, %s2258_s27  ;;  %1081 = vrot.lane.b32.xlu1 %v2436_v24, %s2258_s27 }
 0x18e   : > { %958 = vst.msk [vmem:[#allocation2 + $0x57] sm:$0xff] %vm947_vm14, %v872_v15 }
 0x18f   : > { %v1007_v7 = vpop.permute.xlu0 %1006  ;;  %v1072_v52 = vpop.permute.xlu1 %1071 }
 0x190   : > { %1050 = vst.msk [vmem:[#allocation2 + $0x49] sm:$0x80] %vm1044_vm15, %v1007_v7 }
 0x191   : > { %v1427_v22 = vld [vmem:[#allocation2 + $0x40] sm:$0xff]  ;;  %v1428_v53 = vld [vmem:[#allocation2 + $0x48] sm:$0xff]  ;;  %1122 = vst.msk [vmem:[#allocation2 + $0x59] sm:$0x7f] %vm1111_vm0, %v1007_v7  ;;  %595 = vrot.lane.b32.xlu0 %v2453_v25, %s2255_s20  ;;  %660 = vrot.lane.b32.xlu1 %v2436_v24, %s2255_s20 }
 0x192   : > { %1121 = vst.msk [vmem:[#allocation2 + $0x51] sm:$0xff] %vm1109_vm2, %v1072_v52  ;;  %2179 = vmatprep.mubr.msk.f32.mxu0 %vm1456_vm7, %v1427_v22 }
 0x193   : > { %2180 = vmatmul.mubr.msk.f32.gmra.mrb[8].mxu0 %vm1456_vm7, %v1428_v53  ;;  %v651_v23 = vpop.permute.xlu0 %650  ;;  %v1164_v54 = vpop.permute.xlu1 %1163 }
 0x194   : > { %700 = vst.msk [vmem:[#allocation2 + $0x61] sm:$0xff] %vm686_vm10, %v651_v23 }
 0x195   : > { %1250 = vst.msk [vmem:[#allocation2 + $0x50] sm:$0xff] %vm1239_vm3, %v1164_v54  ;;  %1183 = vrot.lane.b32.xlu0 %v2436_v24, %s2259_s5  ;;  %1185 = vrot.lane.b32.xlu1 %v2453_v25, %s2259_s5 }
 0x197   : > { %v1166_v55 = vpop.permute.xlu0 %1165  ;;  %v745_v56 = vpop.permute.xlu1 %744 }
 0x198   : > { %1251 = vst.msk [vmem:[#allocation2 + $0x58] sm:$0xff] %vm1239_vm3, %v1166_v55 }
 0x199   : > { %829 = vst.msk [vmem:[#allocation2 + $0x60] sm:$0xff] %vm816_vm11, %v745_v56  ;;  %764 = vrot.lane.b32.xlu0 %v2436_v24, %s2256_s21  ;;  %766 = vrot.lane.b32.xlu1 %v2453_v25, %s2256_s21 }
 0x19b   : > { %v747_v57 = vpop.permute.xlu0 %746  ;;  %v1293_v58 = vpop.permute.xlu1 %1292 }
 0x19c   : > { %830 = vst.msk [vmem:[#allocation2 + $0x68] sm:$0xff] %vm816_vm11, %v747_v57 }
 0x19d   : > { %1380 = vst.msk [vmem:[#allocation2 + $0x4f] sm:$0xfe] %vm1368_vm4, %v1293_v58  ;;  %1312 = vrot.lane.b32.xlu0 %v2436_v24, %s2260_s8  ;;  %1314 = vrot.lane.b32.xlu1 %v2453_v25, %s2260_s8 }
 0x19e   : > { %1408 = vst.msk [vmem:[#allocation2 + $0x5f] sm:$0x1] %vm1402_vm5, %v1293_v58 }
 0x19f   : > { %v1295_v59 = vpop.permute.xlu0 %1294  ;;  %v874_v60 = vpop.permute.xlu1 %873 }
 0x1a0   : > { %1381 = vst.msk [vmem:[#allocation2 + $0x57] sm:$0xff] %vm1370_vm6, %v1295_v59 }
 0x1a1   : > { %959 = vst.msk [vmem:[#allocation2 + $0x5f] sm:$0xfe] %vm945_vm12, %v874_v60  ;;  %893 = vrot.lane.b32.xlu0 %v2436_v24, %s2257_s22  ;;  %895 = vrot.lane.b32.xlu1 %v2453_v25, %s2257_s22 }
 0x1a2   : > { %986 = vst.msk [vmem:[#allocation2 + $0x6f] sm:$0x1] %vm979_vm13, %v874_v60 }
 0x1a3   : > { %v876_v8 = vpop.permute.xlu0 %875  ;;  %v1009_v9 = vpop.permute.xlu1 %1008 }
 0x1a4   : > { %960 = vst.msk [vmem:[#allocation2 + $0x67] sm:$0xff] %vm947_vm14, %v876_v8 }
 0x1a5   : > { %1051 = vst.msk [vmem:[#allocation2 + $0x59] sm:$0x80] %vm1044_vm15, %v1009_v9  ;;  %1018 = vrot.lane.b32.xlu0 %v2467_v27, %s2258_s27  ;;  %1083 = vrot.lane.b32.xlu1 %v2456_v26, %s2258_s27 }
 0x1a6   : > { %1124 = vst.msk [vmem:[#allocation2 + $0x69] sm:$0x7f] %vm1111_vm0, %v1009_v9 }
 0x1a7   : > { %v1074_v16 = vpop.permute.xlu0 %1073  ;;  %v653_v17 = vpop.permute.xlu1 %652  ;;  %v1429_v24 = vld [vmem:[#allocation2 + $0x50] sm:$0xff]  ;;  %v1430_v61 = vld [vmem:[#allocation2 + $0x58] sm:$0xff] }
 0x1a8   : > { %1123 = vst.msk [vmem:[#allocation2 + $0x61] sm:$0xff] %vm1109_vm2, %v1074_v16  ;;  %2182 = vmatprep.mubr.msk.f32.mxu0 %vm1456_vm7, %v1429_v24 }
 0x1a9   : > { %702 = vst.msk [vmem:[#allocation2 + $0x71] sm:$0xff] %vm686_vm10, %v653_v17  ;;  %597 = vrot.lane.b32.xlu0 %v2467_v27, %s2255_s20  ;;  %662 = vrot.lane.b32.xlu1 %v2456_v26, %s2255_s20 }
 0x1aa   : > { %2183 = vmatmul.mubr.msk.f32.gmra.mrb[10].mxu0 %vm1456_vm7, %v1430_v61 }
 0x1ab   : > { %v1168_v25 = vpop.permute.xlu0 %1167  ;;  %v1170_v62 = vpop.permute.xlu1 %1169 }
 0x1ac   : > { %1252 = vst.msk [vmem:[#allocation2 + $0x60] sm:$0xff] %vm1239_vm3, %v1168_v25  ;;  %1253 = vst.msk [vmem:[#allocation2 + $0x68] sm:$0xff] %vm1239_vm3, %v1170_v62 }
 0x1ad   : > { %1187 = vrot.lane.b32.xlu0 %v2456_v26, %s2259_s5  ;;  %1189 = vrot.lane.b32.xlu1 %v2467_v27, %s2259_s5 }
 0x1af   : > { %v749_v63 = vpop.permute.xlu0 %748  ;;  %v751_v32 = vpop.permute.xlu1 %750 }
 0x1b0   : > { %831 = vst.msk [vmem:[#allocation2 + $0x70] sm:$0xff] %vm816_vm11, %v749_v63  ;;  %832 = vst.msk [vmem:[#allocation2 + $0x78] sm:$0xff] %vm816_vm11, %v751_v32 }
 0x1b1   : > { %768 = vrot.lane.b32.xlu0 %v2456_v26, %s2256_s21  ;;  %770 = vrot.lane.b32.xlu1 %v2467_v27, %s2256_s21 }
 0x1b3   : > { %v1297_v33 = vpop.permute.xlu0 %1296  ;;  %v1299_v34 = vpop.permute.xlu1 %1298 }
 0x1b4   : > { %1382 = vst.msk [vmem:[#allocation2 + $0x5f] sm:$0xfe] %vm1368_vm4, %v1297_v33 }
 0x1b5   : > { %1409 = vst.msk [vmem:[#allocation2 + $0x6f] sm:$0x1] %vm1402_vm5, %v1297_v33  ;;  %1316 = vrot.lane.b32.xlu0 %v2456_v26, %s2260_s8  ;;  %1318 = vrot.lane.b32.xlu1 %v2467_v27, %s2260_s8 }
 0x1b6   : > { %1383 = vst.msk [vmem:[#allocation2 + $0x67] sm:$0xff] %vm1370_vm6, %v1299_v34 }
 0x1b7   : > { %v878_v35 = vpop.permute.xlu0 %877  ;;  %v880_v10 = vpop.permute.xlu1 %879 }
 0x1b8   : > { %961 = vst.msk [vmem:[#allocation2 + $0x6f] sm:$0xfe] %vm945_vm12, %v878_v35 }
 0x1b9   : > { %987 = vst.msk [vmem:[#allocation2 + $0x7f] sm:$0x1] %vm979_vm13, %v878_v35  ;;  %897 = vrot.lane.b32.xlu0 %v2456_v26, %s2257_s22  ;;  %899 = vrot.lane.b32.xlu1 %v2467_v27, %s2257_s22 }
 0x1ba   : > { %962 = vst.msk [vmem:[#allocation2 + $0x77] sm:$0xff] %vm947_vm14, %v880_v10 }
 0x1bb   : > { %v1011_v11 = vpop.permute.xlu0 %1010  ;;  %v1076_v36 = vpop.permute.xlu1 %1075 }
 0x1bc   : > { %1052 = vst.msk [vmem:[#allocation2 + $0x69] sm:$0x80] %vm1044_vm15, %v1011_v11 }
 0x1bd   : > { %v1431_v18 = vld [vmem:[#allocation2 + $0x60] sm:$0xff]  ;;  %v1432_v37 = vld [vmem:[#allocation2 + $0x68] sm:$0xff]  ;;  %1126 = vst.msk [vmem:[#allocation2 + $0x79] sm:$0x7f] %vm1111_vm0, %v1011_v11  ;;  %1020 = vrot.lane.b32.xlu0 %v2473_v29, %s2258_s27  ;;  %1085 = vrot.lane.b32.xlu1 %v2470_v28, %s2258_s27 }
 0x1be   : > { %1125 = vst.msk [vmem:[#allocation2 + $0x71] sm:$0xff] %vm1109_vm2, %v1076_v36  ;;  %2185 = vmatprep.mubr.msk.f32.mxu0 %vm1456_vm7, %v1431_v18 }
 0x1bf   : > { %2186 = vmatmul.mubr.msk.f32.gmra.mrb[12].mxu0 %vm1456_vm7, %v1432_v37  ;;  %v655_v26 = vpop.permute.xlu0 %654  ;;  %v1172_v27 = vpop.permute.xlu1 %1171 }
 0x1c0   : > { %704 = vst.msk [vmem:[#allocation2 + $0x81] sm:$0xff] %vm686_vm10, %v655_v26 }
 0x1c1   : > { %1254 = vst.msk [vmem:[#allocation2 + $0x70] sm:$0xff] %vm1239_vm3, %v1172_v27  ;;  %599 = vrot.lane.b32.xlu0 %v2473_v29, %s2255_s20  ;;  %664 = vrot.lane.b32.xlu1 %v2470_v28, %s2255_s20 }
 0x1c3   : > { %v1174_v19 = vpop.permute.xlu0 %1173  ;;  %v753_v38 = vpop.permute.xlu1 %752 }
 0x1c4   : > { %1255 = vst.msk [vmem:[#allocation2 + $0x78] sm:$0xff] %vm1239_vm3, %v1174_v19 }
 0x1c5   : > { %833 = vst.msk [vmem:[#allocation2 + $0x80] sm:$0xff] %vm816_vm11, %v753_v38  ;;  %1191 = vrot.lane.b32.xlu0 %v2470_v28, %s2259_s5  ;;  %1193 = vrot.lane.b32.xlu1 %v2473_v29, %s2259_s5 }
 0x1c7   : > { %v755_v39 = vpop.permute.xlu0 %754  ;;  %v1301_v40 = vpop.permute.xlu1 %1300 }
 0x1c8   : > { %834 = vst.msk [vmem:[#allocation2 + $0x88] sm:$0xff] %vm816_vm11, %v755_v39 }
 0x1c9   : > { %1384 = vst.msk [vmem:[#allocation2 + $0x6f] sm:$0xfe] %vm1368_vm4, %v1301_v40  ;;  %772 = vrot.lane.b32.xlu0 %v2470_v28, %s2256_s21  ;;  %774 = vrot.lane.b32.xlu1 %v2473_v29, %s2256_s21 }
 0x1ca   : > { %1410 = vst.msk [vmem:[#allocation2 + $0x7f] sm:$0x1] %vm1402_vm5, %v1301_v40 }
 0x1cb   : > { %v1303_v4 = vpop.permute.xlu0 %1302  ;;  %v882_v41 = vpop.permute.xlu1 %881 }
 0x1cc   : > { %1385 = vst.msk [vmem:[#allocation2 + $0x77] sm:$0xff] %vm1370_vm6, %v1303_v4 }
 0x1cd   : > { %963 = vst.msk [vmem:[#allocation2 + $0x7f] sm:$0xfe] %vm945_vm12, %v882_v41  ;;  %1320 = vrot.lane.b32.xlu0 %v2470_v28, %s2260_s8  ;;  %1322 = vrot.lane.b32.xlu1 %v2473_v29, %s2260_s8 }
 0x1ce   : > { %988 = vst.msk [vmem:[#allocation2 + $0x8f] sm:$0x1] %vm979_vm13, %v882_v41 }
 0x1cf   : > { %v884_v5 = vpop.permute.xlu0 %883  ;;  %v1013_v42 = vpop.permute.xlu1 %1012 }
 0x1d0   : > { %964 = vst.msk [vmem:[#allocation2 + $0x87] sm:$0xff] %vm947_vm14, %v884_v5 }
 0x1d1   : > { %1053 = vst.msk [vmem:[#allocation2 + $0x79] sm:$0x80] %vm1044_vm15, %v1013_v42  ;;  %901 = vrot.lane.b32.xlu0 %v2470_v28, %s2257_s22  ;;  %903 = vrot.lane.b32.xlu1 %v2473_v29, %s2257_s22 }
 0x1d2   : > { %1128 = vst.msk [vmem:[#allocation2 + $0x89] sm:$0x7f] %vm1111_vm0, %v1013_v42 }
 0x1d3   : > { %v1078_v12 = vpop.permute.xlu0 %1077  ;;  %v657_v13 = vpop.permute.xlu1 %656  ;;  %v1433_v43 = vld [vmem:[#allocation2 + $0x70] sm:$0xff]  ;;  %v1434_v44 = vld [vmem:[#allocation2 + $0x78] sm:$0xff] }
 0x1d4   : > { %1127 = vst.msk [vmem:[#allocation2 + $0x81] sm:$0xff] %vm1109_vm2, %v1078_v12  ;;  %2188 = vmatprep.mubr.msk.f32.mxu0 %vm1456_vm7, %v1433_v43 }
 0x1d5   : > { %706 = vst.msk [vmem:[#allocation2 + $0x91] sm:$0xff] %vm686_vm10, %v657_v13  ;;  %1022 = vrot.lane.b32.xlu0 %v2485_v31, %s2258_s27  ;;  %1087 = vrot.lane.b32.xlu1 %v2482_v30, %s2258_s27 }
 0x1d6   : > { %2189 = vmatmul.mubr.msk.f32.gmra.mrb[14].mxu0 %vm1456_vm7, %v1434_v44 }
 0x1d7   : > { %v1176_v28 = vpop.permute.xlu0 %1175  ;;  %v1178_v29 = vpop.permute.xlu1 %1177 }
 0x1d8   : > { %1256 = vst.msk [vmem:[#allocation2 + $0x80] sm:$0xff] %vm1239_vm3, %v1176_v28  ;;  %1257 = vst.msk [vmem:[#allocation2 + $0x88] sm:$0xff] %vm1239_vm3, %v1178_v29 }
 0x1d9   : > { %601 = vrot.lane.b32.xlu0 %v2485_v31, %s2255_s20  ;;  %666 = vrot.lane.b32.xlu1 %v2482_v30, %s2255_s20 }
 0x1db   : > { %v757_v20 = vpop.permute.xlu0 %756  ;;  %v759_v21 = vpop.permute.xlu1 %758 }
 0x1dc   : > { %835 = vst.msk [vmem:[#allocation2 + $0x90] sm:$0xff] %vm816_vm11, %v757_v20  ;;  %836 = vst.msk [vmem:[#allocation2 + $0x98] sm:$0xff] %vm816_vm11, %v759_v21 }
 0x1dd   : > { %1195 = vrot.lane.b32.xlu0 %v2482_v30, %s2259_s5  ;;  %1197 = vrot.lane.b32.xlu1 %v2485_v31, %s2259_s5 }
 0x1df   : > { %v1305_v45 = vpop.permute.xlu0 %1304  ;;  %v1307_v46 = vpop.permute.xlu1 %1306 }
 0x1e0   : > { %1386 = vst.msk [vmem:[#allocation2 + $0x7f] sm:$0xfe] %vm1368_vm4, %v1305_v45 }
 0x1e1   : > { %1411 = vst.msk [vmem:[#allocation2 + $0x8f] sm:$0x1] %vm1402_vm5, %v1305_v45  ;;  %776 = vrot.lane.b32.xlu0 %v2482_v30, %s2256_s21  ;;  %778 = vrot.lane.b32.xlu1 %v2485_v31, %s2256_s21 }
 0x1e2   : > { %1387 = vst.msk [vmem:[#allocation2 + $0x87] sm:$0xff] %vm1370_vm6, %v1307_v46 }
 0x1e3   : > { %v886_v47 = vpop.permute.xlu0 %885  ;;  %v888_v48 = vpop.permute.xlu1 %887 }
 0x1e4   : > { %965 = vst.msk [vmem:[#allocation2 + $0x8f] sm:$0xfe] %vm945_vm12, %v886_v47 }
 0x1e5   : > { %989 = vst.msk [vmem:[#allocation2 + $0x9f] sm:$0x1] %vm979_vm13, %v886_v47  ;;  %1324 = vrot.lane.b32.xlu0 %v2482_v30, %s2260_s8  ;;  %1326 = vrot.lane.b32.xlu1 %v2485_v31, %s2260_s8 }
 0x1e6   : > { %966 = vst.msk [vmem:[#allocation2 + $0x97] sm:$0xff] %vm947_vm14, %v888_v48 }
 0x1e7   : > { %v1015_v49 = vpop.permute.xlu0 %1014  ;;  %v1080_v50 = vpop.permute.xlu1 %1079 }
 0x1e8   : > { %1054 = vst.msk [vmem:[#allocation2 + $0x89] sm:$0x80] %vm1044_vm15, %v1015_v49 }
 0x1e9   : > { %v1435_v6 = vld [vmem:[#allocation2 + $0x80] sm:$0xff]  ;;  %v1436_v51 = vld [vmem:[#allocation2 + $0x88] sm:$0xff]  ;;  %1130 = vst.msk [vmem:[#allocation2 + $0x99] sm:$0x7f] %vm1111_vm0, %v1015_v49  ;;  %905 = vrot.lane.b32.xlu0 %v2482_v30, %s2257_s22  ;;  %907 = vrot.lane.b32.xlu1 %v2485_v31, %s2257_s22 }
 0x1ea   : > { %1129 = vst.msk [vmem:[#allocation2 + $0x91] sm:$0xff] %vm1109_vm2, %v1080_v50  ;;  %2191 = vmatprep.mubr.msk.f32.mxu1 %vm1456_vm7, %v1435_v6 }
 0x1eb   : > { %2192 = vmatmul.mubr.msk.f32.vlgmr.msra.gmra.mrb[0].mxu1 %vm1456_vm7, %v1436_v51  ;;  %v594_v14 = vpop.permute.xlu0 %593  ;;  %v659_v15 = vpop.permute.xlu1 %658 }
 0x1ec   : > { %632 = vst.msk [vmem:[#allocation2 + $0x99] sm:$0x80] %vm621_vm8, %v594_v14 }
 0x1ed   : > { %709 = vst.msk [vmem:[#allocation2 + $0xa9] sm:$0x7f] %vm688_vm9, %v594_v14  ;;  %1024 = vrot.lane.b32.xlu0 %v2306_v2, %s2258_s27  ;;  %1089 = vrot.lane.b32.xlu1 %v2300_v0, %s2258_s27 }
 0x1ee   : > { %708 = vst.msk [vmem:[#allocation2 + $0xa1] sm:$0xff] %vm686_vm10, %v659_v15 }
 0x1ef   : > { %v1180_v30 = vpop.permute.xlu0 %1179  ;;  %v1182_v7 = vpop.permute.xlu1 %1181 }
 0x1f0   : > { %1258 = vst.msk [vmem:[#allocation2 + $0x90] sm:$0xff] %vm1239_vm3, %v1180_v30  ;;  %1259 = vst.msk [vmem:[#allocation2 + $0x98] sm:$0xff] %vm1239_vm3, %v1182_v7 }
 0x1f1   : > { %603 = vrot.lane.b32.xlu0 %v2306_v2, %s2255_s20  ;;  %668 = vrot.lane.b32.xlu1 %v2300_v0, %s2255_s20 }
 0x1f3   : > { %v761_v31 = vpop.permute.xlu0 %760  ;;  %v763_v52 = vpop.permute.xlu1 %762 }
 0x1f4   : > { %837 = vst.msk [vmem:[#allocation2 + $0xa0] sm:$0xff] %vm816_vm11, %v761_v31  ;;  %838 = vst.msk [vmem:[#allocation2 + $0xa8] sm:$0xff] %vm816_vm11, %v763_v52 }
 0x1f5   : > { %1199 = vrot.lane.b32.xlu0 %v2300_v0, %s2259_s5  ;;  %1201 = vrot.lane.b32.xlu1 %v2306_v2, %s2259_s5 }
 0x1f7   : > { %v1309_v22 = vpop.permute.xlu0 %1308  ;;  %v1311_v53 = vpop.permute.xlu1 %1310 }
 0x1f8   : > { %1388 = vst.msk [vmem:[#allocation2 + $0x8f] sm:$0xfe] %vm1368_vm4, %v1309_v22 }
 0x1f9   : > { %1412 = vst.msk [vmem:[#allocation2 + $0x9f] sm:$0x1] %vm1402_vm5, %v1309_v22  ;;  %780 = vrot.lane.b32.xlu0 %v2300_v0, %s2256_s21  ;;  %782 = vrot.lane.b32.xlu1 %v2306_v2, %s2256_s21 }
 0x1fa   : > { %1389 = vst.msk [vmem:[#allocation2 + $0x97] sm:$0xff] %vm1370_vm6, %v1311_v53 }
 0x1fb   : > { %v890_v23 = vpop.permute.xlu0 %889  ;;  %v892_v54 = vpop.permute.xlu1 %891 }
 0x1fc   : > { %967 = vst.msk [vmem:[#allocation2 + $0x9f] sm:$0xfe] %vm945_vm12, %v890_v23 }
 0x1fd   : > { %990 = vst.msk [vmem:[#allocation2 + $0xaf] sm:$0x1] %vm979_vm13, %v890_v23  ;;  %1328 = vrot.lane.b32.xlu0 %v2300_v0, %s2260_s8  ;;  %1330 = vrot.lane.b32.xlu1 %v2306_v2, %s2260_s8 }
 0x1fe   : > { %968 = vst.msk [vmem:[#allocation2 + $0xa7] sm:$0xff] %vm947_vm14, %v892_v54 }
 0x1ff   : > { %v1017_v55 = vpop.permute.xlu0 %1016  ;;  %v1082_v56 = vpop.permute.xlu1 %1081 }
 0x200   : > { %1055 = vst.msk [vmem:[#allocation2 + $0x99] sm:$0x80] %vm1044_vm15, %v1017_v55 }
 0x201   : > { %v1437_v57 = vld [vmem:[#allocation2 + $0x90] sm:$0xff]  ;;  %v1438_v58 = vld [vmem:[#allocation2 + $0x98] sm:$0xff]  ;;  %1132 = vst.msk [vmem:[#allocation2 + $0xa9] sm:$0x7f] %vm1111_vm0, %v1017_v55  ;;  %909 = vrot.lane.b32.xlu0 %v2300_v0, %s2257_s22  ;;  %911 = vrot.lane.b32.xlu1 %v2306_v2, %s2257_s22 }
 0x202   : > { %1131 = vst.msk [vmem:[#allocation2 + $0xa1] sm:$0xff] %vm1109_vm2, %v1082_v56  ;;  %2194 = vmatprep.mubr.msk.f32.mxu1 %vm1456_vm7, %v1437_v57 }
 0x203   : > { %2195 = vmatmul.mubr.msk.f32.gmra.mrb[2].mxu1 %vm1456_vm7, %v1438_v58  ;;  %v596_v59 = vpop.permute.xlu0 %595  ;;  %v661_v60 = vpop.permute.xlu1 %660 }
 0x204   : > { %633 = vst.msk [vmem:[#allocation2 + $0xa9] sm:$0x80] %vm621_vm8, %v596_v59 }
 0x205   : > { %711 = vst.msk [vmem:[#allocation2 + $0xb9] sm:$0x7f] %vm688_vm9, %v596_v59  ;;  %1026 = vrot.lane.b32.xlu0 %v2313_v3, %s2258_s27  ;;  %1091 = vrot.lane.b32.xlu1 %v2303_v1, %s2258_s27 }
 0x206   : > { %710 = vst.msk [vmem:[#allocation2 + $0xb1] sm:$0xff] %vm686_vm10, %v661_v60 }
 0x207   : > { %v1184_v0 = vpop.permute.xlu0 %1183  ;;  %v1186_v8 = vpop.permute.xlu1 %1185 }
 0x208   : > { %1260 = vst.msk [vmem:[#allocation2 + $0xa0] sm:$0xff] %vm1239_vm3, %v1184_v0  ;;  %1261 = vst.msk [vmem:[#allocation2 + $0xa8] sm:$0xff] %vm1239_vm3, %v1186_v8 }
 0x209   : > { %1203 = vrot.lane.b32.xlu0 %v2303_v1, %s2259_s5  ;;  %1205 = vrot.lane.b32.xlu1 %v2313_v3, %s2259_s5 }
 0x20b   : > { %v765_v2 = vpop.permute.xlu0 %764  ;;  %v767_v9 = vpop.permute.xlu1 %766 }
 0x20c   : > { %839 = vst.msk [vmem:[#allocation2 + $0xb0] sm:$0xff] %vm816_vm11, %v765_v2  ;;  %840 = vst.msk [vmem:[#allocation2 + $0xb8] sm:$0xff] %vm816_vm11, %v767_v9 }
 0x20d   : > { %1332 = vrot.lane.b32.xlu0 %v2303_v1, %s2260_s8  ;;  %1334 = vrot.lane.b32.xlu1 %v2313_v3, %s2260_s8 }
 0x20e   : > { %v2169_v16 = vpop.f32.mrb[0].mxu0 }
 0x20f   : > { %1783 = vst.msk [vmem:[%s3295_s11 + $0x8] sm:$0xff] %vm231_vm1, %v2169_v16  ;;  %v1815_v17 = vsel %vm231_vm1, %v2169_v16, 0.0  ;;  %v1886_v24 = vmul.f32 %v2169_v16, %v2169_v16  ;;  %v1623_v61 = vpop.f32.mrb[1].mxu0  ;;  %v1313_v63 = vpop.permute.xlu0 %1312 }
 0x210   : > { %1782 = vst.msk [vmem:[%s3295_s11] sm:$0xff] %vm231_vm1, %v1623_v61  ;;  %v1814_v25 = vsel %vm231_vm1, %v1623_v61, 0.0  ;;  %v1885_v62 = vmul.f32 %v1623_v61, %v1623_v61  ;;  %v1315_v32 = vpop.permute.xlu1 %1314 }
 0x211   : > { %v1918_v33 = vsel %vm231_vm1, %v1886_v24, 0.0  ;;  %v1816_v34 = vadd.f32 %v1815_v17, %v1814_v25  ;;  %1390 = vst.msk [vmem:[#allocation2 + $0x9f] sm:$0xfe] %vm1368_vm4, %v1313_v63 }
 0x212   : > { %1413 = vst.msk [vmem:[#allocation2 + $0xaf] sm:$0x1] %vm1402_vm5, %v1313_v63  ;;  %v1917_v1 = vsel %vm231_vm1, %v1885_v62, 0.0 }
 0x213   : > { %1391 = vst.msk [vmem:[#allocation2 + $0xa7] sm:$0xff] %vm1370_vm6, %v1315_v32  ;;  %v1919_v3 = vadd.f32 %v1918_v33, %v1917_v1  ;;  %v894_v35 = vpop.permute.xlu0 %893 }
 0x214   : > { %v896_v10 = vpop.permute.xlu1 %895  ;;  %969 = vst.msk [vmem:[#allocation2 + $0xaf] sm:$0xfe] %vm945_vm12, %v894_v35 }
 0x215   : > { %991 = vst.msk [vmem:[#allocation2 + $0xbf] sm:$0x1] %vm979_vm13, %v894_v35 }
 0x216   : > { %970 = vst.msk [vmem:[#allocation2 + $0xb7] sm:$0xff] %vm947_vm14, %v896_v10 }
 0x217   : > { %v1019_v11 = vpop.permute.xlu0 %1018 }
 0x218   : > { %v1084_v36 = vpop.permute.xlu1 %1083  ;;  %1056 = vst.msk [vmem:[#allocation2 + $0xa9] sm:$0x80] %vm1044_vm15, %v1019_v11 }
 0x219   : > { %1134 = vst.msk [vmem:[#allocation2 + $0xb9] sm:$0x7f] %vm1111_vm0, %v1019_v11 }
 0x21a   : > { %v1439_v18 = vld [vmem:[#allocation2 + $0xa0] sm:$0xff]  ;;  %v1440_v37 = vld [vmem:[#allocation2 + $0xa8] sm:$0xff]  ;;  %1133 = vst.msk [vmem:[#allocation2 + $0xb1] sm:$0xff] %vm1109_vm2, %v1084_v36 }
 0x21b   : > { %2197 = vmatprep.mubr.msk.f32.mxu1 %vm1456_vm7, %v1439_v18  ;;  %v598_v26 = vpop.permute.xlu0 %597 }
 0x21c   : > { %2198 = vmatmul.mubr.msk.f32.gmra.mrb[4].mxu1 %vm1456_vm7, %v1440_v37  ;;  %v663_v27 = vpop.permute.xlu1 %662  ;;  %634 = vst.msk [vmem:[#allocation2 + $0xb9] sm:$0x80] %vm621_vm8, %v598_v26 }
 0x21d   : > { %713 = vst.msk [vmem:[#allocation2 + $0xc9] sm:$0x7f] %vm688_vm9, %v598_v26 }
 0x21e   : > { %712 = vst.msk [vmem:[#allocation2 + $0xc1] sm:$0xff] %vm686_vm10, %v663_v27 }
 0x21f   : > { %v1188_v19 = vpop.permute.xlu0 %1187 }
 0x220   : > { %v1190_v38 = vpop.permute.xlu1 %1189  ;;  %1262 = vst.msk [vmem:[#allocation2 + $0xb0] sm:$0xff] %vm1239_vm3, %v1188_v19 }
 0x221   : > { %1263 = vst.msk [vmem:[#allocation2 + $0xb8] sm:$0xff] %vm1239_vm3, %v1190_v38 }
 0x223   : > { %v769_v39 = vpop.permute.xlu0 %768 }
 0x224   : > { %v771_v40 = vpop.permute.xlu1 %770  ;;  %841 = vst.msk [vmem:[#allocation2 + $0xc0] sm:$0xff] %vm816_vm11, %v769_v39 }
 0x225   : > { %842 = vst.msk [vmem:[#allocation2 + $0xc8] sm:$0xff] %vm816_vm11, %v771_v40  ;;  %v2172_v4 = vpop.f32.mrb[2].mxu0 }
 0x226   : > { %1785 = vst.msk [vmem:[%s3295_s11 + $0x18] sm:$0xff] %vm231_vm1, %v2172_v4  ;;  %v1633_v41 = vpop.f32.mrb[3].mxu0  ;;  %v1888_v5 = vmul.f32 %v2172_v4, %v2172_v4  ;;  %v1819_v28 = vsel %vm231_vm1, %v2172_v4, 0.0 }
 0x227   : > { %1784 = vst.msk [vmem:[%s3295_s11 + $0x10] sm:$0xff] %vm231_vm1, %v1633_v41  ;;  %v1817_v42 = vsel %vm231_vm1, %v1633_v41, 0.0  ;;  %v1887_v12 = vmul.f32 %v1633_v41, %v1633_v41  ;;  %v1317_v13 = vpop.permute.xlu0 %1316 }
 0x228   : > { %v1319_v43 = vpop.permute.xlu1 %1318  ;;  %v1818_v44 = vadd.f32 %v1817_v42, %v1816_v34  ;;  %1392 = vst.msk [vmem:[#allocation2 + $0xaf] sm:$0xfe] %vm1368_vm4, %v1317_v13  ;;  %v1922_v45 = vsel %vm231_vm1, %v1888_v5, 0.0 }
 0x229   : > { %1414 = vst.msk [vmem:[#allocation2 + $0xbf] sm:$0x1] %vm1402_vm5, %v1317_v13  ;;  %v1920_v29 = vsel %vm231_vm1, %v1887_v12, 0.0 }
 0x22a   : > { %1393 = vst.msk [vmem:[#allocation2 + $0xb7] sm:$0xff] %vm1370_vm6, %v1319_v43  ;;  %v1921_v20 = vadd.f32 %v1920_v29, %v1919_v3  ;;  %v1820_v21 = vadd.f32 %v1819_v28, %v1818_v44 }
 0x22b   : > { %v898_v46 = vpop.permute.xlu0 %897 }
 0x22c   : > { %v900_v47 = vpop.permute.xlu1 %899  ;;  %971 = vst.msk [vmem:[#allocation2 + $0xbf] sm:$0xfe] %vm945_vm12, %v898_v46  ;;  %v1923_v48 = vadd.f32 %v1922_v45, %v1921_v20 }
 0x22d   : > { %992 = vst.msk [vmem:[#allocation2 + $0xcf] sm:$0x1] %vm979_vm13, %v898_v46 }
 0x22e   : > { %972 = vst.msk [vmem:[#allocation2 + $0xc7] sm:$0xff] %vm947_vm14, %v900_v47 }
 0x22f   : > { %v1021_v49 = vpop.permute.xlu0 %1020 }
 0x230   : > { %v1086_v50 = vpop.permute.xlu1 %1085  ;;  %1057 = vst.msk [vmem:[#allocation2 + $0xb9] sm:$0x80] %vm1044_vm15, %v1021_v49 }
 0x231   : > { %v1441_v6 = vld [vmem:[#allocation2 + $0xb0] sm:$0xff]  ;;  %v1442_v51 = vld [vmem:[#allocation2 + $0xb8] sm:$0xff]  ;;  %1136 = vst.msk [vmem:[#allocation2 + $0xc9] sm:$0x7f] %vm1111_vm0, %v1021_v49 }
 0x232   : > { %1135 = vst.msk [vmem:[#allocation2 + $0xc1] sm:$0xff] %vm1109_vm2, %v1086_v50  ;;  %2200 = vmatprep.mubr.msk.f32.mxu1 %vm1456_vm7, %v1441_v6 }
 0x233   : > { %2201 = vmatmul.mubr.msk.f32.gmra.mrb[6].mxu1 %vm1456_vm7, %v1442_v51  ;;  %v600_v14 = vpop.permute.xlu0 %599 }
 0x234   : > { %v665_v15 = vpop.permute.xlu1 %664  ;;  %635 = vst.msk [vmem:[#allocation2 + $0xc9] sm:$0x80] %vm621_vm8, %v600_v14 }
 0x235   : > { %715 = vst.msk [vmem:[#allocation2 + $0xd9] sm:$0x7f] %vm688_vm9, %v600_v14 }
 0x236   : > { %714 = vst.msk [vmem:[#allocation2 + $0xd1] sm:$0xff] %vm686_vm10, %v665_v15 }
 0x237   : > { %v1192_v30 = vpop.permute.xlu0 %1191 }
 0x238   : > { %v1194_v7 = vpop.permute.xlu1 %1193  ;;  %1264 = vst.msk [vmem:[#allocation2 + $0xc0] sm:$0xff] %vm1239_vm3, %v1192_v30 }
 0x239   : > { %1265 = vst.msk [vmem:[#allocation2 + $0xc8] sm:$0xff] %vm1239_vm3, %v1194_v7 }
 0x23a   : > { %v2175_v31 = vpop.f32.mrb[4].mxu0 }
 0x23b   : > { %1787 = vst.msk [vmem:[%s3295_s11 + $0x28] sm:$0xff] %vm231_vm1, %v2175_v31  ;;  %v1643_v52 = vpop.f32.mrb[5].mxu0  ;;  %v1890_v22 = vmul.f32 %v2175_v31, %v2175_v31  ;;  %v773_v54 = vpop.permute.xlu0 %772  ;;  %v1823_v57 = vsel %vm231_vm1, %v2175_v31, 0.0 }
 0x23c   : > { %1786 = vst.msk [vmem:[%s3295_s11 + $0x20] sm:$0xff] %vm231_vm1, %v1643_v52  ;;  %v1821_v53 = vsel %vm231_vm1, %v1643_v52, 0.0  ;;  %v1889_v23 = vmul.f32 %v1643_v52, %v1643_v52  ;;  %v775_v55 = vpop.permute.xlu1 %774 }
 0x23d   : > { %v1822_v56 = vadd.f32 %v1821_v53, %v1820_v21  ;;  %843 = vst.msk [vmem:[#allocation2 + $0xd0] sm:$0xff] %vm816_vm11, %v773_v54  ;;  %844 = vst.msk [vmem:[#allocation2 + $0xd8] sm:$0xff] %vm816_vm11, %v775_v55  ;;  %v1926_v0 = vsel %vm231_vm1, %v1890_v22, 0.0 }
 0x23e   : > { %v1924_v58 = vsel %vm231_vm1, %v1889_v23, 0.0 }
 0x23f   : > { %v1925_v59 = vadd.f32 %v1924_v58, %v1923_v48  ;;  %v1824_v60 = vadd.f32 %v1823_v57, %v1822_v56  ;;  %v1321_v8 = vpop.permute.xlu0 %1320 }
 0x240   : > { %v1323_v2 = vpop.permute.xlu1 %1322  ;;  %1394 = vst.msk [vmem:[#allocation2 + $0xbf] sm:$0xfe] %vm1368_vm4, %v1321_v8 }
 0x241   : > { %1415 = vst.msk [vmem:[#allocation2 + $0xcf] sm:$0x1] %vm1402_vm5, %v1321_v8  ;;  %v1927_v9 = vadd.f32 %v1926_v0, %v1925_v59 }
 0x242   : > { %1395 = vst.msk [vmem:[#allocation2 + $0xc7] sm:$0xff] %vm1370_vm6, %v1323_v2 }
 0x243   : > { %v902_v16 = vpop.permute.xlu0 %901 }
 0x244   : > { %v904_v17 = vpop.permute.xlu1 %903  ;;  %973 = vst.msk [vmem:[#allocation2 + $0xcf] sm:$0xfe] %vm945_vm12, %v902_v16 }
 0x245   : > { %993 = vst.msk [vmem:[#allocation2 + $0xdf] sm:$0x1] %vm979_vm13, %v902_v16 }
 0x246   : > { %974 = vst.msk [vmem:[#allocation2 + $0xd7] sm:$0xff] %vm947_vm14, %v904_v17 }
 0x247   : > { %v1023_v24 = vpop.permute.xlu0 %1022 }
 0x248   : > { %v1088_v61 = vpop.permute.xlu1 %1087  ;;  %1058 = vst.msk [vmem:[#allocation2 + $0xc9] sm:$0x80] %vm1044_vm15, %v1023_v24 }
 0x249   : > { %v1443_v25 = vld [vmem:[#allocation2 + $0xc0] sm:$0xff]  ;;  %v1444_v62 = vld [vmem:[#allocation2 + $0xc8] sm:$0xff]  ;;  %1138 = vst.msk [vmem:[#allocation2 + $0xd9] sm:$0x7f] %vm1111_vm0, %v1023_v24 }
 0x24a   : > { %1137 = vst.msk [vmem:[#allocation2 + $0xd1] sm:$0xff] %vm1109_vm2, %v1088_v61  ;;  %2203 = vmatprep.mubr.msk.f32.mxu1 %vm1456_vm7, %v1443_v25 }
 0x24b   : > { %2204 = vmatmul.mubr.msk.f32.gmra.mrb[8].mxu1 %vm1456_vm7, %v1444_v62  ;;  %v602_v63 = vpop.permute.xlu0 %601 }
 0x24c   : > { %v667_v32 = vpop.permute.xlu1 %666  ;;  %636 = vst.msk [vmem:[#allocation2 + $0xd9] sm:$0x80] %vm621_vm8, %v602_v63 }
 0x24d   : > { %717 = vst.msk [vmem:[#allocation2 + $0xe9] sm:$0x7f] %vm688_vm9, %v602_v63 }
 0x24e   : > { %716 = vst.msk [vmem:[#allocation2 + $0xe1] sm:$0xff] %vm686_vm10, %v667_v32 }
 0x24f   : > { %v1196_v33 = vpop.permute.xlu0 %1195 }
 0x250   : > { %v1198_v34 = vpop.permute.xlu1 %1197  ;;  %1266 = vst.msk [vmem:[#allocation2 + $0xd0] sm:$0xff] %vm1239_vm3, %v1196_v33 }
 0x251   : > { %1267 = vst.msk [vmem:[#allocation2 + $0xd8] sm:$0xff] %vm1239_vm3, %v1198_v34  ;;  %v2178_v1 = vpop.f32.mrb[6].mxu0 }
 0x252   : > { %1789 = vst.msk [vmem:[%s3295_s11 + $0x38] sm:$0xff] %vm231_vm1, %v2178_v1  ;;  %v1653_v3 = vpop.f32.mrb[7].mxu0  ;;  %v1892_v35 = vmul.f32 %v2178_v1, %v2178_v1  ;;  %v1827_v26 = vsel %vm231_vm1, %v2178_v1, 0.0 }
 0x253   : > { %1788 = vst.msk [vmem:[%s3295_s11 + $0x30] sm:$0xff] %vm231_vm1, %v1653_v3  ;;  %v1825_v10 = vsel %vm231_vm1, %v1653_v3, 0.0  ;;  %v1891_v11 = vmul.f32 %v1653_v3, %v1653_v3  ;;  %v777_v36 = vpop.permute.xlu0 %776 }
 0x254   : > { %v779_v18 = vpop.permute.xlu1 %778  ;;  %v1826_v37 = vadd.f32 %v1825_v10, %v1824_v60  ;;  %845 = vst.msk [vmem:[#allocation2 + $0xe0] sm:$0xff] %vm816_vm11, %v777_v36  ;;  %v1930_v39 = vsel %vm231_vm1, %v1892_v35, 0.0 }
 0x255   : > { %846 = vst.msk [vmem:[#allocation2 + $0xe8] sm:$0xff] %vm816_vm11, %v779_v18  ;;  %v1928_v27 = vsel %vm231_vm1, %v1891_v11, 0.0 }
 0x256   : > { %v1929_v19 = vadd.f32 %v1928_v27, %v1927_v9  ;;  %v1828_v38 = vadd.f32 %v1827_v26, %v1826_v37 }
 0x257   : > { %v1325_v40 = vpop.permute.xlu0 %1324 }
 0x258   : > { %v1327_v4 = vpop.permute.xlu1 %1326  ;;  %1396 = vst.msk [vmem:[#allocation2 + $0xcf] sm:$0xfe] %vm1368_vm4, %v1325_v40  ;;  %v1931_v41 = vadd.f32 %v1930_v39, %v1929_v19 }
 0x259   : > { %1416 = vst.msk [vmem:[#allocation2 + $0xdf] sm:$0x1] %vm1402_vm5, %v1325_v40 }
 0x25a   : > { %1397 = vst.msk [vmem:[#allocation2 + $0xd7] sm:$0xff] %vm1370_vm6, %v1327_v4 }
 0x25b   : > { %v906_v5 = vpop.permute.xlu0 %905 }
 0x25c   : > { %v908_v42 = vpop.permute.xlu1 %907  ;;  %975 = vst.msk [vmem:[#allocation2 + $0xdf] sm:$0xfe] %vm945_vm12, %v906_v5 }
 0x25d   : > { %994 = vst.msk [vmem:[#allocation2 + $0xef] sm:$0x1] %vm979_vm13, %v906_v5 }
 0x25e   : > { %976 = vst.msk [vmem:[#allocation2 + $0xe7] sm:$0xff] %vm947_vm14, %v908_v42 }
 0x25f   : > { %v1025_v12 = vpop.permute.xlu0 %1024 }
 0x260   : > { %v1090_v13 = vpop.permute.xlu1 %1089  ;;  %1059 = vst.msk [vmem:[#allocation2 + $0xd9] sm:$0x80] %vm1044_vm15, %v1025_v12 }
 0x261   : > { %v1445_v43 = vld [vmem:[#allocation2 + $0xd0] sm:$0xff]  ;;  %v1446_v44 = vld [vmem:[#allocation2 + $0xd8] sm:$0xff]  ;;  %1140 = vst.msk [vmem:[#allocation2 + $0xe9] sm:$0x7f] %vm1111_vm0, %v1025_v12 }
 0x262   : > { %1139 = vst.msk [vmem:[#allocation2 + $0xe1] sm:$0xff] %vm1109_vm2, %v1090_v13  ;;  %2206 = vmatprep.mubr.msk.f32.mxu1 %vm1456_vm7, %v1445_v43 }
 0x263   : > { %2207 = vmatmul.mubr.msk.f32.gmra.mrb[10].mxu1 %vm1456_vm7, %v1446_v44  ;;  %v604_v28 = vpop.permute.xlu0 %603 }
 0x264   : > { %v669_v29 = vpop.permute.xlu1 %668  ;;  %637 = vst.msk [vmem:[#allocation2 + $0xe9] sm:$0x80] %vm621_vm8, %v604_v28  ;;  %vm1883_vm8 = vcmask 24576  }
 0x265   : > { %719 = vst.msk [vmem:[#allocation2 + $0xf9] sm:$0x7f] %vm688_vm9, %v604_v28 }
 0x266   : > { %718 = vst.msk [vmem:[#allocation2 + $0xf1] sm:$0xff] %vm686_vm10, %v669_v29  ;;  %v2181_v20 = vpop.f32.mrb[8].mxu0 }
 0x267   : > { %1791 = vst.msk [vmem:[%s3295_s11 + $0x48] sm:$0xff] %vm231_vm1, %v2181_v20  ;;  %v1663_v21 = vpop.f32.mrb[9].mxu0  ;;  %v1894_v45 = vmul.f32 %v2181_v20, %v2181_v20  ;;  %v1200_v48 = vpop.permute.xlu0 %1199  ;;  %v1831_v6 = vsel %vm231_vm1, %v2181_v20, 0.0 }
 0x268   : > { %1790 = vst.msk [vmem:[%s3295_s11 + $0x40] sm:$0xff] %vm231_vm1, %v1663_v21  ;;  %v1829_v46 = vsel %vm231_vm1, %v1663_v21, 0.0  ;;  %v1893_v47 = vmul.f32 %v1663_v21, %v1663_v21  ;;  %v1202_v49 = vpop.permute.xlu1 %1201 }
 0x269   : > { %v1830_v50 = vadd.f32 %v1829_v46, %v1828_v38  ;;  %1268 = vst.msk [vmem:[#allocation2 + $0xe0] sm:$0xff] %vm1239_vm3, %v1200_v48  ;;  %1269 = vst.msk [vmem:[#allocation2 + $0xe8] sm:$0xff] %vm1239_vm3, %v1202_v49  ;;  %v1934_v30 = vsel %vm231_vm1, %v1894_v45, 0.0 }
 0x26a   : > { %v1932_v51 = vsel %vm231_vm1, %v1893_v47, 0.0 }
 0x26b   : > { %v1933_v14 = vadd.f32 %v1932_v51, %v1931_v41  ;;  %v1832_v15 = vadd.f32 %v1831_v6, %v1830_v50  ;;  %v781_v7 = vpop.permute.xlu0 %780 }
 0x26c   : > { %v783_v31 = vpop.permute.xlu1 %782  ;;  %847 = vst.msk [vmem:[#allocation2 + $0xf0] sm:$0xff] %vm816_vm11, %v781_v7 }
 0x26d   : > { %848 = vst.msk [vmem:[#allocation2 + $0xf8] sm:$0xff] %vm816_vm11, %v783_v31  ;;  %v1935_v52 = vadd.f32 %v1934_v30, %v1933_v14 }
 0x26f   : > { %v1329_v22 = vpop.permute.xlu0 %1328 }
 0x270   : > { %v1331_v53 = vpop.permute.xlu1 %1330  ;;  %1398 = vst.msk [vmem:[#allocation2 + $0xdf] sm:$0xfe] %vm1368_vm4, %v1329_v22 }
 0x271   : > { %1417 = vst.msk [vmem:[#allocation2 + $0xef] sm:$0x1] %vm1402_vm5, %v1329_v22 }
 0x272   : > { %1399 = vst.msk [vmem:[#allocation2 + $0xe7] sm:$0xff] %vm1370_vm6, %v1331_v53 }
 0x273   : > { %v910_v23 = vpop.permute.xlu0 %909 }
 0x274   : > { %v912_v54 = vpop.permute.xlu1 %911  ;;  %977 = vst.msk [vmem:[#allocation2 + $0xef] sm:$0xfe] %vm945_vm12, %v910_v23 }
 0x275   : > { %995 = vst.msk [vmem:[#allocation2 + $0xff] sm:$0x1] %vm979_vm13, %v910_v23 }
 0x276   : > { %978 = vst.msk [vmem:[#allocation2 + $0xf7] sm:$0xff] %vm947_vm14, %v912_v54 }
 0x277   : > { %v1027_v55 = vpop.permute.xlu0 %1026 }
 0x278   : > { %v1092_v56 = vpop.permute.xlu1 %1091  ;;  %1060 = vst.msk [vmem:[#allocation2 + $0xe9] sm:$0x80] %vm1044_vm15, %v1027_v55 }
 0x279   : > { %v1447_v57 = vld [vmem:[#allocation2 + $0xe0] sm:$0xff]  ;;  %v1448_v58 = vld [vmem:[#allocation2 + $0xe8] sm:$0xff]  ;;  %1142 = vst.msk [vmem:[#allocation2 + $0xf9] sm:$0x7f] %vm1111_vm0, %v1027_v55 }
 0x27a   : > { %1141 = vst.msk [vmem:[#allocation2 + $0xf1] sm:$0xff] %vm1109_vm2, %v1092_v56  ;;  %2209 = vmatprep.mubr.msk.f32.mxu1 %vm1456_vm7, %v1447_v57 }
 0x27b   : > { %2210 = vmatmul.mubr.msk.f32.gmra.mrb[12].mxu1 %vm1456_vm7, %v1448_v58  ;;  %v1204_v59 = vpop.permute.xlu0 %1203 }
 0x27c   : > { %v1206_v60 = vpop.permute.xlu1 %1205  ;;  %1270 = vst.msk [vmem:[#allocation2 + $0xf0] sm:$0xff] %vm1239_vm3, %v1204_v59 }
 0x27d   : > { %1271 = vst.msk [vmem:[#allocation2 + $0xf8] sm:$0xff] %vm1239_vm3, %v1206_v60  ;;  %v2184_v0 = vpop.f32.mrb[10].mxu0 }
 0x27e   : > { %1793 = vst.msk [vmem:[%s3295_s11 + $0x58] sm:$0xff] %vm231_vm1, %v2184_v0  ;;  %v1673_v8 = vpop.f32.mrb[11].mxu0  ;;  %v1896_v2 = vmul.f32 %v2184_v0, %v2184_v0  ;;  %v1835_v25 = vsel %vm231_vm1, %v2184_v0, 0.0 }
 0x27f   : > { %1792 = vst.msk [vmem:[%s3295_s11 + $0x50] sm:$0xff] %vm231_vm1, %v1673_v8  ;;  %v1833_v9 = vsel %vm231_vm1, %v1673_v8, 0.0  ;;  %v1895_v16 = vmul.f32 %v1673_v8, %v1673_v8  ;;  %v1333_v17 = vpop.permute.xlu0 %1332 }
 0x280   : > { %v1335_v24 = vpop.permute.xlu1 %1334  ;;  %v1834_v61 = vadd.f32 %v1833_v9, %v1832_v15  ;;  %1400 = vst.msk [vmem:[#allocation2 + $0xef] sm:$0xfe] %vm1368_vm4, %v1333_v17  ;;  %v1938_v33 = vsel %vm231_vm1, %v1896_v2, 0.0 }
 0x281   : > { %1418 = vst.msk [vmem:[#allocation2 + $0xff] sm:$0x1] %vm1402_vm5, %v1333_v17  ;;  %v1936_v62 = vsel %vm231_vm1, %v1895_v16, 0.0 }
 0x282   : > { %1401 = vst.msk [vmem:[#allocation2 + $0xf7] sm:$0xff] %vm1370_vm6, %v1335_v24  ;;  %v1937_v63 = vadd.f32 %v1936_v62, %v1935_v52  ;;  %v1836_v32 = vadd.f32 %v1835_v25, %v1834_v61 }
 0x284   : > { %v1939_v34 = vadd.f32 %v1938_v33, %v1937_v63 }
 0x289   : > { %v1449_v1 = vld [vmem:[#allocation2 + $0xf0] sm:$0xff]  ;;  %v1450_v3 = vld [vmem:[#allocation2 + $0xf8] sm:$0xff] }
 0x28a   : > { %2212 = vmatprep.mubr.msk.f32.mxu1 %vm1456_vm7, %v1449_v1 }
 0x28b   : > { %2213 = vmatmul.mubr.msk.f32.gmra.mrb[14].mxu1 %vm1456_vm7, %v1450_v3 }
 0x292   : > { %v2187_v35 = vpop.f32.mrb[12].mxu0 }
 0x293   : > { %1795 = vst.msk [vmem:[%s3295_s11 + $0x68] sm:$0xff] %vm231_vm1, %v2187_v35  ;;  %v1683_v10 = vpop.f32.mrb[13].mxu0  ;;  %v1898_v11 = vmul.f32 %v2187_v35, %v2187_v35  ;;  %v1839_v26 = vsel %vm231_vm1, %v2187_v35, 0.0 }
 0x294   : > { %1794 = vst.msk [vmem:[%s3295_s11 + $0x60] sm:$0xff] %vm231_vm1, %v1683_v10  ;;  %v1837_v36 = vsel %vm231_vm1, %v1683_v10, 0.0  ;;  %v1897_v18 = vmul.f32 %v1683_v10, %v1683_v10 }
 0x295   : > { %v1838_v37 = vadd.f32 %v1837_v36, %v1836_v32  ;;  %v1942_v39 = vsel %vm231_vm1, %v1898_v11, 0.0 }
 0x296   : > { %v1940_v27 = vsel %vm231_vm1, %v1897_v18, 0.0 }
 0x297   : > { %v1941_v19 = vadd.f32 %v1940_v27, %v1939_v34  ;;  %v1840_v38 = vadd.f32 %v1839_v26, %v1838_v37 }
 0x299   : > { %v1943_v40 = vadd.f32 %v1942_v39, %v1941_v19 }
 0x2a9   : > { %v2190_v4 = vpop.f32.mrb[14].mxu0 }
 0x2aa   : > { %1797 = vst.msk [vmem:[%s3295_s11 + $0x78] sm:$0xff] %vm231_vm1, %v2190_v4  ;;  %v1693_v41 = vpop.f32.mrb[15].mxu0  ;;  %v1900_v5 = vmul.f32 %v2190_v4, %v2190_v4  ;;  %v1843_v43 = vsel %vm231_vm1, %v2190_v4, 0.0 }
 0x2ab   : > { %1796 = vst.msk [vmem:[%s3295_s11 + $0x70] sm:$0xff] %vm231_vm1, %v1693_v41  ;;  %v1841_v42 = vsel %vm231_vm1, %v1693_v41, 0.0  ;;  %v1899_v12 = vmul.f32 %v1693_v41, %v1693_v41 }
 0x2ac   : > { %v1842_v13 = vadd.f32 %v1841_v42, %v1840_v38  ;;  %v1946_v20 = vsel %vm231_vm1, %v1900_v5, 0.0 }
 0x2ad   : > { %v1944_v44 = vsel %vm231_vm1, %v1899_v12, 0.0 }
 0x2ae   : > { %v1844_v28 = vadd.f32 %v1843_v43, %v1842_v13  ;;  %v1945_v29 = vadd.f32 %v1944_v44, %v1943_v40 }
 0x2b0   : > { %v1947_v21 = vadd.f32 %v1946_v20, %v1945_v29 }
 0x2be   : > { %v2193_v45 = vpop.f32.mrb[0].mxu1 }
 0x2bf   : > { %1799 = vst.msk [vmem:[%s3295_s11 + $0x88] sm:$0xff] %vm231_vm1, %v2193_v45  ;;  %v1703_v46 = vpop.f32.mrb[1].mxu1  ;;  %v1902_v47 = vmul.f32 %v2193_v45, %v2193_v45  ;;  %v1847_v6 = vsel %vm231_vm1, %v2193_v45, 0.0 }
 0x2c0   : > { %1798 = vst.msk [vmem:[%s3295_s11 + $0x80] sm:$0xff] %vm231_vm1, %v1703_v46  ;;  %v1845_v48 = vsel %vm231_vm1, %v1703_v46, 0.0  ;;  %v1901_v49 = vmul.f32 %v1703_v46, %v1703_v46 }
 0x2c1   : > { %v1846_v50 = vadd.f32 %v1845_v48, %v1844_v28  ;;  %v1950_v30 = vsel %vm231_vm1, %v1902_v47, 0.0 }
 0x2c2   : > { %v1948_v51 = vsel %vm231_vm1, %v1901_v49, 0.0 }
 0x2c3   : > { %v1949_v14 = vadd.f32 %v1948_v51, %v1947_v21  ;;  %v1848_v15 = vadd.f32 %v1847_v6, %v1846_v50 }
 0x2c5   : > { %v1951_v7 = vadd.f32 %v1950_v30, %v1949_v14 }
 0x2d6   : > { %v2196_v31 = vpop.f32.mrb[2].mxu1 }
 0x2d7   : > { %1801 = vst.msk [vmem:[%s3295_s11 + $0x98] sm:$0xff] %vm231_vm1, %v2196_v31  ;;  %v1713_v52 = vpop.f32.mrb[3].mxu1  ;;  %v1904_v22 = vmul.f32 %v2196_v31, %v2196_v31  ;;  %v1851_v55 = vsel %vm231_vm1, %v2196_v31, 0.0 }
 0x2d8   : > { %1800 = vst.msk [vmem:[%s3295_s11 + $0x90] sm:$0xff] %vm231_vm1, %v1713_v52  ;;  %v1849_v53 = vsel %vm231_vm1, %v1713_v52, 0.0  ;;  %v1903_v23 = vmul.f32 %v1713_v52, %v1713_v52 }
 0x2d9   : > { %v1850_v54 = vadd.f32 %v1849_v53, %v1848_v15  ;;  %v1954_v59 = vsel %vm231_vm1, %v1904_v22, 0.0 }
 0x2da   : > { %v1952_v56 = vsel %vm231_vm1, %v1903_v23, 0.0 }
 0x2db   : > { %v1953_v57 = vadd.f32 %v1952_v56, %v1951_v7  ;;  %v1852_v58 = vadd.f32 %v1851_v55, %v1850_v54 }
 0x2dd   : > { %v1955_v60 = vadd.f32 %v1954_v59, %v1953_v57 }
 0x2ef   : > { %v2199_v0 = vpop.f32.mrb[4].mxu1 }
 0x2f0   : > { %1803 = vst.msk [vmem:[%s3295_s11 + $0xa8] sm:$0xff] %vm231_vm1, %v2199_v0  ;;  %v1723_v8 = vpop.f32.mrb[5].mxu1  ;;  %v1906_v2 = vmul.f32 %v2199_v0, %v2199_v0  ;;  %v1855_v24 = vsel %vm231_vm1, %v2199_v0, 0.0 }
 0x2f1   : > { %1802 = vst.msk [vmem:[%s3295_s11 + $0xa0] sm:$0xff] %vm231_vm1, %v1723_v8  ;;  %v1853_v9 = vsel %vm231_vm1, %v1723_v8, 0.0  ;;  %v1905_v16 = vmul.f32 %v1723_v8, %v1723_v8 }
 0x2f2   : > { %v1854_v17 = vadd.f32 %v1853_v9, %v1852_v58  ;;  %v1958_v63 = vsel %vm231_vm1, %v1906_v2, 0.0 }
 0x2f3   : > { %v1956_v61 = vsel %vm231_vm1, %v1905_v16, 0.0 }
 0x2f4   : > { %v1957_v25 = vadd.f32 %v1956_v61, %v1955_v60  ;;  %v1856_v62 = vadd.f32 %v1855_v24, %v1854_v17 }
 0x2f6   : > { %v1959_v32 = vadd.f32 %v1958_v63, %v1957_v25 }
 0x306   : > { %v2202_v33 = vpop.f32.mrb[6].mxu1 }
 0x307   : > { %1805 = vst.msk [vmem:[%s3295_s11 + $0xb8] sm:$0xff] %vm231_vm1, %v2202_v33  ;;  %v1733_v34 = vpop.f32.mrb[7].mxu1  ;;  %v1908_v1 = vmul.f32 %v2202_v33, %v2202_v33  ;;  %v1859_v11 = vsel %vm231_vm1, %v2202_v33, 0.0 }
 0x308   : > { %1804 = vst.msk [vmem:[%s3295_s11 + $0xb0] sm:$0xff] %vm231_vm1, %v1733_v34  ;;  %v1857_v3 = vsel %vm231_vm1, %v1733_v34, 0.0  ;;  %v1907_v35 = vmul.f32 %v1733_v34, %v1733_v34 }
 0x309   : > { %v1858_v10 = vadd.f32 %v1857_v3, %v1856_v62  ;;  %v1962_v26 = vsel %vm231_vm1, %v1908_v1, 0.0 }
 0x30a   : > { %v1960_v36 = vsel %vm231_vm1, %v1907_v35, 0.0 }
 0x30b   : > { %v1961_v18 = vadd.f32 %v1960_v36, %v1959_v32  ;;  %v1860_v37 = vadd.f32 %v1859_v11, %v1858_v10 }
 0x30d   : > { %v1963_v27 = vadd.f32 %v1962_v26, %v1961_v18 }
 0x31e   : > { %v2205_v19 = vpop.f32.mrb[8].mxu1 }
 0x31f   : > { %1807 = vst.msk [vmem:[%s3295_s11 + $0xc8] sm:$0xff] %vm231_vm1, %v2205_v19  ;;  %v1743_v38 = vpop.f32.mrb[9].mxu1  ;;  %v1910_v39 = vmul.f32 %v2205_v19, %v2205_v19  ;;  %v1863_v5 = vsel %vm231_vm1, %v2205_v19, 0.0 }
 0x320   : > { %1806 = vst.msk [vmem:[%s3295_s11 + $0xc0] sm:$0xff] %vm231_vm1, %v1743_v38  ;;  %v1861_v40 = vsel %vm231_vm1, %v1743_v38, 0.0  ;;  %v1909_v4 = vmul.f32 %v1743_v38, %v1743_v38 }
 0x321   : > { %v1862_v41 = vadd.f32 %v1861_v40, %v1860_v37  ;;  %v1966_v43 = vsel %vm231_vm1, %v1910_v39, 0.0 }
 0x322   : > { %v1964_v42 = vsel %vm231_vm1, %v1909_v4, 0.0 }
 0x323   : > { %v1965_v12 = vadd.f32 %v1964_v42, %v1963_v27  ;;  %v1864_v13 = vadd.f32 %v1863_v5, %v1862_v41 }
 0x325   : > { %v1967_v44 = vadd.f32 %v1966_v43, %v1965_v12 }
 0x336   : > { %v2208_v28 = vpop.f32.mrb[10].mxu1 }
 0x337   : > { %1809 = vst.msk [vmem:[%s3295_s11 + $0xd8] sm:$0xff] %vm231_vm1, %v2208_v28  ;;  %v1753_v29 = vpop.f32.mrb[11].mxu1  ;;  %v1912_v20 = vmul.f32 %v2208_v28, %v2208_v28  ;;  %v1867_v47 = vsel %vm231_vm1, %v2208_v28, 0.0 }
 0x338   : > { %1808 = vst.msk [vmem:[%s3295_s11 + $0xd0] sm:$0xff] %vm231_vm1, %v1753_v29  ;;  %v1865_v21 = vsel %vm231_vm1, %v1753_v29, 0.0  ;;  %v1911_v45 = vmul.f32 %v1753_v29, %v1753_v29 }
 0x339   : > { %v1866_v46 = vadd.f32 %v1865_v21, %v1864_v13  ;;  %v1970_v6 = vsel %vm231_vm1, %v1912_v20, 0.0 }
 0x33a   : > { %v1968_v48 = vsel %vm231_vm1, %v1911_v45, 0.0 }
 0x33b   : > { %v1969_v49 = vadd.f32 %v1968_v48, %v1967_v44  ;;  %v1868_v50 = vadd.f32 %v1867_v47, %v1866_v46 }
 0x33d   : > { %v1971_v51 = vadd.f32 %v1970_v6, %v1969_v49 }
 0x34e   : > { %v2211_v14 = vpop.f32.mrb[12].mxu1 }
 0x34f   : > { %1811 = vst.msk [vmem:[%s3295_s11 + $0xe8] sm:$0xff] %vm231_vm1, %v2211_v14  ;;  %v1763_v15 = vpop.f32.mrb[13].mxu1  ;;  %v1914_v30 = vmul.f32 %v2211_v14, %v2211_v14  ;;  %v1871_v22 = vsel %vm231_vm1, %v2211_v14, 0.0 }
 0x350   : > { %1810 = vst.msk [vmem:[%s3295_s11 + $0xe0] sm:$0xff] %vm231_vm1, %v1763_v15  ;;  %v1869_v7 = vsel %vm231_vm1, %v1763_v15, 0.0  ;;  %v1913_v31 = vmul.f32 %v1763_v15, %v1763_v15 }
 0x351   : > { %v1870_v52 = vadd.f32 %v1869_v7, %v1868_v50  ;;  %v1974_v55 = vsel %vm231_vm1, %v1914_v30, 0.0 }
 0x352   : > { %v1972_v53 = vsel %vm231_vm1, %v1913_v31, 0.0 }
 0x353   : > { %v1973_v23 = vadd.f32 %v1972_v53, %v1971_v51  ;;  %v1872_v54 = vadd.f32 %v1871_v22, %v1870_v52 }
 0x355   : > { %v1975_v56 = vadd.f32 %v1974_v55, %v1973_v23 }
 0x35e   : > { %v2214_v57 = vpop.f32.mrb[14].mxu1 }
 0x35f   : > { %1813 = vst.msk [vmem:[%s3295_s11 + $0xf8] sm:$0xff] %vm231_vm1, %v2214_v57  ;;  %v1773_v58 = vpop.f32.mrb[15].mxu1  ;;  %v1916_v59 = vmul.f32 %v2214_v57, %v2214_v57  ;;  %v1875_v2 = vsel %vm231_vm1, %v2214_v57, 0.0 }
 0x360   : > { %1812 = vst.msk [vmem:[%s3295_s11 + $0xf0] sm:$0xff] %vm231_vm1, %v1773_v58  ;;  %v1873_v60 = vsel %vm231_vm1, %v1773_v58, 0.0  ;;  %v1915_v0 = vmul.f32 %v1773_v58, %v1773_v58 }
 0x361   : > { %v1874_v8 = vadd.f32 %v1873_v60, %v1872_v54  ;;  %v1978_v24 = vsel %vm231_vm1, %v1916_v59, 0.0 }
 0x362   : > { %v1976_v9 = vsel %vm231_vm1, %v1915_v0, 0.0 }
 0x363   : > { %v1876_v16 = vadd.f32 %v1875_v2, %v1874_v8  ;;  %v1977_v17 = vadd.f32 %v1976_v9, %v1975_v56 }
 0x365   : > { %v1877_v61 = vrot.slane %v1876_v16, 4  ;;  %v1979_v25 = vadd.f32 %v1978_v24, %v1977_v17 }
 0x367   : > { %v1878_v62 = vadd.f32 %v1877_v61, %v1876_v16  ;;  %v1980_v63 = vrot.slane %v1979_v25, 4 }
 0x369   : > { %v1879_v32 = vrot.slane %v1878_v62, 2  ;;  %v1981_v33 = vadd.f32 %v1980_v63, %v1979_v25 }
 0x36b   : > { %v1880_v34 = vadd.f32 %v1879_v32, %v1878_v62  ;;  %v1982_v1 = vrot.slane %v1981_v33, 2 }
 0x36d   : > { %v1881_v3 = vrot.slane %v1880_v34, 1  ;;  %v1983_v35 = vadd.f32 %v1982_v1, %v1981_v33 }
 0x36f   : > { %v1882_v10 = vadd.f32 %v1881_v3, %v1880_v34  ;;  %v1984_v11 = vrot.slane %v1983_v35, 1 }
 0x371   : > { %1884 = vst.msk [vmem:[%s181_s17] sm:$0x1] %vm1883_vm8, %v1882_v10  ;;  %v1985_v36 = vadd.f32 %v1984_v11, %v1983_v35 }
 0x373   : > { %1986 = vst.msk [vmem:[%s181_s17 + $0x1] sm:$0x1] %vm1883_vm8, %v1985_v36 }
 0x374 PF: > { %s14_s12 = sadd.s32 1, %s2251_s12  }
 0x375   : > { %p11_p4 = scmp.ge.s32.totalorder %s14_s12, 4  }
 0x377   :  { %13 = sbr.rel (!%p11_p4) target bundleno = 1 (0x1), region = 70 }

// kernel: resblock_forward.4
= control target key start
LH: loop header
LB: loop body
LE: loop exit
PB: predicated region body
PF: predicated region fallthrough
CT: control target
= control target key end

     0   :  { %s2457_s18 = smov 0   ;;  %s3778_s0 = inlined_call_operand.vmem [shape: f32[2,16,16,4], index: 0, kind: input, shape index: {}]   ;;  %s3779_s1 = inlined_call_operand.vmem [shape: f32[1,4], index: 1, kind: input, shape index: {}]   ;;  %s3780_s2 = inlined_call_operand.vmem [shape: f32[1,4], index: 2, kind: input, shape index: {}]   ;;  %s3781_s3 = inlined_call_operand.vmem [shape: f32[36,4], index: 3, kind: input, shape index: {}]   ;;  %s3782_s4 = inlined_call_operand.vmem [shape: f32[2,16,16,4], index: 4, kind: output, shape index: {0}]   ;;  %s3783_s5 = inlined_call_operand.vmem [shape: f32[2,2,4], index: 5, kind: output, shape index: {1}]  }
   0x1 LB: > { %s2237_s19 = sadd.s32 4294967295, %s2417_s18   ;;  %p2241_p0 = scmp.ge.s32.totalorder %s2417_s18, 1  ;;  %s2417_s18 = sphi %s2457_s18, %s16_s18  }
   0x2   : > { %p190_p1 = scmp.lt.s32.totalorder %s2417_s18, 3 }
   0x4   : > { %p191_p2 = pnand %p2241_p0, %p190_p1 }
   0x5   : > { %p222_p3 = scmp.lt.s32.totalorder (!%p191_p2), %s2237_s19, 1  ;;  %v2471_v0 = vld [vmem:[%s3779_s1] ss:$0 sm:$0xff] (!%p191_p2)  ;;  %vm378_vm0 = vcmask (!%p191_p2), 31751   ;;  %vm395_vm1 = vcmask (!%p191_p2), 31744   ;;  %vm397_vm2 = vcmask (!%p191_p2), 30720  }
   0x6   : > { %194 = sbr.rel (%p191_p2) target bundleno = 890 (0x37a), region = 36  ;;  %v2483_v1 = vld [vmem:[%s3780_s2] ss:$0 sm:$0xff] (!%p191_p2)  ;;  %s2419_s28 = smov (!%p191_p2), 4   ;;  %vm557_vm3 = vcmask (!%p191_p2), 64544   ;;  %vm1717_vm4 = vcmask (!%p191_p2), 1043456  }
   0x7   : > { %s2420_s29 = smov (!%p191_p2), 8   ;;  %s2421_s30 = smov (!%p191_p2), 12   ;;  %vm686_vm5 = vcmask (!%p191_p2), 97345   ;;  %vm720_vm6 = vcmask (!%p191_p2), 90176   ;;  %vm688_vm7 = vcmask (!%p191_p2), 97344   ;;  %vm785_vm8 = vcmask (!%p191_p2), 130151  }
   0x8   : > { %s2422_s6 = smov (!%p191_p2), 16   ;;  %s2423_s7 = smov (!%p191_p2), 20   ;;  %vm852_vm9 = vcmask (!%p191_p2), 129120   ;;  %vm850_vm10 = vcmask (!%p191_p2), 130144   ;;  %vm980_vm11 = vcmask (!%p191_p2), 162944   ;;  %vm1109_vm12 = vcmask (!%p191_p2), 195745  }
   0x9   : > { %s2424_s12 = smov (!%p191_p2), 24   ;;  %s2425_s17 = smov (!%p191_p2), 28   ;;  %vm1143_vm13 = vcmask (!%p191_p2), 188576   ;;  %vm1111_vm14 = vcmask (!%p191_p2), 195744   ;;  %vm1208_vm15 = vcmask (!%p191_p2), 228551  }
   0xa   : > { %s2426_s23 = smov (!%p191_p2), 32  }
   0xd   : > { %s3785_s19 = smov (!%p222_p3, %s2237_s19), 1 }
   0xe   : > { %s2284_s20 = sshll.u32 %s3785_s19, 8 }
   0xf   : > { %s2478_s25 = scalar_lea.vmem %s3778_s0, %s2284_s20  ;;  %s3545_s26 = scalar_lea.vmem %s3782_s4, %s2284_s20 }
  0x10   : > { %v266_v2 = vld [vmem:[%s2478_s25 + $0xf0] sm:$0xff]  ;;  %v236_v3 = vld [vmem:[%s2478_s25] sm:$0xff]  ;;  %v267_v4 = vld [vmem:[%s2478_s25 + $0xf8] sm:$0xff]  ;;  %s2246_s20 = sshll.u32 %s3785_s19, 1 }
  0x11   : > { %v305_v5 = vmul.f32 %v2471_v0, %v266_v2  ;;  %v275_v6 = vmul.f32 %v2471_v0, %v236_v3  ;;  %v306_v7 = vmul.f32 %v2471_v0, %v267_v4  ;;  %v237_v8 = vld [vmem:[%s2478_s25 + $0x8] sm:$0xff]  ;;  %v238_v9 = vld [vmem:[%s2478_s25 + $0x10] sm:$0xff]  ;;  %v239_v10 = vld [vmem:[%s2478_s25 + $0x18] sm:$0xff] }
  0x12   : > { %v276_v11 = vmul.f32 %v2471_v0, %v237_v8  ;;  %v277_v12 = vmul.f32 %v2471_v0, %v238_v9  ;;  %v278_v13 = vmul.f32 %v2471_v0, %v239_v10  ;;  %v240_v14 = vld [vmem:[%s2478_s25 + $0x20] sm:$0xff]  ;;  %v241_v15 = vld [vmem:[%s2478_s25 + $0x28] sm:$0xff]  ;;  %v242_v24 = vld [vmem:[%s2478_s25 + $0x30] sm:$0xff] }
  0x13   : > { %v344_v16 = vadd.f32 %v2483_v1, %v305_v5  ;;  %v314_v17 = vadd.f32 %v2483_v1, %v275_v6  ;;  %v345_v18 = vadd.f32 %v2483_v1, %v306_v7  ;;  %v279_v19 = vmul.f32 %v2471_v0, %v240_v14  ;;  %v243_v25 = vld [vmem:[%s2478_s25 + $0x38] sm:$0xff]  ;;  %v244_v26 = vld [vmem:[%s2478_s25 + $0x40] sm:$0xff]  ;;  %v245_v31 = vld [vmem:[%s2478_s25 + $0x48] sm:$0xff] }
  0x14   : > { %v315_v20 = vadd.f32 %v2483_v1, %v276_v11  ;;  %v316_v21 = vadd.f32 %v2483_v1, %v277_v12  ;;  %v317_v22 = vadd.f32 %v2483_v1, %v278_v13  ;;  %v280_v23 = vmul.f32 %v2471_v0, %v241_v15  ;;  %v246_v32 = vld [vmem:[%s2478_s25 + $0x50] sm:$0xff]  ;;  %v247_v33 = vld [vmem:[%s2478_s25 + $0x58] sm:$0xff]  ;;  %v248_v38 = vld [vmem:[%s2478_s25 + $0x60] sm:$0xff] }
  0x15   : > { %v2510_v27 = vmax.f32 %v344_v16, 0.0  ;;  %v2512_v28 = vmax.f32 %v314_v17, 0.0  ;;  %v2514_v29 = vmax.f32 %v345_v18, 0.0  ;;  %v318_v30 = vadd.f32 %v2483_v1, %v279_v19  ;;  %v249_v43 = vld [vmem:[%s2478_s25 + $0x68] sm:$0xff]  ;;  %v250_v52 = vld [vmem:[%s2478_s25 + $0x70] sm:$0xff]  ;;  %v251_v57 = vld [vmem:[%s2478_s25 + $0x78] sm:$0xff] }
  0x16   : > { %v2520_v34 = vmax.f32 %v315_v20, 0.0  ;;  %v2522_v35 = vmax.f32 %v316_v21, 0.0  ;;  %v2524_v36 = vmax.f32 %v317_v22, 0.0  ;;  %v319_v37 = vadd.f32 %v2483_v1, %v280_v23  ;;  %v252_v58 = vld [vmem:[%s2478_s25 + $0x80] sm:$0xff]  ;;  %v253_v59 = vld [vmem:[%s2478_s25 + $0x88] sm:$0xff]  ;;  %v254_v2 = vld [vmem:[%s2478_s25 + $0x90] sm:$0xff] }
  0x17   : > { %461 = vrot.lane.b32.xlu0 %v2510_v27, %s2419_s28  ;;  %465 = vrot.lane.b32.xlu1 %v2512_v28, %s2419_s28  ;;  %v2532_v39 = vmax.f32 %v318_v30, 0.0  ;;  %v281_v40 = vmul.f32 %v2471_v0, %v242_v24  ;;  %v282_v41 = vmul.f32 %v2471_v0, %v243_v25  ;;  %v283_v42 = vmul.f32 %v2471_v0, %v244_v26  ;;  %v255_v3 = vld [vmem:[%s2478_s25 + $0x98] sm:$0xff]  ;;  %v256_v12 = vld [vmem:[%s2478_s25 + $0xa0] sm:$0xff] }
  0x18   : > { %379 = vst.msk [vmem:[#allocation2 - $0x7] sm:$0x80] %vm378_vm0, %v2514_v29  ;;  %v2546_v44 = vmax.f32 %v319_v37, 0.0  ;;  %v284_v45 = vmul.f32 %v2471_v0, %v245_v31  ;;  %v285_v46 = vmul.f32 %v2471_v0, %v246_v32  ;;  %v286_v47 = vmul.f32 %v2471_v0, %v247_v33  ;;  %380 = vst.msk [vmem:[#allocation2 + $0x9] sm:$0x80] %vm378_vm0, %v2520_v34  ;;  %v257_v17 = vld [vmem:[%s2478_s25 + $0xa8] sm:$0xff] }
  0x19   : > { %396 = vst.msk [vmem:[#allocation2 + $0x1] sm:$0xff] %vm395_vm1, %v2510_v27  ;;  %399 = vst.msk [vmem:[#allocation2 + $0x11] sm:$0xff] %vm395_vm1, %v2512_v28  ;;  %v320_v48 = vadd.f32 %v2483_v1, %v281_v40  ;;  %v321_v49 = vadd.f32 %v2483_v1, %v282_v41  ;;  %v322_v50 = vadd.f32 %v2483_v1, %v283_v42  ;;  %v258_v25 = vld [vmem:[%s2478_s25 + $0xb0] sm:$0xff]  ;;  %v259_v26 = vld [vmem:[%s2478_s25 + $0xb8] sm:$0xff] }
  0x1a   : > { %398 = vst.msk [vmem:[#allocation2 + $0x9] sm:$0x7f] %vm397_vm2, %v2514_v29  ;;  %400 = vst.msk [vmem:[#allocation2 + $0x19] sm:$0x7f] %vm397_vm2, %v2520_v34  ;;  %v287_v51 = vmul.f32 %v2471_v0, %v248_v38  ;;  %v323_v53 = vadd.f32 %v2483_v1, %v284_v45  ;;  %v324_v54 = vadd.f32 %v2483_v1, %v285_v46  ;;  %v260_v37 = vld [vmem:[%s2478_s25 + $0xc0] sm:$0xff]  ;;  %v261_v38 = vld [vmem:[%s2478_s25 + $0xc8] sm:$0xff] }
  0x1b   : > { %381 = vst.msk [vmem:[#allocation2 + $0x19] sm:$0x80] %vm378_vm0, %v2524_v36  ;;  %v325_v55 = vadd.f32 %v2483_v1, %v286_v47  ;;  %v288_v56 = vmul.f32 %v2471_v0, %v249_v43  ;;  %382 = vst.msk [vmem:[#allocation2 + $0x29] sm:$0x80] %vm378_vm0, %v2546_v44  ;;  %463 = vrot.lane.b32.xlu0 %v2514_v29, %s2419_s28  ;;  %467 = vrot.lane.b32.xlu1 %v2520_v34, %s2419_s28  ;;  %v2583_v60 = vmax.f32 %v320_v48, 0.0  ;;  %v262_v40 = vld [vmem:[%s2478_s25 + $0xd0] sm:$0xff] }
  0x1c   : > { %401 = vst.msk [vmem:[#allocation2 + $0x21] sm:$0xff] %vm395_vm1, %v2522_v35  ;;  %403 = vst.msk [vmem:[#allocation2 + $0x31] sm:$0xff] %vm395_vm1, %v2532_v39  ;;  %v2585_v61 = vmax.f32 %v321_v49, 0.0  ;;  %v2587_v62 = vmax.f32 %v322_v50, 0.0  ;;  %v326_v63 = vadd.f32 %v2483_v1, %v287_v51  ;;  %v2592_v4 = vmax.f32 %v323_v53, 0.0  ;;  %v263_v46 = vld [vmem:[%s2478_s25 + $0xd8] sm:$0xff] }
  0x1d   : > { %402 = vst.msk [vmem:[#allocation2 + $0x29] sm:$0x7f] %vm397_vm2, %v2524_v36  ;;  %404 = vst.msk [vmem:[#allocation2 + $0x39] sm:$0x7f] %vm397_vm2, %v2546_v44  ;;  %v2594_v5 = vmax.f32 %v324_v54, 0.0  ;;  %v2596_v6 = vmax.f32 %v325_v55, 0.0  ;;  %v327_v7 = vadd.f32 %v2483_v1, %v288_v56  ;;  %v289_v9 = vmul.f32 %v2471_v0, %v250_v52 }
  0x1e   : > { %v2599_v8 = vmax.f32 %v326_v63, 0.0  ;;  %v290_v10 = vmul.f32 %v2471_v0, %v251_v57  ;;  %v291_v11 = vmul.f32 %v2471_v0, %v252_v58  ;;  %383 = vst.msk [vmem:[#allocation2 + $0x39] sm:$0x80] %vm378_vm0, %v2585_v61  ;;  %v292_v14 = vmul.f32 %v2471_v0, %v253_v59  ;;  %384 = vst.msk [vmem:[#allocation2 + $0x49] sm:$0x80] %vm378_vm0, %v2592_v4  ;;  %v264_v50 = vld [vmem:[%s2478_s25 + $0xe0] sm:$0xff] }
  0x1f   : > { %405 = vst.msk [vmem:[#allocation2 + $0x41] sm:$0xff] %vm395_vm1, %v2583_v60  ;;  %407 = vst.msk [vmem:[#allocation2 + $0x51] sm:$0xff] %vm395_vm1, %v2587_v62  ;;  %v2613_v13 = vmax.f32 %v327_v7, 0.0  ;;  %v293_v15 = vmul.f32 %v2471_v0, %v254_v2  ;;  %v294_v16 = vmul.f32 %v2471_v0, %v255_v3  ;;  %469 = vrot.lane.b32.xlu0 %v2522_v35, %s2419_s28  ;;  %471 = vrot.lane.b32.xlu1 %v2524_v36, %s2419_s28  ;;  %v265_v55 = vld [vmem:[%s2478_s25 + $0xe8] sm:$0xff] }
  0x20   : > { %406 = vst.msk [vmem:[#allocation2 + $0x49] sm:$0x7f] %vm397_vm2, %v2585_v61  ;;  %408 = vst.msk [vmem:[#allocation2 + $0x59] sm:$0x7f] %vm397_vm2, %v2592_v4  ;;  %v328_v18 = vadd.f32 %v2483_v1, %v289_v9  ;;  %v329_v19 = vadd.f32 %v2483_v1, %v290_v10  ;;  %v330_v20 = vadd.f32 %v2483_v1, %v291_v11 }
  0x21   : > { %385 = vst.msk [vmem:[#allocation2 + $0x59] sm:$0x80] %vm378_vm0, %v2596_v6  ;;  %v331_v21 = vadd.f32 %v2483_v1, %v292_v14  ;;  %v332_v22 = vadd.f32 %v2483_v1, %v293_v15  ;;  %v333_v23 = vadd.f32 %v2483_v1, %v294_v16  ;;  %v295_v24 = vmul.f32 %v2471_v0, %v256_v12 }
  0x22   : > { %409 = vst.msk [vmem:[#allocation2 + $0x61] sm:$0xff] %vm395_vm1, %v2594_v5  ;;  %411 = vst.msk [vmem:[#allocation2 + $0x71] sm:$0xff] %vm395_vm1, %v2599_v8  ;;  %v2648_v30 = vmax.f32 %v328_v18, 0.0  ;;  %v2650_v31 = vmax.f32 %v329_v19, 0.0  ;;  %v2652_v32 = vmax.f32 %v330_v20, 0.0  ;;  %v296_v33 = vmul.f32 %v2471_v0, %v257_v17 }
  0x23   : > { %410 = vst.msk [vmem:[#allocation2 + $0x69] sm:$0x7f] %vm397_vm2, %v2596_v6  ;;  %412 = vst.msk [vmem:[#allocation2 + $0x79] sm:$0x7f] %vm397_vm2, %v2613_v13  ;;  %v2658_v41 = vmax.f32 %v331_v21, 0.0  ;;  %v2660_v42 = vmax.f32 %v332_v22, 0.0  ;;  %v334_v45 = vadd.f32 %v2483_v1, %v295_v24  ;;  %473 = vrot.lane.b32.xlu0 %v2532_v39, %s2419_s28  ;;  %475 = vrot.lane.b32.xlu1 %v2546_v44, %s2419_s28 }
  0x24   : > { %386 = vst.msk [vmem:[#allocation2 + $0x69] sm:$0x80] %vm378_vm0, %v2613_v13  ;;  %v2662_v43 = vmax.f32 %v333_v23, 0.0  ;;  %v335_v47 = vadd.f32 %v2483_v1, %v296_v33  ;;  %v297_v48 = vmul.f32 %v2471_v0, %v258_v25  ;;  %v298_v49 = vmul.f32 %v2471_v0, %v259_v26  ;;  %387 = vst.msk [vmem:[#allocation2 + $0x79] sm:$0x80] %vm378_vm0, %v2650_v31 }
  0x25   : > { %413 = vst.msk [vmem:[#allocation2 + $0x81] sm:$0xff] %vm395_vm1, %v2648_v30  ;;  %415 = vst.msk [vmem:[#allocation2 + $0x91] sm:$0xff] %vm395_vm1, %v2652_v32  ;;  %v2682_v51 = vmax.f32 %v334_v45, 0.0  ;;  %v299_v52 = vmul.f32 %v2471_v0, %v260_v37  ;;  %v300_v53 = vmul.f32 %v2471_v0, %v261_v38  ;;  %v301_v54 = vmul.f32 %v2471_v0, %v262_v40 }
  0x26   : > { %414 = vst.msk [vmem:[#allocation2 + $0x89] sm:$0x7f] %vm397_vm2, %v2650_v31  ;;  %416 = vst.msk [vmem:[#allocation2 + $0x99] sm:$0x7f] %vm397_vm2, %v2658_v41  ;;  %v2698_v56 = vmax.f32 %v335_v47, 0.0  ;;  %v336_v57 = vadd.f32 %v2483_v1, %v297_v48  ;;  %v337_v58 = vadd.f32 %v2483_v1, %v298_v49  ;;  %v302_v59 = vmul.f32 %v2471_v0, %v263_v46 }
  0x27   : > { %388 = vst.msk [vmem:[#allocation2 + $0x89] sm:$0x80] %vm378_vm0, %v2658_v41  ;;  %389 = vst.msk [vmem:[#allocation2 + $0x99] sm:$0x80] %vm378_vm0, %v2662_v43  ;;  %v338_v63 = vadd.f32 %v2483_v1, %v299_v52  ;;  %v339_v2 = vadd.f32 %v2483_v1, %v300_v53  ;;  %v340_v3 = vadd.f32 %v2483_v1, %v301_v54  ;;  %477 = vrot.lane.b32.xlu0 %v2583_v60, %s2419_s28 }
  0x28   : > { %417 = vst.msk [vmem:[#allocation2 + $0xa1] sm:$0xff] %vm395_vm1, %v2660_v42  ;;  %v303_v7 = vmul.f32 %v2471_v0, %v264_v50  ;;  %419 = vst.msk [vmem:[#allocation2 + $0xb1] sm:$0xff] %vm395_vm1, %v2682_v51  ;;  %479 = vrot.lane.b32.xlu1 %v2585_v61, %s2419_s28  ;;  %v2713_v9 = vmax.f32 %v336_v57, 0.0  ;;  %v2715_v10 = vmax.f32 %v337_v58, 0.0  ;;  %v341_v11 = vadd.f32 %v2483_v1, %v302_v59  ;;  %v1615_v58 = vld [vmem:[%s3781_s3] sm:$0xff]  ;;  %v1616_v59 = vld [vmem:[%s3781_s3 + $0x8] sm:$0xff] }
  0x29   : > { %418 = vst.msk [vmem:[#allocation2 + $0xa9] sm:$0x7f] %vm397_vm2, %v2662_v43  ;;  %v304_v12 = vmul.f32 %v2471_v0, %v265_v55  ;;  %420 = vst.msk [vmem:[#allocation2 + $0xb9] sm:$0x7f] %vm397_vm2, %v2698_v56  ;;  %v2723_v14 = vmax.f32 %v338_v63, 0.0  ;;  %v2725_v15 = vmax.f32 %v339_v2, 0.0  ;;  %v2381_v63 = vpack.c.bf16 %v1616_v59, %v1615_v58 }
  0x2a   : > { %390 = vst.msk [vmem:[#allocation2 + $0xa9] sm:$0x80] %vm378_vm0, %v2698_v56  ;;  %v2727_v16 = vmax.f32 %v340_v3, 0.0  ;;  %v342_v17 = vadd.f32 %v2483_v1, %v303_v7  ;;  %v2730_v18 = vmax.f32 %v341_v11, 0.0  ;;  %391 = vst.msk [vmem:[#allocation2 + $0xb9] sm:$0x80] %vm378_vm0, %v2715_v10 }
  0x2b   : > { %v343_v19 = vadd.f32 %v2483_v1, %v304_v12  ;;  %421 = vst.msk [vmem:[#allocation2 + $0xc1] sm:$0xff] %vm395_vm1, %v2713_v9  ;;  %423 = vst.msk [vmem:[#allocation2 + $0xd1] sm:$0xff] %vm395_vm1, %v2723_v14  ;;  %481 = vrot.lane.b32.xlu0 %v2587_v62, %s2419_s28  ;;  %2382 = vmatprep.subr.bf16.mxu0 %v2381_v63  ;;  %v1617_v7 = vld [vmem:[%s3781_s3 + $0x10] sm:$0xff]  ;;  %v1618_v11 = vld [vmem:[%s3781_s3 + $0x18] sm:$0xff] }
  0x2c   : > { %422 = vst.msk [vmem:[#allocation2 + $0xc9] sm:$0x7f] %vm397_vm2, %v2715_v10  ;;  %v2739_v0 = vmax.f32 %v342_v17, 0.0  ;;  %424 = vst.msk [vmem:[#allocation2 + $0xd9] sm:$0x7f] %vm397_vm2, %v2725_v15  ;;  %483 = vrot.lane.b32.xlu1 %v2592_v4, %s2419_s28  ;;  %2389 = vmatprep.subr.bf16.mxu1 %v2381_v63  ;;  %v2385_v12 = vpack.c.bf16 %v1618_v11, %v1617_v7 }
  0x2d   : > { %392 = vst.msk [vmem:[#allocation2 + $0xc9] sm:$0x80] %vm378_vm0, %v2725_v15  ;;  %v2753_v1 = vmax.f32 %v343_v19, 0.0  ;;  %393 = vst.msk [vmem:[#allocation2 + $0xd9] sm:$0x80] %vm378_vm0, %v2730_v18  ;;  %2384 = vmatpush3.bf16.msra.mxu0 %v2381_v63  ;;  %2392 = vmatpush3.bf16.msra.mxu1 %v2381_v63 }
  0x2e   : > { %425 = vst.msk [vmem:[#allocation2 + $0xe1] sm:$0xff] %vm395_vm1, %v2727_v16  ;;  %427 = vst.msk [vmem:[#allocation2 + $0xf1] sm:$0xff] %vm395_vm1, %v2739_v0  ;;  %2386 = vmatprep.subr.bf16.mxu0 %v2385_v12  ;;  %2390 = vmatprep.subr.bf16.mxu1 %v2385_v12 }
  0x2f   : > { %426 = vst.msk [vmem:[#allocation2 + $0xe9] sm:$0x7f] %vm397_vm2, %v2730_v18  ;;  %428 = vst.msk [vmem:[#allocation2 + $0xf9] sm:$0x7f] %vm397_vm2, %v2753_v1  ;;  %485 = vrot.lane.b32.xlu0 %v2594_v5, %s2419_s28  ;;  %vm1273_vm2 = vcmask 228544  }
  0x30   : > { %394 = vst.msk [vmem:[#allocation2 + $0xe9] sm:$0x80] %vm378_vm0, %v2753_v1  ;;  %487 = vrot.lane.b32.xlu1 %v2596_v6, %s2419_s28  ;;  %vm1275_vm0 = vcmask 227520  }
  0x31   : > { %2388 = vmatpush3.bf16.msra.mxu0 %v2385_v12  ;;  %2393 = vmatpush3.bf16.msra.mxu1 %v2385_v12 }
  0x33   : > { %489 = vrot.lane.b32.xlu0 %v2599_v8, %s2419_s28 }
  0x34   : > { %491 = vrot.lane.b32.xlu1 %v2613_v13, %s2419_s28 }
  0x37   : > { %493 = vrot.lane.b32.xlu0 %v2648_v30, %s2419_s28 }
  0x38   : > { %495 = vrot.lane.b32.xlu1 %v2650_v31, %s2419_s28 }
  0x3b   : > { %497 = vrot.lane.b32.xlu0 %v2652_v32, %s2419_s28 }
  0x3c   : > { %499 = vrot.lane.b32.xlu1 %v2658_v41, %s2419_s28 }
  0x3f   : > { %501 = vrot.lane.b32.xlu0 %v2660_v42, %s2419_s28 }
  0x40   : > { %503 = vrot.lane.b32.xlu1 %v2662_v43, %s2419_s28 }
  0x43   : > { %505 = vrot.lane.b32.xlu0 %v2682_v51, %s2419_s28 }
  0x44   : > { %507 = vrot.lane.b32.xlu1 %v2698_v56, %s2419_s28 }
  0x47   : > { %509 = vrot.lane.b32.xlu0 %v2713_v9, %s2419_s28 }
  0x48   : > { %511 = vrot.lane.b32.xlu1 %v2715_v10, %s2419_s28 }
  0x4b   : > { %513 = vrot.lane.b32.xlu0 %v2723_v14, %s2419_s28 }
  0x4c   : > { %515 = vrot.lane.b32.xlu1 %v2725_v15, %s2419_s28 }
  0x4f   : > { %517 = vrot.lane.b32.xlu0 %v2727_v16, %s2419_s28 }
  0x50   : > { %519 = vrot.lane.b32.xlu1 %v2730_v18, %s2419_s28 }
  0x53   : > { %521 = vrot.lane.b32.xlu0 %v2739_v0, %s2419_s28 }
  0x54   : > { %523 = vrot.lane.b32.xlu1 %v2753_v1, %s2419_s28 }
  0x57   : > { %590 = vrot.lane.b32.xlu0 %v2510_v27, %s2420_s29 }
  0x58   : > { %592 = vrot.lane.b32.xlu1 %v2514_v29, %s2420_s29 }
  0x5b   : > { %594 = vrot.lane.b32.xlu0 %v2512_v28, %s2420_s29 }
  0x5c   : > { %596 = vrot.lane.b32.xlu1 %v2520_v34, %s2420_s29 }
  0x5f   : > { %598 = vrot.lane.b32.xlu0 %v2522_v35, %s2420_s29 }
  0x60   : > { %600 = vrot.lane.b32.xlu1 %v2524_v36, %s2420_s29 }
  0x63   : > { %602 = vrot.lane.b32.xlu0 %v2532_v39, %s2420_s29 }
  0x64   : > { %604 = vrot.lane.b32.xlu1 %v2546_v44, %s2420_s29 }
  0x67   : > { %606 = vrot.lane.b32.xlu0 %v2583_v60, %s2420_s29 }
  0x68   : > { %608 = vrot.lane.b32.xlu1 %v2585_v61, %s2420_s29 }
  0x6b   : > { %610 = vrot.lane.b32.xlu0 %v2587_v62, %s2420_s29 }
  0x6c   : > { %612 = vrot.lane.b32.xlu1 %v2592_v4, %s2420_s29 }
  0x6f   : > { %614 = vrot.lane.b32.xlu0 %v2594_v5, %s2420_s29 }
  0x70   : > { %616 = vrot.lane.b32.xlu1 %v2596_v6, %s2420_s29 }
  0x73   : > { %618 = vrot.lane.b32.xlu0 %v2599_v8, %s2420_s29 }
  0x74   : > { %620 = vrot.lane.b32.xlu1 %v2613_v13, %s2420_s29 }
  0x77   : > { %622 = vrot.lane.b32.xlu0 %v2648_v30, %s2420_s29 }
  0x78   : > { %624 = vrot.lane.b32.xlu1 %v2650_v31, %s2420_s29 }
  0x7b   : > { %626 = vrot.lane.b32.xlu0 %v2652_v32, %s2420_s29 }
  0x7c   : > { %628 = vrot.lane.b32.xlu1 %v2658_v41, %s2420_s29 }
  0x7f   : > { %630 = vrot.lane.b32.xlu0 %v2660_v42, %s2420_s29 }
  0x80   : > { %632 = vrot.lane.b32.xlu1 %v2662_v43, %s2420_s29 }
  0x83   : > { %634 = vrot.lane.b32.xlu0 %v2682_v51, %s2420_s29 }
  0x84   : > { %636 = vrot.lane.b32.xlu1 %v2698_v56, %s2420_s29 }
  0x87   : > { %638 = vrot.lane.b32.xlu0 %v2713_v9, %s2420_s29 }
  0x88   : > { %640 = vrot.lane.b32.xlu1 %v2715_v10, %s2420_s29 }
  0x89   : > { %v462_v20 = vpop.permute.xlu0 %461  ;;  %v466_v21 = vpop.permute.xlu1 %465 }
  0x8a   : > { %558 = vst.msk [vmem:[#allocation2] sm:$0xff] %vm557_vm3, %v462_v20  ;;  %560 = vst.msk [vmem:[#allocation2 + $0x10] sm:$0xff] %vm557_vm3, %v466_v21  ;;  %v1619_v20 = vld [vmem:[%s3781_s3 + $0x20] sm:$0xf] }
  0x8b   : > { %642 = vrot.lane.b32.xlu0 %v2723_v14, %s2420_s29  ;;  %2331 = vmatprep.subr.msk.mxu0 %vm1717_vm4, %v1619_v20 }
  0x8c   : > { %644 = vrot.lane.b32.xlu1 %v2725_v15, %s2420_s29  ;;  %2391 = vmatprep.subr.msk.mxu1 %vm1717_vm4, %v1619_v20 }
  0x8d   : > { %v464_v22 = vpop.permute.xlu0 %463  ;;  %v468_v23 = vpop.permute.xlu1 %467  ;;  %2332 = vmatpush3.msk.msra.mxu0 %vm1717_vm4, %v1619_v20  ;;  %2394 = vmatpush3.msk.msra.mxu1 %vm1717_vm4, %v1619_v20  ;;  %vm1532_vm4 = vcmask 294145  }
  0x8e   : > { %559 = vst.msk [vmem:[#allocation2 + $0x8] sm:$0xff] %vm557_vm3, %v464_v22  ;;  %561 = vst.msk [vmem:[#allocation2 + $0x18] sm:$0xff] %vm557_vm3, %v468_v23 }
  0x8f   : > { %646 = vrot.lane.b32.xlu0 %v2727_v16, %s2420_s29 }
  0x90   : > { %648 = vrot.lane.b32.xlu1 %v2730_v18, %s2420_s29 }
  0x91   : > { %v470_v24 = vpop.permute.xlu0 %469  ;;  %v472_v25 = vpop.permute.xlu1 %471 }
  0x92   : > { %562 = vst.msk [vmem:[#allocation2 + $0x20] sm:$0xff] %vm557_vm3, %v470_v24  ;;  %563 = vst.msk [vmem:[#allocation2 + $0x28] sm:$0xff] %vm557_vm3, %v472_v25 }
  0x93   : > { %650 = vrot.lane.b32.xlu0 %v2739_v0, %s2420_s29 }
  0x94   : > { %652 = vrot.lane.b32.xlu1 %v2753_v1, %s2420_s29  ;;  %s235_s29 = scalar_lea.vmem %s3783_s5, %s2246_s20 }
  0x95   : > { %v474_v26 = vpop.permute.xlu0 %473  ;;  %v476_v33 = vpop.permute.xlu1 %475 }
  0x96   : > { %564 = vst.msk [vmem:[#allocation2 + $0x30] sm:$0xff] %vm557_vm3, %v474_v26  ;;  %565 = vst.msk [vmem:[#allocation2 + $0x38] sm:$0xff] %vm557_vm3, %v476_v33 }
  0x97   : > { %737 = vrot.lane.b32.xlu0 %v2520_v34, %s2421_s30 }
  0x98   : > { %739 = vrot.lane.b32.xlu1 %v2524_v36, %s2421_s30 }
  0x99   : > { %v478_v37 = vpop.permute.xlu0 %477 }
  0x9a   : > { %v480_v38 = vpop.permute.xlu1 %479  ;;  %566 = vst.msk [vmem:[#allocation2 + $0x40] sm:$0xff] %vm557_vm3, %v478_v37 }
  0x9b   : > { %567 = vst.msk [vmem:[#allocation2 + $0x48] sm:$0xff] %vm557_vm3, %v480_v38  ;;  %741 = vrot.lane.b32.xlu0 %v2546_v44, %s2421_s30 }
  0x9c   : > { %743 = vrot.lane.b32.xlu1 %v2585_v61, %s2421_s30 }
  0x9d   : > { %v482_v40 = vpop.permute.xlu0 %481 }
  0x9e   : > { %v484_v45 = vpop.permute.xlu1 %483  ;;  %568 = vst.msk [vmem:[#allocation2 + $0x50] sm:$0xff] %vm557_vm3, %v482_v40 }
  0x9f   : > { %569 = vst.msk [vmem:[#allocation2 + $0x58] sm:$0xff] %vm557_vm3, %v484_v45  ;;  %745 = vrot.lane.b32.xlu0 %v2592_v4, %s2421_s30 }
  0xa0   : > { %747 = vrot.lane.b32.xlu1 %v2596_v6, %s2421_s30 }
  0xa1   : > { %v486_v46 = vpop.permute.xlu0 %485 }
  0xa2   : > { %v488_v47 = vpop.permute.xlu1 %487  ;;  %570 = vst.msk [vmem:[#allocation2 + $0x60] sm:$0xff] %vm557_vm3, %v486_v46 }
  0xa3   : > { %571 = vst.msk [vmem:[#allocation2 + $0x68] sm:$0xff] %vm557_vm3, %v488_v47  ;;  %749 = vrot.lane.b32.xlu0 %v2613_v13, %s2421_s30 }
  0xa4   : > { %751 = vrot.lane.b32.xlu1 %v2650_v31, %s2421_s30 }
  0xa5   : > { %v490_v48 = vpop.permute.xlu0 %489 }
  0xa6   : > { %v492_v49 = vpop.permute.xlu1 %491  ;;  %572 = vst.msk [vmem:[#allocation2 + $0x70] sm:$0xff] %vm557_vm3, %v490_v48 }
  0xa7   : > { %573 = vst.msk [vmem:[#allocation2 + $0x78] sm:$0xff] %vm557_vm3, %v492_v49  ;;  %753 = vrot.lane.b32.xlu0 %v2658_v41, %s2421_s30 }
  0xa8   : > { %755 = vrot.lane.b32.xlu1 %v2662_v43, %s2421_s30 }
  0xa9   : > { %v494_v50 = vpop.permute.xlu0 %493 }
  0xaa   : > { %v496_v52 = vpop.permute.xlu1 %495  ;;  %574 = vst.msk [vmem:[#allocation2 + $0x80] sm:$0xff] %vm557_vm3, %v494_v50 }
  0xab   : > { %575 = vst.msk [vmem:[#allocation2 + $0x88] sm:$0xff] %vm557_vm3, %v496_v52  ;;  %802 = vrot.lane.b32.xlu0 %v2512_v28, %s2421_s30 }
  0xac   : > { %884 = vrot.lane.b32.xlu1 %v2512_v28, %s2422_s6 }
  0xad   : > { %v498_v53 = vpop.permute.xlu0 %497 }
  0xae   : > { %v500_v54 = vpop.permute.xlu1 %499  ;;  %576 = vst.msk [vmem:[#allocation2 + $0x90] sm:$0xff] %vm557_vm3, %v498_v53 }
  0xaf   : > { %577 = vst.msk [vmem:[#allocation2 + $0x98] sm:$0xff] %vm557_vm3, %v500_v54  ;;  %886 = vrot.lane.b32.xlu0 %v2520_v34, %s2422_s6 }
  0xb0   : > { %1013 = vrot.lane.b32.xlu1 %v2512_v28, %s2423_s7 }
  0xb1   : > { %v502_v55 = vpop.permute.xlu0 %501 }
  0xb2   : > { %v504_v57 = vpop.permute.xlu1 %503  ;;  %578 = vst.msk [vmem:[#allocation2 + $0xa0] sm:$0xff] %vm557_vm3, %v502_v55 }
  0xb3   : > { %579 = vst.msk [vmem:[#allocation2 + $0xa8] sm:$0xff] %vm557_vm3, %v504_v57  ;;  %1015 = vrot.lane.b32.xlu0 %v2520_v34, %s2423_s7 }
  0xb4   : > { %1160 = vrot.lane.b32.xlu1 %v2524_v36, %s2424_s12 }
  0xb5   : > { %v506_v2 = vpop.permute.xlu0 %505 }
  0xb6   : > { %v508_v3 = vpop.permute.xlu1 %507  ;;  %580 = vst.msk [vmem:[#allocation2 + $0xb0] sm:$0xff] %vm557_vm3, %v506_v2 }
  0xb7   : > { %581 = vst.msk [vmem:[#allocation2 + $0xb8] sm:$0xff] %vm557_vm3, %v508_v3  ;;  %1225 = vrot.lane.b32.xlu0 %v2522_v35, %s2424_s12 }
  0xb8   : > { %804 = vrot.lane.b32.xlu1 %v2522_v35, %s2421_s30 }
  0xb9   : > { %v510_v17 = vpop.permute.xlu0 %509 }
  0xba   : > { %v512_v19 = vpop.permute.xlu1 %511  ;;  %582 = vst.msk [vmem:[#allocation2 + $0xc0] sm:$0xff] %vm557_vm3, %v510_v17 }
  0xbb   : > { %583 = vst.msk [vmem:[#allocation2 + $0xc8] sm:$0xff] %vm557_vm3, %v512_v19  ;;  %1307 = vrot.lane.b32.xlu0 %v2522_v35, %s2425_s17 }
  0xbc   : > { %1309 = vrot.lane.b32.xlu1 %v2524_v36, %s2425_s17 }
  0xbd   : > { %v514_v21 = vpop.permute.xlu0 %513 }
  0xbe   : > { %v516_v22 = vpop.permute.xlu1 %515  ;;  %584 = vst.msk [vmem:[#allocation2 + $0xd0] sm:$0xff] %vm557_vm3, %v514_v21 }
  0xbf   : > { %585 = vst.msk [vmem:[#allocation2 + $0xd8] sm:$0xff] %vm557_vm3, %v516_v22  ;;  %888 = vrot.lane.b32.xlu0 %v2522_v35, %s2422_s6 }
  0xc0   : > { %890 = vrot.lane.b32.xlu1 %v2524_v36, %s2422_s6 }
  0xc1   : > { %v518_v23 = vpop.permute.xlu0 %517 }
  0xc2   : > { %v520_v24 = vpop.permute.xlu1 %519  ;;  %586 = vst.msk [vmem:[#allocation2 + $0xe0] sm:$0xff] %vm557_vm3, %v518_v23 }
  0xc3   : > { %587 = vst.msk [vmem:[#allocation2 + $0xe8] sm:$0xff] %vm557_vm3, %v520_v24  ;;  %1436 = vrot.lane.b32.xlu0 %v2522_v35, %s2426_s23 }
  0xc4   : > { %1438 = vrot.lane.b32.xlu1 %v2524_v36, %s2426_s23 }
  0xc5   : > { %v522_v25 = vpop.permute.xlu0 %521 }
  0xc6   : > { %v524_v26 = vpop.permute.xlu1 %523  ;;  %588 = vst.msk [vmem:[#allocation2 + $0xf0] sm:$0xff] %vm557_vm3, %v522_v25 }
  0xc7   : > { %589 = vst.msk [vmem:[#allocation2 + $0xf8] sm:$0xff] %vm557_vm3, %v524_v26  ;;  %1017 = vrot.lane.b32.xlu0 %v2522_v35, %s2423_s7  ;;  %vm1403_vm3 = vcmask 261344  }
  0xc8   : > { %1019 = vrot.lane.b32.xlu1 %v2524_v36, %s2423_s7 }
  0xc9   : > { %v591_v33 = vpop.permute.xlu0 %590 }
  0xca   : > { %v593_v37 = vpop.permute.xlu1 %592  ;;  %687 = vst.msk [vmem:[#allocation2 - $0x1] sm:$0xfe] %vm686_vm5, %v591_v33 }
  0xcb   : > { %721 = vst.msk [vmem:[#allocation2 + $0xf] sm:$0x1] %vm720_vm6, %v591_v33  ;;  %1162 = vrot.lane.b32.xlu0 %v2546_v44, %s2424_s12 }
  0xcc   : > { %689 = vst.msk [vmem:[#allocation2 + $0x7] sm:$0xff] %vm688_vm7, %v593_v37  ;;  %1227 = vrot.lane.b32.xlu1 %v2532_v39, %s2424_s12 }
  0xcd   : > { %v595_v35 = vpop.permute.xlu0 %594 }
  0xce   : > { %v597_v38 = vpop.permute.xlu1 %596  ;;  %690 = vst.msk [vmem:[#allocation2 + $0xf] sm:$0xfe] %vm686_vm5, %v595_v35 }
  0xcf   : > { %722 = vst.msk [vmem:[#allocation2 + $0x1f] sm:$0x1] %vm720_vm6, %v595_v35  ;;  %806 = vrot.lane.b32.xlu0 %v2532_v39, %s2421_s30 }
  0xd0   : > { %691 = vst.msk [vmem:[#allocation2 + $0x17] sm:$0xff] %vm688_vm7, %v597_v38  ;;  %1311 = vrot.lane.b32.xlu1 %v2532_v39, %s2425_s17 }
  0xd1   : > { %v599_v36 = vpop.permute.xlu0 %598 }
  0xd2   : > { %v601_v40 = vpop.permute.xlu1 %600  ;;  %692 = vst.msk [vmem:[#allocation2 + $0x1f] sm:$0xfe] %vm686_vm5, %v599_v36 }
  0xd3   : > { %723 = vst.msk [vmem:[#allocation2 + $0x2f] sm:$0x1] %vm720_vm6, %v599_v36  ;;  %1313 = vrot.lane.b32.xlu0 %v2546_v44, %s2425_s17 }
  0xd4   : > { %693 = vst.msk [vmem:[#allocation2 + $0x27] sm:$0xff] %vm688_vm7, %v601_v40  ;;  %892 = vrot.lane.b32.xlu1 %v2532_v39, %s2422_s6 }
  0xd5   : > { %v603_v45 = vpop.permute.xlu0 %602 }
  0xd6   : > { %v605_v46 = vpop.permute.xlu1 %604  ;;  %694 = vst.msk [vmem:[#allocation2 + $0x2f] sm:$0xfe] %vm686_vm5, %v603_v45 }
  0xd7   : > { %724 = vst.msk [vmem:[#allocation2 + $0x3f] sm:$0x1] %vm720_vm6, %v603_v45  ;;  %894 = vrot.lane.b32.xlu0 %v2546_v44, %s2422_s6 }
  0xd8   : > { %695 = vst.msk [vmem:[#allocation2 + $0x37] sm:$0xff] %vm688_vm7, %v605_v46  ;;  %1440 = vrot.lane.b32.xlu1 %v2532_v39, %s2426_s23 }
  0xd9   : > { %v607_v47 = vpop.permute.xlu0 %606 }
  0xda   : > { %v609_v48 = vpop.permute.xlu1 %608  ;;  %696 = vst.msk [vmem:[#allocation2 + $0x3f] sm:$0xfe] %vm686_vm5, %v607_v47 }
  0xdb   : > { %725 = vst.msk [vmem:[#allocation2 + $0x4f] sm:$0x1] %vm720_vm6, %v607_v47  ;;  %1442 = vrot.lane.b32.xlu0 %v2546_v44, %s2426_s23 }
  0xdc   : > { %697 = vst.msk [vmem:[#allocation2 + $0x47] sm:$0xff] %vm688_vm7, %v609_v48  ;;  %1021 = vrot.lane.b32.xlu1 %v2532_v39, %s2423_s7 }
  0xdd   : > { %v611_v49 = vpop.permute.xlu0 %610 }
  0xde   : > { %v613_v50 = vpop.permute.xlu1 %612  ;;  %698 = vst.msk [vmem:[#allocation2 + $0x4f] sm:$0xfe] %vm686_vm5, %v611_v49 }
  0xdf   : > { %726 = vst.msk [vmem:[#allocation2 + $0x5f] sm:$0x1] %vm720_vm6, %v611_v49  ;;  %1023 = vrot.lane.b32.xlu0 %v2546_v44, %s2423_s7 }
  0xe0   : > { %699 = vst.msk [vmem:[#allocation2 + $0x57] sm:$0xff] %vm688_vm7, %v613_v50  ;;  %1164 = vrot.lane.b32.xlu1 %v2585_v61, %s2424_s12 }
  0xe1   : > { %v615_v52 = vpop.permute.xlu0 %614 }
  0xe2   : > { %v617_v53 = vpop.permute.xlu1 %616  ;;  %700 = vst.msk [vmem:[#allocation2 + $0x5f] sm:$0xfe] %vm686_vm5, %v615_v52 }
  0xe3   : > { %727 = vst.msk [vmem:[#allocation2 + $0x6f] sm:$0x1] %vm720_vm6, %v615_v52  ;;  %1229 = vrot.lane.b32.xlu0 %v2583_v60, %s2424_s12 }
  0xe4   : > { %701 = vst.msk [vmem:[#allocation2 + $0x67] sm:$0xff] %vm688_vm7, %v617_v53  ;;  %808 = vrot.lane.b32.xlu1 %v2583_v60, %s2421_s30 }
  0xe5   : > { %v619_v39 = vpop.permute.xlu0 %618 }
  0xe6   : > { %v621_v54 = vpop.permute.xlu1 %620  ;;  %702 = vst.msk [vmem:[#allocation2 + $0x6f] sm:$0xfe] %vm686_vm5, %v619_v39 }
  0xe7   : > { %728 = vst.msk [vmem:[#allocation2 + $0x7f] sm:$0x1] %vm720_vm6, %v619_v39  ;;  %1315 = vrot.lane.b32.xlu0 %v2583_v60, %s2425_s17 }
  0xe8   : > { %703 = vst.msk [vmem:[#allocation2 + $0x77] sm:$0xff] %vm688_vm7, %v621_v54  ;;  %1317 = vrot.lane.b32.xlu1 %v2585_v61, %s2425_s17 }
  0xe9   : > { %v623_v44 = vpop.permute.xlu0 %622 }
  0xea   : > { %v625_v55 = vpop.permute.xlu1 %624  ;;  %704 = vst.msk [vmem:[#allocation2 + $0x7f] sm:$0xfe] %vm686_vm5, %v623_v44 }
  0xeb   : > { %729 = vst.msk [vmem:[#allocation2 + $0x8f] sm:$0x1] %vm720_vm6, %v623_v44  ;;  %896 = vrot.lane.b32.xlu0 %v2583_v60, %s2422_s6 }
  0xec   : > { %705 = vst.msk [vmem:[#allocation2 + $0x87] sm:$0xff] %vm688_vm7, %v625_v55  ;;  %898 = vrot.lane.b32.xlu1 %v2585_v61, %s2422_s6 }
  0xed   : > { %v627_v57 = vpop.permute.xlu0 %626 }
  0xee   : > { %v629_v58 = vpop.permute.xlu1 %628  ;;  %706 = vst.msk [vmem:[#allocation2 + $0x8f] sm:$0xfe] %vm686_vm5, %v627_v57 }
  0xef   : > { %730 = vst.msk [vmem:[#allocation2 + $0x9f] sm:$0x1] %vm720_vm6, %v627_v57  ;;  %1444 = vrot.lane.b32.xlu0 %v2583_v60, %s2426_s23 }
  0xf0   : > { %707 = vst.msk [vmem:[#allocation2 + $0x97] sm:$0xff] %vm688_vm7, %v629_v58  ;;  %1446 = vrot.lane.b32.xlu1 %v2585_v61, %s2426_s23 }
  0xf1   : > { %v631_v59 = vpop.permute.xlu0 %630 }
  0xf2   : > { %v633_v63 = vpop.permute.xlu1 %632  ;;  %708 = vst.msk [vmem:[#allocation2 + $0x9f] sm:$0xfe] %vm686_vm5, %v631_v59 }
  0xf3   : > { %731 = vst.msk [vmem:[#allocation2 + $0xaf] sm:$0x1] %vm720_vm6, %v631_v59  ;;  %1025 = vrot.lane.b32.xlu0 %v2583_v60, %s2423_s7 }
  0xf4   : > { %709 = vst.msk [vmem:[#allocation2 + $0xa7] sm:$0xff] %vm688_vm7, %v633_v63  ;;  %1027 = vrot.lane.b32.xlu1 %v2585_v61, %s2423_s7 }
  0xf5   : > { %v635_v2 = vpop.permute.xlu0 %634 }
  0xf6   : > { %v637_v3 = vpop.permute.xlu1 %636  ;;  %710 = vst.msk [vmem:[#allocation2 + $0xaf] sm:$0xfe] %vm686_vm5, %v635_v2 }
  0xf7   : > { %732 = vst.msk [vmem:[#allocation2 + $0xbf] sm:$0x1] %vm720_vm6, %v635_v2  ;;  %1166 = vrot.lane.b32.xlu0 %v2592_v4, %s2424_s12 }
  0xf8   : > { %711 = vst.msk [vmem:[#allocation2 + $0xb7] sm:$0xff] %vm688_vm7, %v637_v3  ;;  %1231 = vrot.lane.b32.xlu1 %v2587_v62, %s2424_s12 }
  0xf9   : > { %v639_v7 = vpop.permute.xlu0 %638 }
  0xfa   : > { %v641_v11 = vpop.permute.xlu1 %640  ;;  %712 = vst.msk [vmem:[#allocation2 + $0xbf] sm:$0xfe] %vm686_vm5, %v639_v7 }
  0xfb   : > { %733 = vst.msk [vmem:[#allocation2 + $0xcf] sm:$0x1] %vm720_vm6, %v639_v7  ;;  %810 = vrot.lane.b32.xlu0 %v2587_v62, %s2421_s30 }
  0xfc   : > { %713 = vst.msk [vmem:[#allocation2 + $0xc7] sm:$0xff] %vm688_vm7, %v641_v11  ;;  %1319 = vrot.lane.b32.xlu1 %v2587_v62, %s2425_s17 }
  0xfd   : > { %v643_v60 = vpop.permute.xlu0 %642 }
  0xfe   : > { %v645_v61 = vpop.permute.xlu1 %644  ;;  %714 = vst.msk [vmem:[#allocation2 + $0xcf] sm:$0xfe] %vm686_vm5, %v643_v60 }
  0xff   : > { %734 = vst.msk [vmem:[#allocation2 + $0xdf] sm:$0x1] %vm720_vm6, %v643_v60  ;;  %1321 = vrot.lane.b32.xlu0 %v2592_v4, %s2425_s17 }
 0x100   : > { %715 = vst.msk [vmem:[#allocation2 + $0xd7] sm:$0xff] %vm688_vm7, %v645_v61  ;;  %900 = vrot.lane.b32.xlu1 %v2587_v62, %s2422_s6 }
 0x101   : > { %v647_v12 = vpop.permute.xlu0 %646 }
 0x102   : > { %v649_v17 = vpop.permute.xlu1 %648  ;;  %716 = vst.msk [vmem:[#allocation2 + $0xdf] sm:$0xfe] %vm686_vm5, %v647_v12 }
 0x103   : > { %735 = vst.msk [vmem:[#allocation2 + $0xef] sm:$0x1] %vm720_vm6, %v647_v12  ;;  %902 = vrot.lane.b32.xlu0 %v2592_v4, %s2422_s6 }
 0x104   : > { %717 = vst.msk [vmem:[#allocation2 + $0xe7] sm:$0xff] %vm688_vm7, %v649_v17  ;;  %1448 = vrot.lane.b32.xlu1 %v2587_v62, %s2426_s23 }
 0x105   : > { %v651_v19 = vpop.permute.xlu0 %650 }
 0x106   : > { %v653_v20 = vpop.permute.xlu1 %652  ;;  %718 = vst.msk [vmem:[#allocation2 + $0xef] sm:$0xfe] %vm686_vm5, %v651_v19  ;;  %vm1566_vm5 = vcmask 286976  }
 0x107   : > { %736 = vst.msk [vmem:[#allocation2 + $0xff] sm:$0x1] %vm720_vm6, %v651_v19  ;;  %1450 = vrot.lane.b32.xlu0 %v2592_v4, %s2426_s23  ;;  %vm1534_vm6 = vcmask 294144  }
 0x108   : > { %719 = vst.msk [vmem:[#allocation2 + $0xf7] sm:$0xff] %vm688_vm7, %v653_v20  ;;  %1029 = vrot.lane.b32.xlu1 %v2587_v62, %s2423_s7  ;;  %vm1620_vm7 = vcmask 293888  }
 0x109   : > { %v738_v21 = vpop.permute.xlu0 %737 }
 0x10a   : > { %v740_v22 = vpop.permute.xlu1 %739  ;;  %786 = vst.msk [vmem:[#allocation2 - $0x7] sm:$0x80] %vm785_vm8, %v738_v21 }
 0x10b   : > { %853 = vst.msk [vmem:[#allocation2 + $0x9] sm:$0x7f] %vm852_vm9, %v738_v21  ;;  %855 = vst.msk [vmem:[#allocation2 + $0x19] sm:$0x7f] %vm852_vm9, %v740_v22  ;;  %1031 = vrot.lane.b32.xlu0 %v2592_v4, %s2423_s7 }
 0x10c   : > { %787 = vst.msk [vmem:[#allocation2 + $0x9] sm:$0x80] %vm785_vm8, %v740_v22  ;;  %1168 = vrot.lane.b32.xlu1 %v2596_v6, %s2424_s12 }
 0x10d   : > { %v742_v23 = vpop.permute.xlu0 %741 }
 0x10e   : > { %v744_v62 = vpop.permute.xlu1 %743  ;;  %788 = vst.msk [vmem:[#allocation2 + $0x19] sm:$0x80] %vm785_vm8, %v742_v23 }
 0x10f   : > { %857 = vst.msk [vmem:[#allocation2 + $0x29] sm:$0x7f] %vm852_vm9, %v742_v23  ;;  %859 = vst.msk [vmem:[#allocation2 + $0x39] sm:$0x7f] %vm852_vm9, %v744_v62  ;;  %1233 = vrot.lane.b32.xlu0 %v2594_v5, %s2424_s12 }
 0x110   : > { %789 = vst.msk [vmem:[#allocation2 + $0x29] sm:$0x80] %vm785_vm8, %v744_v62  ;;  %812 = vrot.lane.b32.xlu1 %v2594_v5, %s2421_s30 }
 0x111   : > { %v746_v4 = vpop.permute.xlu0 %745 }
 0x112   : > { %v748_v24 = vpop.permute.xlu1 %747  ;;  %790 = vst.msk [vmem:[#allocation2 + $0x39] sm:$0x80] %vm785_vm8, %v746_v4 }
 0x113   : > { %861 = vst.msk [vmem:[#allocation2 + $0x49] sm:$0x7f] %vm852_vm9, %v746_v4  ;;  %863 = vst.msk [vmem:[#allocation2 + $0x59] sm:$0x7f] %vm852_vm9, %v748_v24  ;;  %1323 = vrot.lane.b32.xlu0 %v2594_v5, %s2425_s17 }
 0x114   : > { %791 = vst.msk [vmem:[#allocation2 + $0x49] sm:$0x80] %vm785_vm8, %v748_v24  ;;  %1325 = vrot.lane.b32.xlu1 %v2596_v6, %s2425_s17 }
 0x115   : > { %v750_v25 = vpop.permute.xlu0 %749 }
 0x116   : > { %v752_v26 = vpop.permute.xlu1 %751  ;;  %792 = vst.msk [vmem:[#allocation2 + $0x59] sm:$0x80] %vm785_vm8, %v750_v25 }
 0x117   : > { %865 = vst.msk [vmem:[#allocation2 + $0x69] sm:$0x7f] %vm852_vm9, %v750_v25  ;;  %867 = vst.msk [vmem:[#allocation2 + $0x79] sm:$0x7f] %vm852_vm9, %v752_v26  ;;  %904 = vrot.lane.b32.xlu0 %v2594_v5, %s2422_s6 }
 0x118   : > { %793 = vst.msk [vmem:[#allocation2 + $0x69] sm:$0x80] %vm785_vm8, %v752_v26  ;;  %906 = vrot.lane.b32.xlu1 %v2596_v6, %s2422_s6 }
 0x119   : > { %v754_v33 = vpop.permute.xlu0 %753 }
 0x11a   : > { %v756_v37 = vpop.permute.xlu1 %755  ;;  %794 = vst.msk [vmem:[#allocation2 + $0x79] sm:$0x80] %vm785_vm8, %v754_v33 }
 0x11b   : > { %869 = vst.msk [vmem:[#allocation2 + $0x89] sm:$0x7f] %vm852_vm9, %v754_v33  ;;  %871 = vst.msk [vmem:[#allocation2 + $0x99] sm:$0x7f] %vm852_vm9, %v756_v37  ;;  %1452 = vrot.lane.b32.xlu0 %v2594_v5, %s2426_s23 }
 0x11c   : > { %795 = vst.msk [vmem:[#allocation2 + $0x89] sm:$0x80] %vm785_vm8, %v756_v37  ;;  %1454 = vrot.lane.b32.xlu1 %v2596_v6, %s2426_s23 }
 0x11d   : > { %v803_v35 = vpop.permute.xlu0 %802 }
 0x11e   : > { %v885_v38 = vpop.permute.xlu1 %884  ;;  %851 = vst.msk [vmem:[#allocation2 + $0x1] sm:$0xff] %vm850_vm10, %v803_v35 }
 0x11f   : > { %981 = vst.msk [vmem:[#allocation2] sm:$0xff] %vm980_vm11, %v885_v38  ;;  %1033 = vrot.lane.b32.xlu0 %v2594_v5, %s2423_s7 }
 0x120   : > { %1035 = vrot.lane.b32.xlu1 %v2596_v6, %s2423_s7 }
 0x121   : > { %v887_v36 = vpop.permute.xlu0 %886 }
 0x122   : > { %v1014_v40 = vpop.permute.xlu1 %1013  ;;  %982 = vst.msk [vmem:[#allocation2 + $0x8] sm:$0xff] %vm980_vm11, %v887_v36 }
 0x123   : > { %1110 = vst.msk [vmem:[#allocation2 - $0x1] sm:$0xfe] %vm1109_vm12, %v1014_v40  ;;  %1170 = vrot.lane.b32.xlu0 %v2613_v13, %s2424_s12 }
 0x124   : > { %1144 = vst.msk [vmem:[#allocation2 + $0xf] sm:$0x1] %vm1143_vm13, %v1014_v40  ;;  %1235 = vrot.lane.b32.xlu1 %v2599_v8, %s2424_s12 }
 0x125   : > { %v1016_v5 = vpop.permute.xlu0 %1015 }
 0x126   : > { %v1161_v6 = vpop.permute.xlu1 %1160  ;;  %1112 = vst.msk [vmem:[#allocation2 + $0x7] sm:$0xff] %vm1111_vm14, %v1016_v5 }
 0x127   : > { %1209 = vst.msk [vmem:[#allocation2 - $0x7] sm:$0x80] %vm1208_vm15, %v1161_v6  ;;  %814 = vrot.lane.b32.xlu0 %v2599_v8, %s2421_s30 }
 0x128   : > { %1276 = vst.msk [vmem:[#allocation2 + $0x9] sm:$0x7f] %vm1275_vm0, %v1161_v6  ;;  %1327 = vrot.lane.b32.xlu1 %v2599_v8, %s2425_s17 }
 0x129   : > { %v1226_v45 = vpop.permute.xlu0 %1225 }
 0x12a   : > { %v805_v46 = vpop.permute.xlu1 %804  ;;  %1274 = vst.msk [vmem:[#allocation2 + $0x1] sm:$0xff] %vm1273_vm2, %v1226_v45 }
 0x12b   : > { %854 = vst.msk [vmem:[#allocation2 + $0x11] sm:$0xff] %vm850_vm10, %v805_v46  ;;  %1329 = vrot.lane.b32.xlu0 %v2613_v13, %s2425_s17 }
 0x12c   : > { %908 = vrot.lane.b32.xlu1 %v2599_v8, %s2422_s6 }
 0x12d   : > { %v1308_v47 = vpop.permute.xlu0 %1307 }
 0x12e   : > { %v1310_v48 = vpop.permute.xlu1 %1309  ;;  %1404 = vst.msk [vmem:[#allocation2] sm:$0xff] %vm1403_vm3, %v1308_v47 }
 0x12f   : > { %1405 = vst.msk [vmem:[#allocation2 + $0x8] sm:$0xff] %vm1403_vm3, %v1310_v48  ;;  %910 = vrot.lane.b32.xlu0 %v2613_v13, %s2422_s6 }
 0x130   : > { %1456 = vrot.lane.b32.xlu1 %v2599_v8, %s2426_s23 }
 0x131   : > { %v889_v49 = vpop.permute.xlu0 %888 }
 0x132   : > { %v891_v50 = vpop.permute.xlu1 %890  ;;  %983 = vst.msk [vmem:[#allocation2 + $0x10] sm:$0xff] %vm980_vm11, %v889_v49 }
 0x133   : > { %984 = vst.msk [vmem:[#allocation2 + $0x18] sm:$0xff] %vm980_vm11, %v891_v50  ;;  %1458 = vrot.lane.b32.xlu0 %v2613_v13, %s2426_s23 }
 0x134   : > { %1037 = vrot.lane.b32.xlu1 %v2599_v8, %s2423_s7 }
 0x135   : > { %v1437_v52 = vpop.permute.xlu0 %1436 }
 0x136   : > { %v1439_v53 = vpop.permute.xlu1 %1438  ;;  %1533 = vst.msk [vmem:[#allocation2 - $0x1] sm:$0xfe] %vm1532_vm4, %v1437_v52 }
 0x137   : > { %1567 = vst.msk [vmem:[#allocation2 + $0xf] sm:$0x1] %vm1566_vm5, %v1437_v52  ;;  %1039 = vrot.lane.b32.xlu0 %v2613_v13, %s2423_s7 }
 0x138   : > { %1535 = vst.msk [vmem:[#allocation2 + $0x7] sm:$0xff] %vm1534_vm6, %v1439_v53  ;;  %1172 = vrot.lane.b32.xlu1 %v2650_v31, %s2424_s12 }
 0x139   : > { %v1018_v39 = vpop.permute.xlu0 %1017 }
 0x13a   : > { %v1020_v54 = vpop.permute.xlu1 %1019  ;;  %1113 = vst.msk [vmem:[#allocation2 + $0xf] sm:$0xfe] %vm1109_vm12, %v1018_v39 }
 0x13b   : > { %1145 = vst.msk [vmem:[#allocation2 + $0x1f] sm:$0x1] %vm1143_vm13, %v1018_v39  ;;  %1237 = vrot.lane.b32.xlu0 %v2648_v30, %s2424_s12 }
 0x13c   : > { %1114 = vst.msk [vmem:[#allocation2 + $0x17] sm:$0xff] %vm1111_vm14, %v1020_v54  ;;  %816 = vrot.lane.b32.xlu1 %v2648_v30, %s2421_s30 }
 0x13d   : > { %v1163_v8 = vpop.permute.xlu0 %1162 }
 0x13e   : > { %v1228_v13 = vpop.permute.xlu1 %1227  ;;  %1210 = vst.msk [vmem:[#allocation2 + $0x9] sm:$0x80] %vm1208_vm15, %v1163_v8 }
 0x13f   : > { %v1583_v44 = vld [vmem:[#allocation2] sm:$0xff]  ;;  %v1584_v55 = vld [vmem:[#allocation2 + $0x8] sm:$0xff]  ;;  %1278 = vst.msk [vmem:[#allocation2 + $0x19] sm:$0x7f] %vm1275_vm0, %v1163_v8  ;;  %1331 = vrot.lane.b32.xlu0 %v2648_v30, %s2425_s17 }
 0x140   : > { %1277 = vst.msk [vmem:[#allocation2 + $0x11] sm:$0xff] %vm1273_vm2, %v1228_v13  ;;  %2333 = vmatprep.mubr.msk.f32.mxu0 %vm1620_vm7, %v1583_v44  ;;  %1333 = vrot.lane.b32.xlu1 %v2650_v31, %s2425_s17 }
 0x141   : > { %2334 = vmatmul.mubr.msk.f32.vlgmr.msra.gmra.mrb[0].mxu0 %vm1620_vm7, %v1584_v55  ;;  %v807_v57 = vpop.permute.xlu0 %806 }
 0x142   : > { %v1312_v58 = vpop.permute.xlu1 %1311  ;;  %856 = vst.msk [vmem:[#allocation2 + $0x21] sm:$0xff] %vm850_vm10, %v807_v57 }
 0x143   : > { %1406 = vst.msk [vmem:[#allocation2 + $0x10] sm:$0xff] %vm1403_vm3, %v1312_v58  ;;  %912 = vrot.lane.b32.xlu0 %v2648_v30, %s2422_s6 }
 0x144   : > { %914 = vrot.lane.b32.xlu1 %v2650_v31, %s2422_s6 }
 0x145   : > { %v1314_v59 = vpop.permute.xlu0 %1313 }
 0x146   : > { %v893_v63 = vpop.permute.xlu1 %892  ;;  %1407 = vst.msk [vmem:[#allocation2 + $0x18] sm:$0xff] %vm1403_vm3, %v1314_v59 }
 0x147   : > { %985 = vst.msk [vmem:[#allocation2 + $0x20] sm:$0xff] %vm980_vm11, %v893_v63  ;;  %1460 = vrot.lane.b32.xlu0 %v2648_v30, %s2426_s23 }
 0x148   : > { %1462 = vrot.lane.b32.xlu1 %v2650_v31, %s2426_s23 }
 0x149   : > { %v895_v2 = vpop.permute.xlu0 %894 }
 0x14a   : > { %v1441_v3 = vpop.permute.xlu1 %1440  ;;  %986 = vst.msk [vmem:[#allocation2 + $0x28] sm:$0xff] %vm980_vm11, %v895_v2 }
 0x14b   : > { %1536 = vst.msk [vmem:[#allocation2 + $0xf] sm:$0xfe] %vm1532_vm4, %v1441_v3  ;;  %1041 = vrot.lane.b32.xlu0 %v2648_v30, %s2423_s7 }
 0x14c   : > { %1568 = vst.msk [vmem:[#allocation2 + $0x1f] sm:$0x1] %vm1566_vm5, %v1441_v3  ;;  %1043 = vrot.lane.b32.xlu1 %v2650_v31, %s2423_s7 }
 0x14d   : > { %v1443_v7 = vpop.permute.xlu0 %1442 }
 0x14e   : > { %v1022_v11 = vpop.permute.xlu1 %1021  ;;  %1537 = vst.msk [vmem:[#allocation2 + $0x17] sm:$0xff] %vm1534_vm6, %v1443_v7 }
 0x14f   : > { %1115 = vst.msk [vmem:[#allocation2 + $0x1f] sm:$0xfe] %vm1109_vm12, %v1022_v11  ;;  %1174 = vrot.lane.b32.xlu0 %v2658_v41, %s2424_s12 }
 0x150   : > { %1146 = vst.msk [vmem:[#allocation2 + $0x2f] sm:$0x1] %vm1143_vm13, %v1022_v11  ;;  %1239 = vrot.lane.b32.xlu1 %v2652_v32, %s2424_s12 }
 0x151   : > { %v1024_v60 = vpop.permute.xlu0 %1023 }
 0x152   : > { %v1165_v61 = vpop.permute.xlu1 %1164  ;;  %1116 = vst.msk [vmem:[#allocation2 + $0x27] sm:$0xff] %vm1111_vm14, %v1024_v60 }
 0x153   : > { %1211 = vst.msk [vmem:[#allocation2 + $0x19] sm:$0x80] %vm1208_vm15, %v1165_v61  ;;  %818 = vrot.lane.b32.xlu0 %v2652_v32, %s2421_s30 }
 0x154   : > { %1280 = vst.msk [vmem:[#allocation2 + $0x29] sm:$0x7f] %vm1275_vm0, %v1165_v61  ;;  %1335 = vrot.lane.b32.xlu1 %v2652_v32, %s2425_s17 }
 0x155   : > { %v1230_v30 = vpop.permute.xlu0 %1229  ;;  %v1585_v12 = vld [vmem:[#allocation2 + $0x10] sm:$0xff]  ;;  %v1586_v17 = vld [vmem:[#allocation2 + $0x18] sm:$0xff] }
 0x156   : > { %v809_v31 = vpop.permute.xlu1 %808  ;;  %1279 = vst.msk [vmem:[#allocation2 + $0x21] sm:$0xff] %vm1273_vm2, %v1230_v30  ;;  %2336 = vmatprep.mubr.msk.f32.mxu0 %vm1620_vm7, %v1585_v12 }
 0x157   : > { %858 = vst.msk [vmem:[#allocation2 + $0x31] sm:$0xff] %vm850_vm10, %v809_v31  ;;  %1337 = vrot.lane.b32.xlu0 %v2658_v41, %s2425_s17  ;;  %2337 = vmatmul.mubr.msk.f32.gmra.mrb[2].mxu0 %vm1620_vm7, %v1586_v17 }
 0x158   : > { %916 = vrot.lane.b32.xlu1 %v2652_v32, %s2422_s6 }
 0x159   : > { %v1316_v19 = vpop.permute.xlu0 %1315 }
 0x15a   : > { %v1318_v20 = vpop.permute.xlu1 %1317  ;;  %1408 = vst.msk [vmem:[#allocation2 + $0x20] sm:$0xff] %vm1403_vm3, %v1316_v19 }
 0x15b   : > { %1409 = vst.msk [vmem:[#allocation2 + $0x28] sm:$0xff] %vm1403_vm3, %v1318_v20  ;;  %918 = vrot.lane.b32.xlu0 %v2658_v41, %s2422_s6 }
 0x15c   : > { %1464 = vrot.lane.b32.xlu1 %v2652_v32, %s2426_s23 }
 0x15d   : > { %v897_v21 = vpop.permute.xlu0 %896 }
 0x15e   : > { %v899_v22 = vpop.permute.xlu1 %898  ;;  %987 = vst.msk [vmem:[#allocation2 + $0x30] sm:$0xff] %vm980_vm11, %v897_v21 }
 0x15f   : > { %988 = vst.msk [vmem:[#allocation2 + $0x38] sm:$0xff] %vm980_vm11, %v899_v22  ;;  %1466 = vrot.lane.b32.xlu0 %v2658_v41, %s2426_s23 }
 0x160   : > { %1045 = vrot.lane.b32.xlu1 %v2652_v32, %s2423_s7 }
 0x161   : > { %v1445_v23 = vpop.permute.xlu0 %1444 }
 0x162   : > { %v1447_v62 = vpop.permute.xlu1 %1446  ;;  %1538 = vst.msk [vmem:[#allocation2 + $0x1f] sm:$0xfe] %vm1532_vm4, %v1445_v23 }
 0x163   : > { %1569 = vst.msk [vmem:[#allocation2 + $0x2f] sm:$0x1] %vm1566_vm5, %v1445_v23  ;;  %1047 = vrot.lane.b32.xlu0 %v2658_v41, %s2423_s7 }
 0x164   : > { %1539 = vst.msk [vmem:[#allocation2 + $0x27] sm:$0xff] %vm1534_vm6, %v1447_v62  ;;  %1176 = vrot.lane.b32.xlu1 %v2662_v43, %s2424_s12 }
 0x165   : > { %v1026_v4 = vpop.permute.xlu0 %1025 }
 0x166   : > { %v1028_v24 = vpop.permute.xlu1 %1027  ;;  %1117 = vst.msk [vmem:[#allocation2 + $0x2f] sm:$0xfe] %vm1109_vm12, %v1026_v4 }
 0x167   : > { %1147 = vst.msk [vmem:[#allocation2 + $0x3f] sm:$0x1] %vm1143_vm13, %v1026_v4  ;;  %1241 = vrot.lane.b32.xlu0 %v2660_v42, %s2424_s12 }
 0x168   : > { %1118 = vst.msk [vmem:[#allocation2 + $0x37] sm:$0xff] %vm1111_vm14, %v1028_v24  ;;  %820 = vrot.lane.b32.xlu1 %v2660_v42, %s2421_s30 }
 0x169   : > { %v1167_v32 = vpop.permute.xlu0 %1166 }
 0x16a   : > { %v1232_v25 = vpop.permute.xlu1 %1231  ;;  %1212 = vst.msk [vmem:[#allocation2 + $0x29] sm:$0x80] %vm1208_vm15, %v1167_v32 }
 0x16b   : > { %v1587_v41 = vld [vmem:[#allocation2 + $0x20] sm:$0xff]  ;;  %v1588_v26 = vld [vmem:[#allocation2 + $0x28] sm:$0xff]  ;;  %1282 = vst.msk [vmem:[#allocation2 + $0x39] sm:$0x7f] %vm1275_vm0, %v1167_v32  ;;  %1339 = vrot.lane.b32.xlu0 %v2660_v42, %s2425_s17 }
 0x16c   : > { %1281 = vst.msk [vmem:[#allocation2 + $0x31] sm:$0xff] %vm1273_vm2, %v1232_v25  ;;  %2339 = vmatprep.mubr.msk.f32.mxu0 %vm1620_vm7, %v1587_v41  ;;  %1341 = vrot.lane.b32.xlu1 %v2662_v43, %s2425_s17 }
 0x16d   : > { %2340 = vmatmul.mubr.msk.f32.gmra.mrb[4].mxu0 %vm1620_vm7, %v1588_v26  ;;  %v811_v33 = vpop.permute.xlu0 %810 }
 0x16e   : > { %v1320_v37 = vpop.permute.xlu1 %1319  ;;  %860 = vst.msk [vmem:[#allocation2 + $0x41] sm:$0xff] %vm850_vm10, %v811_v33 }
 0x16f   : > { %1410 = vst.msk [vmem:[#allocation2 + $0x30] sm:$0xff] %vm1403_vm3, %v1320_v37  ;;  %920 = vrot.lane.b32.xlu0 %v2660_v42, %s2422_s6 }
 0x170   : > { %922 = vrot.lane.b32.xlu1 %v2662_v43, %s2422_s6 }
 0x171   : > { %v1322_v35 = vpop.permute.xlu0 %1321 }
 0x172   : > { %v901_v38 = vpop.permute.xlu1 %900  ;;  %1411 = vst.msk [vmem:[#allocation2 + $0x38] sm:$0xff] %vm1403_vm3, %v1322_v35 }
 0x173   : > { %989 = vst.msk [vmem:[#allocation2 + $0x40] sm:$0xff] %vm980_vm11, %v901_v38  ;;  %1468 = vrot.lane.b32.xlu0 %v2660_v42, %s2426_s23 }
 0x174   : > { %1470 = vrot.lane.b32.xlu1 %v2662_v43, %s2426_s23 }
 0x175   : > { %v903_v36 = vpop.permute.xlu0 %902 }
 0x176   : > { %v1449_v40 = vpop.permute.xlu1 %1448  ;;  %990 = vst.msk [vmem:[#allocation2 + $0x48] sm:$0xff] %vm980_vm11, %v903_v36 }
 0x177   : > { %1540 = vst.msk [vmem:[#allocation2 + $0x2f] sm:$0xfe] %vm1532_vm4, %v1449_v40  ;;  %1049 = vrot.lane.b32.xlu0 %v2660_v42, %s2423_s7 }
 0x178   : > { %1570 = vst.msk [vmem:[#allocation2 + $0x3f] sm:$0x1] %vm1566_vm5, %v1449_v40  ;;  %1051 = vrot.lane.b32.xlu1 %v2662_v43, %s2423_s7 }
 0x179   : > { %v1451_v5 = vpop.permute.xlu0 %1450 }
 0x17a   : > { %v1030_v6 = vpop.permute.xlu1 %1029  ;;  %1541 = vst.msk [vmem:[#allocation2 + $0x37] sm:$0xff] %vm1534_vm6, %v1451_v5 }
 0x17b   : > { %1119 = vst.msk [vmem:[#allocation2 + $0x3f] sm:$0xfe] %vm1109_vm12, %v1030_v6  ;;  %1178 = vrot.lane.b32.xlu0 %v2698_v56, %s2424_s12 }
 0x17c   : > { %1148 = vst.msk [vmem:[#allocation2 + $0x4f] sm:$0x1] %vm1143_vm13, %v1030_v6  ;;  %1243 = vrot.lane.b32.xlu1 %v2682_v51, %s2424_s12 }
 0x17d   : > { %v1032_v45 = vpop.permute.xlu0 %1031 }
 0x17e   : > { %v1169_v46 = vpop.permute.xlu1 %1168  ;;  %1120 = vst.msk [vmem:[#allocation2 + $0x47] sm:$0xff] %vm1111_vm14, %v1032_v45 }
 0x17f   : > { %1213 = vst.msk [vmem:[#allocation2 + $0x39] sm:$0x80] %vm1208_vm15, %v1169_v46  ;;  %757 = vrot.lane.b32.xlu0 %v2698_v56, %s2421_s30 }
 0x180   : > { %1284 = vst.msk [vmem:[#allocation2 + $0x49] sm:$0x7f] %vm1275_vm0, %v1169_v46  ;;  %822 = vrot.lane.b32.xlu1 %v2682_v51, %s2421_s30 }
 0x181   : > { %v1234_v42 = vpop.permute.xlu0 %1233  ;;  %v1589_v47 = vld [vmem:[#allocation2 + $0x30] sm:$0xff]  ;;  %v1590_v48 = vld [vmem:[#allocation2 + $0x38] sm:$0xff] }
 0x182   : > { %v813_v43 = vpop.permute.xlu1 %812  ;;  %1283 = vst.msk [vmem:[#allocation2 + $0x41] sm:$0xff] %vm1273_vm2, %v1234_v42  ;;  %2342 = vmatprep.mubr.msk.f32.mxu0 %vm1620_vm7, %v1589_v47 }
 0x183   : > { %862 = vst.msk [vmem:[#allocation2 + $0x51] sm:$0xff] %vm850_vm10, %v813_v43  ;;  %1343 = vrot.lane.b32.xlu0 %v2682_v51, %s2425_s17  ;;  %2343 = vmatmul.mubr.msk.f32.gmra.mrb[6].mxu0 %vm1620_vm7, %v1590_v48 }
 0x184   : > { %1345 = vrot.lane.b32.xlu1 %v2698_v56, %s2425_s17 }
 0x185   : > { %v1324_v49 = vpop.permute.xlu0 %1323 }
 0x186   : > { %v1326_v50 = vpop.permute.xlu1 %1325  ;;  %1412 = vst.msk [vmem:[#allocation2 + $0x40] sm:$0xff] %vm1403_vm3, %v1324_v49 }
 0x187   : > { %1413 = vst.msk [vmem:[#allocation2 + $0x48] sm:$0xff] %vm1403_vm3, %v1326_v50  ;;  %924 = vrot.lane.b32.xlu0 %v2682_v51, %s2422_s6 }
 0x188   : > { %926 = vrot.lane.b32.xlu1 %v2698_v56, %s2422_s6 }
 0x189   : > { %v905_v52 = vpop.permute.xlu0 %904 }
 0x18a   : > { %v907_v53 = vpop.permute.xlu1 %906  ;;  %991 = vst.msk [vmem:[#allocation2 + $0x50] sm:$0xff] %vm980_vm11, %v905_v52 }
 0x18b   : > { %992 = vst.msk [vmem:[#allocation2 + $0x58] sm:$0xff] %vm980_vm11, %v907_v53  ;;  %1472 = vrot.lane.b32.xlu0 %v2682_v51, %s2426_s23 }
 0x18c   : > { %1474 = vrot.lane.b32.xlu1 %v2698_v56, %s2426_s23 }
 0x18d   : > { %v1453_v39 = vpop.permute.xlu0 %1452 }
 0x18e   : > { %v1455_v54 = vpop.permute.xlu1 %1454  ;;  %1542 = vst.msk [vmem:[#allocation2 + $0x3f] sm:$0xfe] %vm1532_vm4, %v1453_v39 }
 0x18f   : > { %1571 = vst.msk [vmem:[#allocation2 + $0x4f] sm:$0x1] %vm1566_vm5, %v1453_v39  ;;  %1053 = vrot.lane.b32.xlu0 %v2682_v51, %s2423_s7 }
 0x190   : > { %1543 = vst.msk [vmem:[#allocation2 + $0x47] sm:$0xff] %vm1534_vm6, %v1455_v54  ;;  %1055 = vrot.lane.b32.xlu1 %v2698_v56, %s2423_s7 }
 0x191   : > { %v1034_v8 = vpop.permute.xlu0 %1033 }
 0x192   : > { %v1036_v13 = vpop.permute.xlu1 %1035  ;;  %1121 = vst.msk [vmem:[#allocation2 + $0x4f] sm:$0xfe] %vm1109_vm12, %v1034_v8 }
 0x193   : > { %1149 = vst.msk [vmem:[#allocation2 + $0x5f] sm:$0x1] %vm1143_vm13, %v1034_v8  ;;  %1180 = vrot.lane.b32.xlu0 %v2715_v10, %s2424_s12 }
 0x194   : > { %1122 = vst.msk [vmem:[#allocation2 + $0x57] sm:$0xff] %vm1111_vm14, %v1036_v13  ;;  %1245 = vrot.lane.b32.xlu1 %v2713_v9, %s2424_s12 }
 0x195   : > { %v1171_v44 = vpop.permute.xlu0 %1170 }
 0x196   : > { %v1236_v55 = vpop.permute.xlu1 %1235  ;;  %1214 = vst.msk [vmem:[#allocation2 + $0x49] sm:$0x80] %vm1208_vm15, %v1171_v44 }
 0x197   : > { %v1591_v51 = vld [vmem:[#allocation2 + $0x40] sm:$0xff]  ;;  %v1592_v57 = vld [vmem:[#allocation2 + $0x48] sm:$0xff]  ;;  %1286 = vst.msk [vmem:[#allocation2 + $0x59] sm:$0x7f] %vm1275_vm0, %v1171_v44  ;;  %759 = vrot.lane.b32.xlu0 %v2715_v10, %s2421_s30 }
 0x198   : > { %1285 = vst.msk [vmem:[#allocation2 + $0x51] sm:$0xff] %vm1273_vm2, %v1236_v55  ;;  %2345 = vmatprep.mubr.msk.f32.mxu0 %vm1620_vm7, %v1591_v51  ;;  %824 = vrot.lane.b32.xlu1 %v2713_v9, %s2421_s30 }
 0x199   : > { %2346 = vmatmul.mubr.msk.f32.gmra.mrb[8].mxu0 %vm1620_vm7, %v1592_v57  ;;  %v815_v56 = vpop.permute.xlu0 %814 }
 0x19a   : > { %v1328_v58 = vpop.permute.xlu1 %1327  ;;  %864 = vst.msk [vmem:[#allocation2 + $0x61] sm:$0xff] %vm850_vm10, %v815_v56 }
 0x19b   : > { %1414 = vst.msk [vmem:[#allocation2 + $0x50] sm:$0xff] %vm1403_vm3, %v1328_v58  ;;  %1347 = vrot.lane.b32.xlu0 %v2713_v9, %s2425_s17 }
 0x19c   : > { %1349 = vrot.lane.b32.xlu1 %v2715_v10, %s2425_s17 }
 0x19d   : > { %v1330_v59 = vpop.permute.xlu0 %1329 }
 0x19e   : > { %v909_v63 = vpop.permute.xlu1 %908  ;;  %1415 = vst.msk [vmem:[#allocation2 + $0x58] sm:$0xff] %vm1403_vm3, %v1330_v59 }
 0x19f   : > { %993 = vst.msk [vmem:[#allocation2 + $0x60] sm:$0xff] %vm980_vm11, %v909_v63  ;;  %928 = vrot.lane.b32.xlu0 %v2713_v9, %s2422_s6 }
 0x1a0   : > { %930 = vrot.lane.b32.xlu1 %v2715_v10, %s2422_s6 }
 0x1a1   : > { %v911_v2 = vpop.permute.xlu0 %910 }
 0x1a2   : > { %v1457_v3 = vpop.permute.xlu1 %1456  ;;  %994 = vst.msk [vmem:[#allocation2 + $0x68] sm:$0xff] %vm980_vm11, %v911_v2 }
 0x1a3   : > { %1544 = vst.msk [vmem:[#allocation2 + $0x4f] sm:$0xfe] %vm1532_vm4, %v1457_v3  ;;  %1476 = vrot.lane.b32.xlu0 %v2713_v9, %s2426_s23 }
 0x1a4   : > { %1572 = vst.msk [vmem:[#allocation2 + $0x5f] sm:$0x1] %vm1566_vm5, %v1457_v3  ;;  %1478 = vrot.lane.b32.xlu1 %v2715_v10, %s2426_s23 }
 0x1a5   : > { %v1459_v7 = vpop.permute.xlu0 %1458 }
 0x1a6   : > { %v1038_v11 = vpop.permute.xlu1 %1037  ;;  %1545 = vst.msk [vmem:[#allocation2 + $0x57] sm:$0xff] %vm1534_vm6, %v1459_v7 }
 0x1a7   : > { %1123 = vst.msk [vmem:[#allocation2 + $0x5f] sm:$0xfe] %vm1109_vm12, %v1038_v11  ;;  %1057 = vrot.lane.b32.xlu0 %v2713_v9, %s2423_s7 }
 0x1a8   : > { %1150 = vst.msk [vmem:[#allocation2 + $0x6f] sm:$0x1] %vm1143_vm13, %v1038_v11  ;;  %1059 = vrot.lane.b32.xlu1 %v2715_v10, %s2423_s7 }
 0x1a9   : > { %v1040_v60 = vpop.permute.xlu0 %1039 }
 0x1aa   : > { %v1173_v61 = vpop.permute.xlu1 %1172  ;;  %1124 = vst.msk [vmem:[#allocation2 + $0x67] sm:$0xff] %vm1111_vm14, %v1040_v60 }
 0x1ab   : > { %1215 = vst.msk [vmem:[#allocation2 + $0x59] sm:$0x80] %vm1208_vm15, %v1173_v61  ;;  %1182 = vrot.lane.b32.xlu0 %v2725_v15, %s2424_s12 }
 0x1ac   : > { %1288 = vst.msk [vmem:[#allocation2 + $0x69] sm:$0x7f] %vm1275_vm0, %v1173_v61  ;;  %1247 = vrot.lane.b32.xlu1 %v2723_v14, %s2424_s12 }
 0x1ad   : > { %v1238_v30 = vpop.permute.xlu0 %1237  ;;  %v1593_v9 = vld [vmem:[#allocation2 + $0x50] sm:$0xff]  ;;  %v1594_v12 = vld [vmem:[#allocation2 + $0x58] sm:$0xff] }
 0x1ae   : > { %v817_v31 = vpop.permute.xlu1 %816  ;;  %1287 = vst.msk [vmem:[#allocation2 + $0x61] sm:$0xff] %vm1273_vm2, %v1238_v30  ;;  %2348 = vmatprep.mubr.msk.f32.mxu0 %vm1620_vm7, %v1593_v9 }
 0x1af   : > { %866 = vst.msk [vmem:[#allocation2 + $0x71] sm:$0xff] %vm850_vm10, %v817_v31  ;;  %761 = vrot.lane.b32.xlu0 %v2725_v15, %s2421_s30  ;;  %2349 = vmatmul.mubr.msk.f32.gmra.mrb[10].mxu0 %vm1620_vm7, %v1594_v12 }
 0x1b0   : > { %826 = vrot.lane.b32.xlu1 %v2723_v14, %s2421_s30 }
 0x1b1   : > { %v1332_v10 = vpop.permute.xlu0 %1331 }
 0x1b2   : > { %v1334_v17 = vpop.permute.xlu1 %1333  ;;  %1416 = vst.msk [vmem:[#allocation2 + $0x60] sm:$0xff] %vm1403_vm3, %v1332_v10 }
 0x1b3   : > { %1417 = vst.msk [vmem:[#allocation2 + $0x68] sm:$0xff] %vm1403_vm3, %v1334_v17  ;;  %1351 = vrot.lane.b32.xlu0 %v2723_v14, %s2425_s17 }
 0x1b4   : > { %1353 = vrot.lane.b32.xlu1 %v2725_v15, %s2425_s17 }
 0x1b5   : > { %v913_v19 = vpop.permute.xlu0 %912 }
 0x1b6   : > { %v915_v20 = vpop.permute.xlu1 %914  ;;  %995 = vst.msk [vmem:[#allocation2 + $0x70] sm:$0xff] %vm980_vm11, %v913_v19 }
 0x1b7   : > { %996 = vst.msk [vmem:[#allocation2 + $0x78] sm:$0xff] %vm980_vm11, %v915_v20  ;;  %932 = vrot.lane.b32.xlu0 %v2723_v14, %s2422_s6 }
 0x1b8   : > { %934 = vrot.lane.b32.xlu1 %v2725_v15, %s2422_s6 }
 0x1b9   : > { %v1461_v21 = vpop.permute.xlu0 %1460 }
 0x1ba   : > { %v1463_v22 = vpop.permute.xlu1 %1462  ;;  %1546 = vst.msk [vmem:[#allocation2 + $0x5f] sm:$0xfe] %vm1532_vm4, %v1461_v21 }
 0x1bb   : > { %1573 = vst.msk [vmem:[#allocation2 + $0x6f] sm:$0x1] %vm1566_vm5, %v1461_v21  ;;  %1480 = vrot.lane.b32.xlu0 %v2723_v14, %s2426_s23 }
 0x1bc   : > { %1547 = vst.msk [vmem:[#allocation2 + $0x67] sm:$0xff] %vm1534_vm6, %v1463_v22  ;;  %1482 = vrot.lane.b32.xlu1 %v2725_v15, %s2426_s23 }
 0x1bd   : > { %v1042_v23 = vpop.permute.xlu0 %1041 }
 0x1be   : > { %v1044_v62 = vpop.permute.xlu1 %1043  ;;  %1125 = vst.msk [vmem:[#allocation2 + $0x6f] sm:$0xfe] %vm1109_vm12, %v1042_v23 }
 0x1bf   : > { %1151 = vst.msk [vmem:[#allocation2 + $0x7f] sm:$0x1] %vm1143_vm13, %v1042_v23  ;;  %1061 = vrot.lane.b32.xlu0 %v2723_v14, %s2423_s7 }
 0x1c0   : > { %1126 = vst.msk [vmem:[#allocation2 + $0x77] sm:$0xff] %vm1111_vm14, %v1044_v62  ;;  %1063 = vrot.lane.b32.xlu1 %v2725_v15, %s2423_s7 }
 0x1c1   : > { %v1175_v4 = vpop.permute.xlu0 %1174 }
 0x1c2   : > { %v1240_v24 = vpop.permute.xlu1 %1239  ;;  %1216 = vst.msk [vmem:[#allocation2 + $0x69] sm:$0x80] %vm1208_vm15, %v1175_v4 }
 0x1c3   : > { %v1595_v32 = vld [vmem:[#allocation2 + $0x60] sm:$0xff]  ;;  %v1596_v25 = vld [vmem:[#allocation2 + $0x68] sm:$0xff]  ;;  %1290 = vst.msk [vmem:[#allocation2 + $0x79] sm:$0x7f] %vm1275_vm0, %v1175_v4  ;;  %1184 = vrot.lane.b32.xlu0 %v2730_v18, %s2424_s12 }
 0x1c4   : > { %1289 = vst.msk [vmem:[#allocation2 + $0x71] sm:$0xff] %vm1273_vm2, %v1240_v24  ;;  %2351 = vmatprep.mubr.msk.f32.mxu0 %vm1620_vm7, %v1595_v32  ;;  %1249 = vrot.lane.b32.xlu1 %v2727_v16, %s2424_s12 }
 0x1c5   : > { %2352 = vmatmul.mubr.msk.f32.gmra.mrb[12].mxu0 %vm1620_vm7, %v1596_v25  ;;  %v819_v14 = vpop.permute.xlu0 %818 }
 0x1c6   : > { %v1336_v15 = vpop.permute.xlu1 %1335  ;;  %868 = vst.msk [vmem:[#allocation2 + $0x81] sm:$0xff] %vm850_vm10, %v819_v14 }
 0x1c7   : > { %1418 = vst.msk [vmem:[#allocation2 + $0x70] sm:$0xff] %vm1403_vm3, %v1336_v15  ;;  %763 = vrot.lane.b32.xlu0 %v2730_v18, %s2421_s30 }
 0x1c8   : > { %828 = vrot.lane.b32.xlu1 %v2727_v16, %s2421_s30 }
 0x1c9   : > { %v1338_v41 = vpop.permute.xlu0 %1337 }
 0x1ca   : > { %v917_v26 = vpop.permute.xlu1 %916  ;;  %1419 = vst.msk [vmem:[#allocation2 + $0x78] sm:$0xff] %vm1403_vm3, %v1338_v41 }
 0x1cb   : > { %997 = vst.msk [vmem:[#allocation2 + $0x80] sm:$0xff] %vm980_vm11, %v917_v26  ;;  %1355 = vrot.lane.b32.xlu0 %v2727_v16, %s2425_s17 }
 0x1cc   : > { %1357 = vrot.lane.b32.xlu1 %v2730_v18, %s2425_s17 }
 0x1cd   : > { %v919_v33 = vpop.permute.xlu0 %918 }
 0x1ce   : > { %v1465_v37 = vpop.permute.xlu1 %1464  ;;  %998 = vst.msk [vmem:[#allocation2 + $0x88] sm:$0xff] %vm980_vm11, %v919_v33 }
 0x1cf   : > { %1548 = vst.msk [vmem:[#allocation2 + $0x6f] sm:$0xfe] %vm1532_vm4, %v1465_v37  ;;  %936 = vrot.lane.b32.xlu0 %v2727_v16, %s2422_s6 }
 0x1d0   : > { %1574 = vst.msk [vmem:[#allocation2 + $0x7f] sm:$0x1] %vm1566_vm5, %v1465_v37  ;;  %938 = vrot.lane.b32.xlu1 %v2730_v18, %s2422_s6 }
 0x1d1   : > { %v1467_v35 = vpop.permute.xlu0 %1466 }
 0x1d2   : > { %v1046_v38 = vpop.permute.xlu1 %1045  ;;  %1549 = vst.msk [vmem:[#allocation2 + $0x77] sm:$0xff] %vm1534_vm6, %v1467_v35 }
 0x1d3   : > { %1127 = vst.msk [vmem:[#allocation2 + $0x7f] sm:$0xfe] %vm1109_vm12, %v1046_v38  ;;  %1484 = vrot.lane.b32.xlu0 %v2727_v16, %s2426_s23 }
 0x1d4   : > { %1152 = vst.msk [vmem:[#allocation2 + $0x8f] sm:$0x1] %vm1143_vm13, %v1046_v38  ;;  %1486 = vrot.lane.b32.xlu1 %v2730_v18, %s2426_s23 }
 0x1d5   : > { %v1048_v36 = vpop.permute.xlu0 %1047 }
 0x1d6   : > { %v1177_v40 = vpop.permute.xlu1 %1176  ;;  %1128 = vst.msk [vmem:[#allocation2 + $0x87] sm:$0xff] %vm1111_vm14, %v1048_v36 }
 0x1d7   : > { %1217 = vst.msk [vmem:[#allocation2 + $0x79] sm:$0x80] %vm1208_vm15, %v1177_v40  ;;  %1065 = vrot.lane.b32.xlu0 %v2727_v16, %s2423_s7 }
 0x1d8   : > { %1292 = vst.msk [vmem:[#allocation2 + $0x89] sm:$0x7f] %vm1275_vm0, %v1177_v40  ;;  %1067 = vrot.lane.b32.xlu1 %v2730_v18, %s2423_s7 }
 0x1d9   : > { %v1242_v5 = vpop.permute.xlu0 %1241  ;;  %v1597_v45 = vld [vmem:[#allocation2 + $0x70] sm:$0xff]  ;;  %v1598_v46 = vld [vmem:[#allocation2 + $0x78] sm:$0xff] }
 0x1da   : > { %v821_v6 = vpop.permute.xlu1 %820  ;;  %1291 = vst.msk [vmem:[#allocation2 + $0x81] sm:$0xff] %vm1273_vm2, %v1242_v5  ;;  %2354 = vmatprep.mubr.msk.f32.mxu0 %vm1620_vm7, %v1597_v45 }
 0x1db   : > { %870 = vst.msk [vmem:[#allocation2 + $0x91] sm:$0xff] %vm850_vm10, %v821_v6  ;;  %1186 = vrot.lane.b32.xlu0 %v2753_v1, %s2424_s12  ;;  %2355 = vmatmul.mubr.msk.f32.gmra.mrb[14].mxu0 %vm1620_vm7, %v1598_v46 }
 0x1dc   : > { %1251 = vrot.lane.b32.xlu1 %v2739_v0, %s2424_s12 }
 0x1dd   : > { %v1340_v16 = vpop.permute.xlu0 %1339 }
 0x1de   : > { %v1342_v18 = vpop.permute.xlu1 %1341  ;;  %1420 = vst.msk [vmem:[#allocation2 + $0x80] sm:$0xff] %vm1403_vm3, %v1340_v16 }
 0x1df   : > { %1421 = vst.msk [vmem:[#allocation2 + $0x88] sm:$0xff] %vm1403_vm3, %v1342_v18  ;;  %765 = vrot.lane.b32.xlu0 %v2753_v1, %s2421_s30 }
 0x1e0   : > { %830 = vrot.lane.b32.xlu1 %v2739_v0, %s2421_s30 }
 0x1e1   : > { %v921_v42 = vpop.permute.xlu0 %920 }
 0x1e2   : > { %v923_v43 = vpop.permute.xlu1 %922  ;;  %999 = vst.msk [vmem:[#allocation2 + $0x90] sm:$0xff] %vm980_vm11, %v921_v42 }
 0x1e3   : > { %1000 = vst.msk [vmem:[#allocation2 + $0x98] sm:$0xff] %vm980_vm11, %v923_v43  ;;  %1359 = vrot.lane.b32.xlu0 %v2739_v0, %s2425_s17 }
 0x1e4   : > { %1361 = vrot.lane.b32.xlu1 %v2753_v1, %s2425_s17 }
 0x1e5   : > { %v1469_v47 = vpop.permute.xlu0 %1468 }
 0x1e6   : > { %v1471_v48 = vpop.permute.xlu1 %1470  ;;  %1550 = vst.msk [vmem:[#allocation2 + $0x7f] sm:$0xfe] %vm1532_vm4, %v1469_v47 }
 0x1e7   : > { %1575 = vst.msk [vmem:[#allocation2 + $0x8f] sm:$0x1] %vm1566_vm5, %v1469_v47  ;;  %940 = vrot.lane.b32.xlu0 %v2739_v0, %s2422_s6 }
 0x1e8   : > { %1551 = vst.msk [vmem:[#allocation2 + $0x87] sm:$0xff] %vm1534_vm6, %v1471_v48  ;;  %942 = vrot.lane.b32.xlu1 %v2753_v1, %s2422_s6 }
 0x1e9   : > { %v1050_v49 = vpop.permute.xlu0 %1049 }
 0x1ea   : > { %v1052_v50 = vpop.permute.xlu1 %1051  ;;  %1129 = vst.msk [vmem:[#allocation2 + $0x8f] sm:$0xfe] %vm1109_vm12, %v1050_v49 }
 0x1eb   : > { %1153 = vst.msk [vmem:[#allocation2 + $0x9f] sm:$0x1] %vm1143_vm13, %v1050_v49  ;;  %1488 = vrot.lane.b32.xlu0 %v2739_v0, %s2426_s23 }
 0x1ec   : > { %1130 = vst.msk [vmem:[#allocation2 + $0x97] sm:$0xff] %vm1111_vm14, %v1052_v50  ;;  %1490 = vrot.lane.b32.xlu1 %v2753_v1, %s2426_s23 }
 0x1ed   : > { %v1179_v52 = vpop.permute.xlu0 %1178 }
 0x1ee   : > { %v1244_v53 = vpop.permute.xlu1 %1243  ;;  %1218 = vst.msk [vmem:[#allocation2 + $0x89] sm:$0x80] %vm1208_vm15, %v1179_v52 }
 0x1ef   : > { %v1599_v39 = vld [vmem:[#allocation2 + $0x80] sm:$0xff]  ;;  %v1600_v54 = vld [vmem:[#allocation2 + $0x88] sm:$0xff]  ;;  %1294 = vst.msk [vmem:[#allocation2 + $0x99] sm:$0x7f] %vm1275_vm0, %v1179_v52  ;;  %1069 = vrot.lane.b32.xlu0 %v2739_v0, %s2423_s7 }
 0x1f0   : > { %1293 = vst.msk [vmem:[#allocation2 + $0x91] sm:$0xff] %vm1273_vm2, %v1244_v53  ;;  %2357 = vmatprep.mubr.msk.f32.mxu1 %vm1620_vm7, %v1599_v39  ;;  %1071 = vrot.lane.b32.xlu1 %v2753_v1, %s2423_s7 }
 0x1f1   : > { %2358 = vmatmul.mubr.msk.f32.vlgmr.msra.gmra.mrb[0].mxu1 %vm1620_vm7, %v1600_v54  ;;  %v758_v8 = vpop.permute.xlu0 %757 }
 0x1f2   : > { %v823_v13 = vpop.permute.xlu1 %822  ;;  %796 = vst.msk [vmem:[#allocation2 + $0x99] sm:$0x80] %vm785_vm8, %v758_v8 }
 0x1f3   : > { %873 = vst.msk [vmem:[#allocation2 + $0xa9] sm:$0x7f] %vm852_vm9, %v758_v8  ;;  %1188 = vrot.lane.b32.xlu0 %v2514_v29, %s2424_s12 }
 0x1f4   : > { %872 = vst.msk [vmem:[#allocation2 + $0xa1] sm:$0xff] %vm850_vm10, %v823_v13  ;;  %1253 = vrot.lane.b32.xlu1 %v2510_v27, %s2424_s12 }
 0x1f5   : > { %v1344_v0 = vpop.permute.xlu0 %1343 }
 0x1f6   : > { %v1346_v44 = vpop.permute.xlu1 %1345  ;;  %1422 = vst.msk [vmem:[#allocation2 + $0x90] sm:$0xff] %vm1403_vm3, %v1344_v0 }
 0x1f7   : > { %1423 = vst.msk [vmem:[#allocation2 + $0x98] sm:$0xff] %vm1403_vm3, %v1346_v44  ;;  %767 = vrot.lane.b32.xlu0 %v2514_v29, %s2421_s30 }
 0x1f8   : > { %832 = vrot.lane.b32.xlu1 %v2510_v27, %s2421_s30 }
 0x1f9   : > { %v925_v1 = vpop.permute.xlu0 %924 }
 0x1fa   : > { %v927_v55 = vpop.permute.xlu1 %926  ;;  %1001 = vst.msk [vmem:[#allocation2 + $0xa0] sm:$0xff] %vm980_vm11, %v925_v1 }
 0x1fb   : > { %1002 = vst.msk [vmem:[#allocation2 + $0xa8] sm:$0xff] %vm980_vm11, %v927_v55  ;;  %1363 = vrot.lane.b32.xlu0 %v2510_v27, %s2425_s17 }
 0x1fc   : > { %1365 = vrot.lane.b32.xlu1 %v2514_v29, %s2425_s17 }
 0x1fd   : > { %v1473_v51 = vpop.permute.xlu0 %1472 }
 0x1fe   : > { %v1475_v57 = vpop.permute.xlu1 %1474  ;;  %1552 = vst.msk [vmem:[#allocation2 + $0x8f] sm:$0xfe] %vm1532_vm4, %v1473_v51 }
 0x1ff   : > { %1576 = vst.msk [vmem:[#allocation2 + $0x9f] sm:$0x1] %vm1566_vm5, %v1473_v51  ;;  %944 = vrot.lane.b32.xlu0 %v2510_v27, %s2422_s6 }
 0x200   : > { %1553 = vst.msk [vmem:[#allocation2 + $0x97] sm:$0xff] %vm1534_vm6, %v1475_v57  ;;  %946 = vrot.lane.b32.xlu1 %v2514_v29, %s2422_s6 }
 0x201   : > { %v1054_v56 = vpop.permute.xlu0 %1053 }
 0x202   : > { %v1056_v58 = vpop.permute.xlu1 %1055  ;;  %1131 = vst.msk [vmem:[#allocation2 + $0x9f] sm:$0xfe] %vm1109_vm12, %v1054_v56 }
 0x203   : > { %1154 = vst.msk [vmem:[#allocation2 + $0xaf] sm:$0x1] %vm1143_vm13, %v1054_v56  ;;  %1492 = vrot.lane.b32.xlu0 %v2510_v27, %s2426_s23 }
 0x204   : > { %1132 = vst.msk [vmem:[#allocation2 + $0xa7] sm:$0xff] %vm1111_vm14, %v1056_v58  ;;  %1494 = vrot.lane.b32.xlu1 %v2514_v29, %s2426_s23 }
 0x205   : > { %v1181_v59 = vpop.permute.xlu0 %1180 }
 0x206   : > { %v1246_v63 = vpop.permute.xlu1 %1245  ;;  %1219 = vst.msk [vmem:[#allocation2 + $0x99] sm:$0x80] %vm1208_vm15, %v1181_v59 }
 0x207   : > { %v1601_v2 = vld [vmem:[#allocation2 + $0x90] sm:$0xff]  ;;  %v1602_v3 = vld [vmem:[#allocation2 + $0x98] sm:$0xff]  ;;  %1296 = vst.msk [vmem:[#allocation2 + $0xa9] sm:$0x7f] %vm1275_vm0, %v1181_v59  ;;  %1073 = vrot.lane.b32.xlu0 %v2510_v27, %s2423_s7 }
 0x208   : > { %1295 = vst.msk [vmem:[#allocation2 + $0xa1] sm:$0xff] %vm1273_vm2, %v1246_v63  ;;  %2360 = vmatprep.mubr.msk.f32.mxu1 %vm1620_vm7, %v1601_v2  ;;  %1075 = vrot.lane.b32.xlu1 %v2514_v29, %s2423_s7 }
 0x209   : > { %2361 = vmatmul.mubr.msk.f32.gmra.mrb[2].mxu1 %vm1620_vm7, %v1602_v3  ;;  %v760_v7 = vpop.permute.xlu0 %759 }
 0x20a   : > { %v825_v11 = vpop.permute.xlu1 %824  ;;  %797 = vst.msk [vmem:[#allocation2 + $0xa9] sm:$0x80] %vm785_vm8, %v760_v7 }
 0x20b   : > { %875 = vst.msk [vmem:[#allocation2 + $0xb9] sm:$0x7f] %vm852_vm9, %v760_v7  ;;  %1190 = vrot.lane.b32.xlu0 %v2520_v34, %s2424_s12 }
 0x20c   : > { %874 = vst.msk [vmem:[#allocation2 + $0xb1] sm:$0xff] %vm850_vm10, %v825_v11  ;;  %1255 = vrot.lane.b32.xlu1 %v2512_v28, %s2424_s12 }
 0x20d   : > { %v1348_v27 = vpop.permute.xlu0 %1347 }
 0x20e   : > { %v1350_v60 = vpop.permute.xlu1 %1349  ;;  %1424 = vst.msk [vmem:[#allocation2 + $0xa0] sm:$0xff] %vm1403_vm3, %v1348_v27 }
 0x20f   : > { %1425 = vst.msk [vmem:[#allocation2 + $0xa8] sm:$0xff] %vm1403_vm3, %v1350_v60  ;;  %1367 = vrot.lane.b32.xlu0 %v2512_v28, %s2425_s17 }
 0x210   : > { %1369 = vrot.lane.b32.xlu1 %v2520_v34, %s2425_s17 }
 0x211   : > { %v929_v29 = vpop.permute.xlu0 %928 }
 0x212   : > { %v931_v61 = vpop.permute.xlu1 %930  ;;  %1003 = vst.msk [vmem:[#allocation2 + $0xb0] sm:$0xff] %vm980_vm11, %v929_v29 }
 0x213   : > { %1004 = vst.msk [vmem:[#allocation2 + $0xb8] sm:$0xff] %vm980_vm11, %v931_v61  ;;  %1496 = vrot.lane.b32.xlu0 %v2512_v28, %s2426_s23 }
 0x214   : > { %v2335_v30 = vpop.f32.mrb[0].mxu0  ;;  %1498 = vrot.lane.b32.xlu1 %v2520_v34, %s2426_s23 }
 0x215   : > { %1947 = vst.msk [vmem:[%s3545_s26 + $0x8] sm:$0xff] %vm395_vm1, %v2335_v30  ;;  %v1979_v31 = vsel %vm395_vm1, %v2335_v30, 0.0  ;;  %v2050_v9 = vmul.f32 %v2335_v30, %v2335_v30  ;;  %v1787_v12 = vpop.f32.mrb[1].mxu0  ;;  %v1477_v19 = vpop.permute.xlu0 %1476 }
 0x216   : > { %1946 = vst.msk [vmem:[%s3545_s26] sm:$0xff] %vm395_vm1, %v1787_v12  ;;  %v1978_v10 = vsel %vm395_vm1, %v1787_v12, 0.0  ;;  %v2049_v17 = vmul.f32 %v1787_v12, %v1787_v12  ;;  %v1479_v20 = vpop.permute.xlu1 %1478 }
 0x217   : > { %v2082_v21 = vsel %vm395_vm1, %v2050_v9, 0.0  ;;  %v1980_v22 = vadd.f32 %v1979_v31, %v1978_v10  ;;  %1554 = vst.msk [vmem:[#allocation2 + $0x9f] sm:$0xfe] %vm1532_vm4, %v1477_v19 }
 0x218   : > { %1577 = vst.msk [vmem:[#allocation2 + $0xaf] sm:$0x1] %vm1566_vm5, %v1477_v19  ;;  %v2081_v28 = vsel %vm395_vm1, %v2049_v17, 0.0 }
 0x219   : > { %1555 = vst.msk [vmem:[#allocation2 + $0xa7] sm:$0xff] %vm1534_vm6, %v1479_v20  ;;  %v2083_v34 = vadd.f32 %v2082_v21, %v2081_v28  ;;  %v1058_v23 = vpop.permute.xlu0 %1057 }
 0x21a   : > { %v1060_v62 = vpop.permute.xlu1 %1059  ;;  %1133 = vst.msk [vmem:[#allocation2 + $0xaf] sm:$0xfe] %vm1109_vm12, %v1058_v23 }
 0x21b   : > { %1155 = vst.msk [vmem:[#allocation2 + $0xbf] sm:$0x1] %vm1143_vm13, %v1058_v23 }
 0x21c   : > { %1134 = vst.msk [vmem:[#allocation2 + $0xb7] sm:$0xff] %vm1111_vm14, %v1060_v62 }
 0x21d   : > { %v1183_v4 = vpop.permute.xlu0 %1182 }
 0x21e   : > { %v1248_v24 = vpop.permute.xlu1 %1247  ;;  %1220 = vst.msk [vmem:[#allocation2 + $0xa9] sm:$0x80] %vm1208_vm15, %v1183_v4 }
 0x21f   : > { %1298 = vst.msk [vmem:[#allocation2 + $0xb9] sm:$0x7f] %vm1275_vm0, %v1183_v4 }
 0x220   : > { %v1603_v32 = vld [vmem:[#allocation2 + $0xa0] sm:$0xff]  ;;  %v1604_v25 = vld [vmem:[#allocation2 + $0xa8] sm:$0xff]  ;;  %1297 = vst.msk [vmem:[#allocation2 + $0xb1] sm:$0xff] %vm1273_vm2, %v1248_v24 }
 0x221   : > { %2363 = vmatprep.mubr.msk.f32.mxu1 %vm1620_vm7, %v1603_v32  ;;  %v762_v14 = vpop.permute.xlu0 %761 }
 0x222   : > { %2364 = vmatmul.mubr.msk.f32.gmra.mrb[4].mxu1 %vm1620_vm7, %v1604_v25  ;;  %v827_v15 = vpop.permute.xlu1 %826  ;;  %798 = vst.msk [vmem:[#allocation2 + $0xb9] sm:$0x80] %vm785_vm8, %v762_v14 }
 0x223   : > { %877 = vst.msk [vmem:[#allocation2 + $0xc9] sm:$0x7f] %vm852_vm9, %v762_v14 }
 0x224   : > { %876 = vst.msk [vmem:[#allocation2 + $0xc1] sm:$0xff] %vm850_vm10, %v827_v15 }
 0x225   : > { %v1352_v41 = vpop.permute.xlu0 %1351 }
 0x226   : > { %v1354_v26 = vpop.permute.xlu1 %1353  ;;  %1426 = vst.msk [vmem:[#allocation2 + $0xb0] sm:$0xff] %vm1403_vm3, %v1352_v41 }
 0x227   : > { %1427 = vst.msk [vmem:[#allocation2 + $0xb8] sm:$0xff] %vm1403_vm3, %v1354_v26 }
 0x229   : > { %v933_v33 = vpop.permute.xlu0 %932 }
 0x22a   : > { %v935_v37 = vpop.permute.xlu1 %934  ;;  %1005 = vst.msk [vmem:[#allocation2 + $0xc0] sm:$0xff] %vm980_vm11, %v933_v33  ;;  %v2338_v35 = vpop.f32.mrb[2].mxu0 }
 0x22b   : > { %1006 = vst.msk [vmem:[#allocation2 + $0xc8] sm:$0xff] %vm980_vm11, %v935_v37  ;;  %v1797_v38 = vpop.f32.mrb[3].mxu0  ;;  %v2052_v36 = vmul.f32 %v2338_v35, %v2338_v35  ;;  %v1983_v16 = vsel %vm395_vm1, %v2338_v35, 0.0 }
 0x22c   : > { %1949 = vst.msk [vmem:[%s3545_s26 + $0x18] sm:$0xff] %vm395_vm1, %v2338_v35  ;;  %1948 = vst.msk [vmem:[%s3545_s26 + $0x10] sm:$0xff] %vm395_vm1, %v1797_v38  ;;  %v1981_v40 = vsel %vm395_vm1, %v1797_v38, 0.0  ;;  %v2051_v5 = vmul.f32 %v1797_v38, %v1797_v38 }
 0x22d   : > { %v1481_v6 = vpop.permute.xlu0 %1480  ;;  %v1982_v46 = vadd.f32 %v1981_v40, %v1980_v22  ;;  %v2086_v47 = vsel %vm395_vm1, %v2052_v36, 0.0 }
 0x22e   : > { %v1483_v45 = vpop.permute.xlu1 %1482  ;;  %1556 = vst.msk [vmem:[#allocation2 + $0xaf] sm:$0xfe] %vm1532_vm4, %v1481_v6  ;;  %v2084_v18 = vsel %vm395_vm1, %v2051_v5, 0.0 }
 0x22f   : > { %1578 = vst.msk [vmem:[#allocation2 + $0xbf] sm:$0x1] %vm1566_vm5, %v1481_v6  ;;  %v2085_v42 = vadd.f32 %v2084_v18, %v2083_v34  ;;  %v1984_v43 = vadd.f32 %v1983_v16, %v1982_v46 }
 0x230   : > { %1557 = vst.msk [vmem:[#allocation2 + $0xb7] sm:$0xff] %vm1534_vm6, %v1483_v45 }
 0x231   : > { %v1062_v48 = vpop.permute.xlu0 %1061  ;;  %v2087_v50 = vadd.f32 %v2086_v47, %v2085_v42 }
 0x232   : > { %v1064_v49 = vpop.permute.xlu1 %1063  ;;  %1135 = vst.msk [vmem:[#allocation2 + $0xbf] sm:$0xfe] %vm1109_vm12, %v1062_v48 }
 0x233   : > { %1156 = vst.msk [vmem:[#allocation2 + $0xcf] sm:$0x1] %vm1143_vm13, %v1062_v48 }
 0x234   : > { %1136 = vst.msk [vmem:[#allocation2 + $0xc7] sm:$0xff] %vm1111_vm14, %v1064_v49 }
 0x235   : > { %v1185_v52 = vpop.permute.xlu0 %1184 }
 0x236   : > { %v1250_v53 = vpop.permute.xlu1 %1249  ;;  %1221 = vst.msk [vmem:[#allocation2 + $0xb9] sm:$0x80] %vm1208_vm15, %v1185_v52 }
 0x237   : > { %v1605_v39 = vld [vmem:[#allocation2 + $0xb0] sm:$0xff]  ;;  %v1606_v54 = vld [vmem:[#allocation2 + $0xb8] sm:$0xff]  ;;  %1300 = vst.msk [vmem:[#allocation2 + $0xc9] sm:$0x7f] %vm1275_vm0, %v1185_v52 }
 0x238   : > { %1299 = vst.msk [vmem:[#allocation2 + $0xc1] sm:$0xff] %vm1273_vm2, %v1250_v53  ;;  %2366 = vmatprep.mubr.msk.f32.mxu1 %vm1620_vm7, %v1605_v39 }
 0x239   : > { %2367 = vmatmul.mubr.msk.f32.gmra.mrb[6].mxu1 %vm1620_vm7, %v1606_v54  ;;  %v764_v8 = vpop.permute.xlu0 %763 }
 0x23a   : > { %v829_v13 = vpop.permute.xlu1 %828  ;;  %799 = vst.msk [vmem:[#allocation2 + $0xc9] sm:$0x80] %vm785_vm8, %v764_v8 }
 0x23b   : > { %879 = vst.msk [vmem:[#allocation2 + $0xd9] sm:$0x7f] %vm852_vm9, %v764_v8 }
 0x23c   : > { %878 = vst.msk [vmem:[#allocation2 + $0xd1] sm:$0xff] %vm850_vm10, %v829_v13 }
 0x23d   : > { %v1356_v0 = vpop.permute.xlu0 %1355 }
 0x23e   : > { %v1358_v44 = vpop.permute.xlu1 %1357  ;;  %1428 = vst.msk [vmem:[#allocation2 + $0xc0] sm:$0xff] %vm1403_vm3, %v1356_v0 }
 0x23f   : > { %1429 = vst.msk [vmem:[#allocation2 + $0xc8] sm:$0xff] %vm1403_vm3, %v1358_v44 }
 0x240   : > { %v2341_v1 = vpop.f32.mrb[4].mxu0 }
 0x241   : > { %1951 = vst.msk [vmem:[%s3545_s26 + $0x28] sm:$0xff] %vm395_vm1, %v2341_v1  ;;  %v1807_v55 = vpop.f32.mrb[5].mxu0  ;;  %v2054_v51 = vmul.f32 %v2341_v1, %v2341_v1  ;;  %v937_v58 = vpop.permute.xlu0 %936  ;;  %v1987_v2 = vsel %vm395_vm1, %v2341_v1, 0.0 }
 0x242   : > { %1950 = vst.msk [vmem:[%s3545_s26 + $0x20] sm:$0xff] %vm395_vm1, %v1807_v55  ;;  %v1985_v57 = vsel %vm395_vm1, %v1807_v55, 0.0  ;;  %v2053_v56 = vmul.f32 %v1807_v55, %v1807_v55  ;;  %v939_v59 = vpop.permute.xlu1 %938 }
 0x243   : > { %v1986_v63 = vadd.f32 %v1985_v57, %v1984_v43  ;;  %1007 = vst.msk [vmem:[#allocation2 + $0xd0] sm:$0xff] %vm980_vm11, %v937_v58  ;;  %1008 = vst.msk [vmem:[#allocation2 + $0xd8] sm:$0xff] %vm980_vm11, %v939_v59  ;;  %v2090_v27 = vsel %vm395_vm1, %v2054_v51, 0.0 }
 0x244   : > { %v2088_v3 = vsel %vm395_vm1, %v2053_v56, 0.0 }
 0x245   : > { %v2089_v7 = vadd.f32 %v2088_v3, %v2087_v50  ;;  %v1988_v11 = vadd.f32 %v1987_v2, %v1986_v63  ;;  %v1485_v60 = vpop.permute.xlu0 %1484 }
 0x246   : > { %v1487_v29 = vpop.permute.xlu1 %1486  ;;  %1558 = vst.msk [vmem:[#allocation2 + $0xbf] sm:$0xfe] %vm1532_vm4, %v1485_v60 }
 0x247   : > { %1579 = vst.msk [vmem:[#allocation2 + $0xcf] sm:$0x1] %vm1566_vm5, %v1485_v60  ;;  %v2091_v61 = vadd.f32 %v2090_v27, %v2089_v7 }
 0x248   : > { %1559 = vst.msk [vmem:[#allocation2 + $0xc7] sm:$0xff] %vm1534_vm6, %v1487_v29 }
 0x249   : > { %v1066_v30 = vpop.permute.xlu0 %1065 }
 0x24a   : > { %v1068_v31 = vpop.permute.xlu1 %1067  ;;  %1137 = vst.msk [vmem:[#allocation2 + $0xcf] sm:$0xfe] %vm1109_vm12, %v1066_v30 }
 0x24b   : > { %1157 = vst.msk [vmem:[#allocation2 + $0xdf] sm:$0x1] %vm1143_vm13, %v1066_v30 }
 0x24c   : > { %1138 = vst.msk [vmem:[#allocation2 + $0xd7] sm:$0xff] %vm1111_vm14, %v1068_v31 }
 0x24d   : > { %v1187_v9 = vpop.permute.xlu0 %1186 }
 0x24e   : > { %v1252_v12 = vpop.permute.xlu1 %1251  ;;  %1222 = vst.msk [vmem:[#allocation2 + $0xc9] sm:$0x80] %vm1208_vm15, %v1187_v9 }
 0x24f   : > { %v1607_v10 = vld [vmem:[#allocation2 + $0xc0] sm:$0xff]  ;;  %v1608_v17 = vld [vmem:[#allocation2 + $0xc8] sm:$0xff]  ;;  %1302 = vst.msk [vmem:[#allocation2 + $0xd9] sm:$0x7f] %vm1275_vm0, %v1187_v9 }
 0x250   : > { %1301 = vst.msk [vmem:[#allocation2 + $0xd1] sm:$0xff] %vm1273_vm2, %v1252_v12  ;;  %2369 = vmatprep.mubr.msk.f32.mxu1 %vm1620_vm7, %v1607_v10 }
 0x251   : > { %2370 = vmatmul.mubr.msk.f32.gmra.mrb[8].mxu1 %vm1620_vm7, %v1608_v17  ;;  %v766_v19 = vpop.permute.xlu0 %765 }
 0x252   : > { %v831_v20 = vpop.permute.xlu1 %830  ;;  %800 = vst.msk [vmem:[#allocation2 + $0xd9] sm:$0x80] %vm785_vm8, %v766_v19 }
 0x253   : > { %881 = vst.msk [vmem:[#allocation2 + $0xe9] sm:$0x7f] %vm852_vm9, %v766_v19 }
 0x254   : > { %880 = vst.msk [vmem:[#allocation2 + $0xe1] sm:$0xff] %vm850_vm10, %v831_v20 }
 0x255   : > { %v1360_v21 = vpop.permute.xlu0 %1359 }
 0x256   : > { %v1362_v22 = vpop.permute.xlu1 %1361  ;;  %1430 = vst.msk [vmem:[#allocation2 + $0xd0] sm:$0xff] %vm1403_vm3, %v1360_v21  ;;  %v2344_v28 = vpop.f32.mrb[6].mxu0 }
 0x257   : > { %1431 = vst.msk [vmem:[#allocation2 + $0xd8] sm:$0xff] %vm1403_vm3, %v1362_v22  ;;  %v1817_v34 = vpop.f32.mrb[7].mxu0  ;;  %v2056_v23 = vmul.f32 %v2344_v28, %v2344_v28  ;;  %v1991_v14 = vsel %vm395_vm1, %v2344_v28, 0.0 }
 0x258   : > { %1953 = vst.msk [vmem:[%s3545_s26 + $0x38] sm:$0xff] %vm395_vm1, %v2344_v28  ;;  %1952 = vst.msk [vmem:[%s3545_s26 + $0x30] sm:$0xff] %vm395_vm1, %v1817_v34  ;;  %v1989_v62 = vsel %vm395_vm1, %v1817_v34, 0.0  ;;  %v2055_v4 = vmul.f32 %v1817_v34, %v1817_v34 }
 0x259   : > { %v941_v24 = vpop.permute.xlu0 %940  ;;  %v1990_v25 = vadd.f32 %v1989_v62, %v1988_v11  ;;  %v2094_v33 = vsel %vm395_vm1, %v2056_v23, 0.0 }
 0x25a   : > { %v943_v32 = vpop.permute.xlu1 %942  ;;  %1009 = vst.msk [vmem:[#allocation2 + $0xe0] sm:$0xff] %vm980_vm11, %v941_v24  ;;  %v2092_v15 = vsel %vm395_vm1, %v2055_v4, 0.0 }
 0x25b   : > { %1010 = vst.msk [vmem:[#allocation2 + $0xe8] sm:$0xff] %vm980_vm11, %v943_v32  ;;  %v2093_v41 = vadd.f32 %v2092_v15, %v2091_v61  ;;  %v1992_v26 = vadd.f32 %v1991_v14, %v1990_v25 }
 0x25d   : > { %v1489_v37 = vpop.permute.xlu0 %1488  ;;  %v2095_v38 = vadd.f32 %v2094_v33, %v2093_v41 }
 0x25e   : > { %v1491_v35 = vpop.permute.xlu1 %1490  ;;  %1560 = vst.msk [vmem:[#allocation2 + $0xcf] sm:$0xfe] %vm1532_vm4, %v1489_v37 }
 0x25f   : > { %1580 = vst.msk [vmem:[#allocation2 + $0xdf] sm:$0x1] %vm1566_vm5, %v1489_v37 }
 0x260   : > { %1561 = vst.msk [vmem:[#allocation2 + $0xd7] sm:$0xff] %vm1534_vm6, %v1491_v35 }
 0x261   : > { %v1070_v36 = vpop.permute.xlu0 %1069 }
 0x262   : > { %v1072_v40 = vpop.permute.xlu1 %1071  ;;  %1139 = vst.msk [vmem:[#allocation2 + $0xdf] sm:$0xfe] %vm1109_vm12, %v1070_v36 }
 0x263   : > { %1158 = vst.msk [vmem:[#allocation2 + $0xef] sm:$0x1] %vm1143_vm13, %v1070_v36 }
 0x264   : > { %1140 = vst.msk [vmem:[#allocation2 + $0xe7] sm:$0xff] %vm1111_vm14, %v1072_v40 }
 0x265   : > { %v1189_v5 = vpop.permute.xlu0 %1188 }
 0x266   : > { %v1254_v6 = vpop.permute.xlu1 %1253  ;;  %1223 = vst.msk [vmem:[#allocation2 + $0xd9] sm:$0x80] %vm1208_vm15, %v1189_v5 }
 0x267   : > { %v1609_v45 = vld [vmem:[#allocation2 + $0xd0] sm:$0xff]  ;;  %v1610_v46 = vld [vmem:[#allocation2 + $0xd8] sm:$0xff]  ;;  %1304 = vst.msk [vmem:[#allocation2 + $0xe9] sm:$0x7f] %vm1275_vm0, %v1189_v5 }
 0x268   : > { %1303 = vst.msk [vmem:[#allocation2 + $0xe1] sm:$0xff] %vm1273_vm2, %v1254_v6  ;;  %2372 = vmatprep.mubr.msk.f32.mxu1 %vm1620_vm7, %v1609_v45 }
 0x269   : > { %2373 = vmatmul.mubr.msk.f32.gmra.mrb[10].mxu1 %vm1620_vm7, %v1610_v46  ;;  %v768_v16 = vpop.permute.xlu0 %767 }
 0x26a   : > { %v833_v18 = vpop.permute.xlu1 %832  ;;  %801 = vst.msk [vmem:[#allocation2 + $0xe9] sm:$0x80] %vm785_vm8, %v768_v16  ;;  %vm2047_vm8 = vcmask 24576  }
 0x26b   : > { %883 = vst.msk [vmem:[#allocation2 + $0xf9] sm:$0x7f] %vm852_vm9, %v768_v16 }
 0x26c   : > { %882 = vst.msk [vmem:[#allocation2 + $0xf1] sm:$0xff] %vm850_vm10, %v833_v18  ;;  %v2347_v42 = vpop.f32.mrb[8].mxu0 }
 0x26d   : > { %1955 = vst.msk [vmem:[%s3545_s26 + $0x48] sm:$0xff] %vm395_vm1, %v2347_v42  ;;  %v1827_v43 = vpop.f32.mrb[9].mxu0  ;;  %v2058_v47 = vmul.f32 %v2347_v42, %v2347_v42  ;;  %v1364_v50 = vpop.permute.xlu0 %1363  ;;  %v1995_v39 = vsel %vm395_vm1, %v2347_v42, 0.0 }
 0x26e   : > { %1954 = vst.msk [vmem:[%s3545_s26 + $0x40] sm:$0xff] %vm395_vm1, %v1827_v43  ;;  %v1993_v48 = vsel %vm395_vm1, %v1827_v43, 0.0  ;;  %v2057_v49 = vmul.f32 %v1827_v43, %v1827_v43  ;;  %v1366_v52 = vpop.permute.xlu1 %1365 }
 0x26f   : > { %v1994_v53 = vadd.f32 %v1993_v48, %v1992_v26  ;;  %1432 = vst.msk [vmem:[#allocation2 + $0xe0] sm:$0xff] %vm1403_vm3, %v1364_v50  ;;  %1433 = vst.msk [vmem:[#allocation2 + $0xe8] sm:$0xff] %vm1403_vm3, %v1366_v52  ;;  %v2098_v0 = vsel %vm395_vm1, %v2058_v47, 0.0 }
 0x270   : > { %v2096_v54 = vsel %vm395_vm1, %v2057_v49, 0.0 }
 0x271   : > { %v2097_v8 = vadd.f32 %v2096_v54, %v2095_v38  ;;  %v1996_v13 = vadd.f32 %v1995_v39, %v1994_v53  ;;  %v945_v44 = vpop.permute.xlu0 %944 }
 0x272   : > { %v947_v1 = vpop.permute.xlu1 %946  ;;  %1011 = vst.msk [vmem:[#allocation2 + $0xf0] sm:$0xff] %vm980_vm11, %v945_v44 }
 0x273   : > { %1012 = vst.msk [vmem:[#allocation2 + $0xf8] sm:$0xff] %vm980_vm11, %v947_v1  ;;  %v2099_v55 = vadd.f32 %v2098_v0, %v2097_v8 }
 0x275   : > { %v1493_v51 = vpop.permute.xlu0 %1492 }
 0x276   : > { %v1495_v57 = vpop.permute.xlu1 %1494  ;;  %1562 = vst.msk [vmem:[#allocation2 + $0xdf] sm:$0xfe] %vm1532_vm4, %v1493_v51 }
 0x277   : > { %1581 = vst.msk [vmem:[#allocation2 + $0xef] sm:$0x1] %vm1566_vm5, %v1493_v51 }
 0x278   : > { %1563 = vst.msk [vmem:[#allocation2 + $0xe7] sm:$0xff] %vm1534_vm6, %v1495_v57 }
 0x279   : > { %v1074_v56 = vpop.permute.xlu0 %1073 }
 0x27a   : > { %v1076_v58 = vpop.permute.xlu1 %1075  ;;  %1141 = vst.msk [vmem:[#allocation2 + $0xef] sm:$0xfe] %vm1109_vm12, %v1074_v56 }
 0x27b   : > { %1159 = vst.msk [vmem:[#allocation2 + $0xff] sm:$0x1] %vm1143_vm13, %v1074_v56 }
 0x27c   : > { %1142 = vst.msk [vmem:[#allocation2 + $0xf7] sm:$0xff] %vm1111_vm14, %v1076_v58 }
 0x27d   : > { %v1191_v59 = vpop.permute.xlu0 %1190 }
 0x27e   : > { %v1256_v63 = vpop.permute.xlu1 %1255  ;;  %1224 = vst.msk [vmem:[#allocation2 + $0xe9] sm:$0x80] %vm1208_vm15, %v1191_v59 }
 0x27f   : > { %v1611_v2 = vld [vmem:[#allocation2 + $0xe0] sm:$0xff]  ;;  %v1612_v3 = vld [vmem:[#allocation2 + $0xe8] sm:$0xff]  ;;  %1306 = vst.msk [vmem:[#allocation2 + $0xf9] sm:$0x7f] %vm1275_vm0, %v1191_v59 }
 0x280   : > { %1305 = vst.msk [vmem:[#allocation2 + $0xf1] sm:$0xff] %vm1273_vm2, %v1256_v63  ;;  %2375 = vmatprep.mubr.msk.f32.mxu1 %vm1620_vm7, %v1611_v2 }
 0x281   : > { %2376 = vmatmul.mubr.msk.f32.gmra.mrb[12].mxu1 %vm1620_vm7, %v1612_v3  ;;  %v1368_v7 = vpop.permute.xlu0 %1367 }
 0x282   : > { %v1370_v11 = vpop.permute.xlu1 %1369  ;;  %1434 = vst.msk [vmem:[#allocation2 + $0xf0] sm:$0xff] %vm1403_vm3, %v1368_v7  ;;  %v2350_v27 = vpop.f32.mrb[10].mxu0 }
 0x283   : > { %1435 = vst.msk [vmem:[#allocation2 + $0xf8] sm:$0xff] %vm1403_vm3, %v1370_v11  ;;  %v1837_v60 = vpop.f32.mrb[11].mxu0  ;;  %v2060_v29 = vmul.f32 %v2350_v27, %v2350_v27  ;;  %v1999_v10 = vsel %vm395_vm1, %v2350_v27, 0.0 }
 0x284   : > { %1957 = vst.msk [vmem:[%s3545_s26 + $0x58] sm:$0xff] %vm395_vm1, %v2350_v27  ;;  %1956 = vst.msk [vmem:[%s3545_s26 + $0x50] sm:$0xff] %vm395_vm1, %v1837_v60  ;;  %v1997_v61 = vsel %vm395_vm1, %v1837_v60, 0.0  ;;  %v2059_v30 = vmul.f32 %v1837_v60, %v1837_v60 }
 0x285   : > { %v1497_v31 = vpop.permute.xlu0 %1496  ;;  %v1998_v12 = vadd.f32 %v1997_v61, %v1996_v13  ;;  %v2102_v21 = vsel %vm395_vm1, %v2060_v29, 0.0 }
 0x286   : > { %v1499_v9 = vpop.permute.xlu1 %1498  ;;  %1564 = vst.msk [vmem:[#allocation2 + $0xef] sm:$0xfe] %vm1532_vm4, %v1497_v31  ;;  %v2100_v17 = vsel %vm395_vm1, %v2059_v30, 0.0 }
 0x287   : > { %1582 = vst.msk [vmem:[#allocation2 + $0xff] sm:$0x1] %vm1566_vm5, %v1497_v31  ;;  %v2101_v19 = vadd.f32 %v2100_v17, %v2099_v55  ;;  %v2000_v20 = vadd.f32 %v1999_v10, %v1998_v12 }
 0x288   : > { %1565 = vst.msk [vmem:[#allocation2 + $0xf7] sm:$0xff] %vm1534_vm6, %v1499_v9 }
 0x289   : > { %v2103_v22 = vadd.f32 %v2102_v21, %v2101_v19 }
 0x28f   : > { %v1613_v28 = vld [vmem:[#allocation2 + $0xf0] sm:$0xff]  ;;  %v1614_v34 = vld [vmem:[#allocation2 + $0xf8] sm:$0xff] }
 0x290   : > { %2378 = vmatprep.mubr.msk.f32.mxu1 %vm1620_vm7, %v1613_v28 }
 0x291   : > { %2379 = vmatmul.mubr.msk.f32.gmra.mrb[14].mxu1 %vm1620_vm7, %v1614_v34 }
 0x298   : > { %v2353_v23 = vpop.f32.mrb[12].mxu0 }
 0x299   : > { %1959 = vst.msk [vmem:[%s3545_s26 + $0x68] sm:$0xff] %vm395_vm1, %v2353_v23  ;;  %v1847_v62 = vpop.f32.mrb[13].mxu0  ;;  %v2062_v4 = vmul.f32 %v2353_v23, %v2353_v23  ;;  %v2003_v14 = vsel %vm395_vm1, %v2353_v23, 0.0 }
 0x29a   : > { %1958 = vst.msk [vmem:[%s3545_s26 + $0x60] sm:$0xff] %vm395_vm1, %v1847_v62  ;;  %v2001_v24 = vsel %vm395_vm1, %v1847_v62, 0.0  ;;  %v2061_v32 = vmul.f32 %v1847_v62, %v1847_v62 }
 0x29b   : > { %v2002_v25 = vadd.f32 %v2001_v24, %v2000_v20  ;;  %v2106_v33 = vsel %vm395_vm1, %v2062_v4, 0.0 }
 0x29c   : > { %v2104_v15 = vsel %vm395_vm1, %v2061_v32, 0.0 }
 0x29d   : > { %v2105_v41 = vadd.f32 %v2104_v15, %v2103_v22  ;;  %v2004_v26 = vadd.f32 %v2003_v14, %v2002_v25 }
 0x29f   : > { %v2107_v37 = vadd.f32 %v2106_v33, %v2105_v41 }
 0x2ae   : > { %v2356_v35 = vpop.f32.mrb[14].mxu0 }
 0x2af   : > { %1961 = vst.msk [vmem:[%s3545_s26 + $0x78] sm:$0xff] %vm395_vm1, %v2356_v35  ;;  %v1857_v38 = vpop.f32.mrb[15].mxu0  ;;  %v2064_v36 = vmul.f32 %v2356_v35, %v2356_v35  ;;  %v2007_v45 = vsel %vm395_vm1, %v2356_v35, 0.0 }
 0x2b0   : > { %1960 = vst.msk [vmem:[%s3545_s26 + $0x70] sm:$0xff] %vm395_vm1, %v1857_v38  ;;  %v2005_v40 = vsel %vm395_vm1, %v1857_v38, 0.0  ;;  %v2063_v5 = vmul.f32 %v1857_v38, %v1857_v38 }
 0x2b1   : > { %v2006_v6 = vadd.f32 %v2005_v40, %v2004_v26  ;;  %v2110_v42 = vsel %vm395_vm1, %v2064_v36, 0.0 }
 0x2b2   : > { %v2108_v46 = vsel %vm395_vm1, %v2063_v5, 0.0 }
 0x2b3   : > { %v2008_v16 = vadd.f32 %v2007_v45, %v2006_v6  ;;  %v2109_v18 = vadd.f32 %v2108_v46, %v2107_v37 }
 0x2b5   : > { %v2111_v43 = vadd.f32 %v2110_v42, %v2109_v18 }
 0x2c4   : > { %v2359_v47 = vpop.f32.mrb[0].mxu1 }
 0x2c5   : > { %1963 = vst.msk [vmem:[%s3545_s26 + $0x88] sm:$0xff] %vm395_vm1, %v2359_v47  ;;  %v1867_v48 = vpop.f32.mrb[1].mxu1  ;;  %v2066_v49 = vmul.f32 %v2359_v47, %v2359_v47  ;;  %v2011_v39 = vsel %vm395_vm1, %v2359_v47, 0.0 }
 0x2c6   : > { %1962 = vst.msk [vmem:[%s3545_s26 + $0x80] sm:$0xff] %vm395_vm1, %v1867_v48  ;;  %v2009_v50 = vsel %vm395_vm1, %v1867_v48, 0.0  ;;  %v2065_v52 = vmul.f32 %v1867_v48, %v1867_v48 }
 0x2c7   : > { %v2010_v53 = vadd.f32 %v2009_v50, %v2008_v16  ;;  %v2114_v0 = vsel %vm395_vm1, %v2066_v49, 0.0 }
 0x2c8   : > { %v2112_v54 = vsel %vm395_vm1, %v2065_v52, 0.0 }
 0x2c9   : > { %v2113_v8 = vadd.f32 %v2112_v54, %v2111_v43  ;;  %v2012_v13 = vadd.f32 %v2011_v39, %v2010_v53 }
 0x2cb   : > { %v2115_v44 = vadd.f32 %v2114_v0, %v2113_v8 }
 0x2dc   : > { %v2362_v1 = vpop.f32.mrb[2].mxu1 }
 0x2dd   : > { %1965 = vst.msk [vmem:[%s3545_s26 + $0x98] sm:$0xff] %vm395_vm1, %v2362_v1  ;;  %v1877_v55 = vpop.f32.mrb[3].mxu1  ;;  %v2068_v51 = vmul.f32 %v2362_v1, %v2362_v1  ;;  %v2015_v59 = vsel %vm395_vm1, %v2362_v1, 0.0 }
 0x2de   : > { %1964 = vst.msk [vmem:[%s3545_s26 + $0x90] sm:$0xff] %vm395_vm1, %v1877_v55  ;;  %v2013_v57 = vsel %vm395_vm1, %v1877_v55, 0.0  ;;  %v2067_v56 = vmul.f32 %v1877_v55, %v1877_v55 }
 0x2df   : > { %v2014_v58 = vadd.f32 %v2013_v57, %v2012_v13  ;;  %v2118_v7 = vsel %vm395_vm1, %v2068_v51, 0.0 }
 0x2e0   : > { %v2116_v63 = vsel %vm395_vm1, %v2067_v56, 0.0 }
 0x2e1   : > { %v2117_v2 = vadd.f32 %v2116_v63, %v2115_v44  ;;  %v2016_v3 = vadd.f32 %v2015_v59, %v2014_v58 }
 0x2e3   : > { %v2119_v11 = vadd.f32 %v2118_v7, %v2117_v2 }
 0x2f5   : > { %v2365_v27 = vpop.f32.mrb[4].mxu1 }
 0x2f6   : > { %1967 = vst.msk [vmem:[%s3545_s26 + $0xa8] sm:$0xff] %vm395_vm1, %v2365_v27  ;;  %v1887_v60 = vpop.f32.mrb[5].mxu1  ;;  %v2070_v29 = vmul.f32 %v2365_v27, %v2365_v27  ;;  %v2019_v9 = vsel %vm395_vm1, %v2365_v27, 0.0 }
 0x2f7   : > { %1966 = vst.msk [vmem:[%s3545_s26 + $0xa0] sm:$0xff] %vm395_vm1, %v1887_v60  ;;  %v2017_v61 = vsel %vm395_vm1, %v1887_v60, 0.0  ;;  %v2069_v30 = vmul.f32 %v1887_v60, %v1887_v60 }
 0x2f8   : > { %v2018_v31 = vadd.f32 %v2017_v61, %v2016_v3  ;;  %v2122_v19 = vsel %vm395_vm1, %v2070_v29, 0.0 }
 0x2f9   : > { %v2120_v12 = vsel %vm395_vm1, %v2069_v30, 0.0 }
 0x2fa   : > { %v2121_v10 = vadd.f32 %v2120_v12, %v2119_v11  ;;  %v2020_v17 = vadd.f32 %v2019_v9, %v2018_v31 }
 0x2fc   : > { %v2123_v20 = vadd.f32 %v2122_v19, %v2121_v10 }
 0x30c   : > { %v2368_v21 = vpop.f32.mrb[6].mxu1 }
 0x30d   : > { %1969 = vst.msk [vmem:[%s3545_s26 + $0xb8] sm:$0xff] %vm395_vm1, %v2368_v21  ;;  %v1897_v22 = vpop.f32.mrb[7].mxu1  ;;  %v2072_v28 = vmul.f32 %v2368_v21, %v2368_v21  ;;  %v2023_v4 = vsel %vm395_vm1, %v2368_v21, 0.0 }
 0x30e   : > { %1968 = vst.msk [vmem:[%s3545_s26 + $0xb0] sm:$0xff] %vm395_vm1, %v1897_v22  ;;  %v2021_v34 = vsel %vm395_vm1, %v1897_v22, 0.0  ;;  %v2071_v23 = vmul.f32 %v1897_v22, %v1897_v22 }
 0x30f   : > { %v2022_v62 = vadd.f32 %v2021_v34, %v2020_v17  ;;  %v2126_v14 = vsel %vm395_vm1, %v2072_v28, 0.0 }
 0x310   : > { %v2124_v24 = vsel %vm395_vm1, %v2071_v23, 0.0 }
 0x311   : > { %v2125_v32 = vadd.f32 %v2124_v24, %v2123_v20  ;;  %v2024_v25 = vadd.f32 %v2023_v4, %v2022_v62 }
 0x313   : > { %v2127_v15 = vadd.f32 %v2126_v14, %v2125_v32 }
 0x324   : > { %v2371_v41 = vpop.f32.mrb[8].mxu1 }
 0x325   : > { %1971 = vst.msk [vmem:[%s3545_s26 + $0xc8] sm:$0xff] %vm395_vm1, %v2371_v41  ;;  %v1907_v26 = vpop.f32.mrb[9].mxu1  ;;  %v2074_v33 = vmul.f32 %v2371_v41, %v2371_v41  ;;  %v2027_v36 = vsel %vm395_vm1, %v2371_v41, 0.0 }
 0x326   : > { %1970 = vst.msk [vmem:[%s3545_s26 + $0xc0] sm:$0xff] %vm395_vm1, %v1907_v26  ;;  %v2025_v37 = vsel %vm395_vm1, %v1907_v26, 0.0  ;;  %v2073_v35 = vmul.f32 %v1907_v26, %v1907_v26 }
 0x327   : > { %v2026_v38 = vadd.f32 %v2025_v37, %v2024_v25  ;;  %v2130_v45 = vsel %vm395_vm1, %v2074_v33, 0.0 }
 0x328   : > { %v2128_v40 = vsel %vm395_vm1, %v2073_v35, 0.0 }
 0x329   : > { %v2129_v5 = vadd.f32 %v2128_v40, %v2127_v15  ;;  %v2028_v6 = vadd.f32 %v2027_v36, %v2026_v38 }
 0x32b   : > { %v2131_v46 = vadd.f32 %v2130_v45, %v2129_v5 }
 0x33c   : > { %v2374_v16 = vpop.f32.mrb[10].mxu1 }
 0x33d   : > { %1973 = vst.msk [vmem:[%s3545_s26 + $0xd8] sm:$0xff] %vm395_vm1, %v2374_v16  ;;  %v1917_v18 = vpop.f32.mrb[11].mxu1  ;;  %v2076_v42 = vmul.f32 %v2374_v16, %v2374_v16  ;;  %v2031_v49 = vsel %vm395_vm1, %v2374_v16, 0.0 }
 0x33e   : > { %1972 = vst.msk [vmem:[%s3545_s26 + $0xd0] sm:$0xff] %vm395_vm1, %v1917_v18  ;;  %v2029_v43 = vsel %vm395_vm1, %v1917_v18, 0.0  ;;  %v2075_v47 = vmul.f32 %v1917_v18, %v1917_v18 }
 0x33f   : > { %v2030_v48 = vadd.f32 %v2029_v43, %v2028_v6  ;;  %v2134_v39 = vsel %vm395_vm1, %v2076_v42, 0.0 }
 0x340   : > { %v2132_v50 = vsel %vm395_vm1, %v2075_v47, 0.0 }
 0x341   : > { %v2133_v52 = vadd.f32 %v2132_v50, %v2131_v46  ;;  %v2032_v53 = vadd.f32 %v2031_v49, %v2030_v48 }
 0x343   : > { %v2135_v54 = vadd.f32 %v2134_v39, %v2133_v52 }
 0x354   : > { %v2377_v8 = vpop.f32.mrb[12].mxu1 }
 0x355   : > { %1975 = vst.msk [vmem:[%s3545_s26 + $0xe8] sm:$0xff] %vm395_vm1, %v2377_v8  ;;  %v1927_v13 = vpop.f32.mrb[13].mxu1  ;;  %v2078_v0 = vmul.f32 %v2377_v8, %v2377_v8  ;;  %v2035_v51 = vsel %vm395_vm1, %v2377_v8, 0.0 }
 0x356   : > { %1974 = vst.msk [vmem:[%s3545_s26 + $0xe0] sm:$0xff] %vm395_vm1, %v1927_v13  ;;  %v2033_v44 = vsel %vm395_vm1, %v1927_v13, 0.0  ;;  %v2077_v1 = vmul.f32 %v1927_v13, %v1927_v13 }
 0x357   : > { %v2034_v55 = vadd.f32 %v2033_v44, %v2032_v53  ;;  %v2138_v59 = vsel %vm395_vm1, %v2078_v0, 0.0 }
 0x358   : > { %v2136_v57 = vsel %vm395_vm1, %v2077_v1, 0.0 }
 0x359   : > { %v2137_v56 = vadd.f32 %v2136_v57, %v2135_v54  ;;  %v2036_v58 = vadd.f32 %v2035_v51, %v2034_v55 }
 0x35b   : > { %v2139_v63 = vadd.f32 %v2138_v59, %v2137_v56 }
 0x364   : > { %v2380_v2 = vpop.f32.mrb[14].mxu1 }
 0x365   : > { %1977 = vst.msk [vmem:[%s3545_s26 + $0xf8] sm:$0xff] %vm395_vm1, %v2380_v2  ;;  %v1937_v3 = vpop.f32.mrb[15].mxu1  ;;  %v2080_v7 = vmul.f32 %v2380_v2, %v2380_v2  ;;  %v2039_v29 = vsel %vm395_vm1, %v2380_v2, 0.0 }
 0x366   : > { %1976 = vst.msk [vmem:[%s3545_s26 + $0xf0] sm:$0xff] %vm395_vm1, %v1937_v3  ;;  %v2037_v11 = vsel %vm395_vm1, %v1937_v3, 0.0  ;;  %v2079_v27 = vmul.f32 %v1937_v3, %v1937_v3 }
 0x367   : > { %v2038_v60 = vadd.f32 %v2037_v11, %v2036_v58  ;;  %v2142_v9 = vsel %vm395_vm1, %v2080_v7, 0.0 }
 0x368   : > { %v2140_v61 = vsel %vm395_vm1, %v2079_v27, 0.0 }
 0x369   : > { %v2040_v30 = vadd.f32 %v2039_v29, %v2038_v60  ;;  %v2141_v31 = vadd.f32 %v2140_v61, %v2139_v63 }
 0x36b   : > { %v2041_v12 = vrot.slane %v2040_v30, 4  ;;  %v2143_v10 = vadd.f32 %v2142_v9, %v2141_v31 }
 0x36d   : > { %v2042_v17 = vadd.f32 %v2041_v12, %v2040_v30  ;;  %v2144_v19 = vrot.slane %v2143_v10, 4 }
 0x36f   : > { %v2043_v20 = vrot.slane %v2042_v17, 2  ;;  %v2145_v21 = vadd.f32 %v2144_v19, %v2143_v10 }
 0x371   : > { %v2044_v22 = vadd.f32 %v2043_v20, %v2042_v17  ;;  %v2146_v28 = vrot.slane %v2145_v21, 2 }
 0x373   : > { %v2045_v34 = vrot.slane %v2044_v22, 1  ;;  %v2147_v23 = vadd.f32 %v2146_v28, %v2145_v21 }
 0x375   : > { %v2046_v62 = vadd.f32 %v2045_v34, %v2044_v22  ;;  %v2148_v4 = vrot.slane %v2147_v23, 1 }
 0x377   : > { %2048 = vst.msk [vmem:[%s235_s29] sm:$0x1] %vm2047_vm8, %v2046_v62  ;;  %v2149_v24 = vadd.f32 %v2148_v4, %v2147_v23 }
 0x379   : > { %2150 = vst.msk [vmem:[%s235_s29 + $0x1] sm:$0x1] %vm2047_vm8, %v2149_v24 }
 0x37a PF: > { %s16_s18 = sadd.s32 1, %s2417_s18  }
 0x37b   : > { %p13_p4 = scmp.ge.s32.totalorder %s16_s18, 4  }
 0x37d   :  { %15 = sbr.rel (!%p13_p4) target bundleno = 1 (0x1), region = 78 }

</bundles_post_ra>
